<compile_context>
chip_gen: v7x
topology: tpu7x:2x2x1
jax: 0.10.0
libtpu: 0.0.40
codegen_flags: <defaults>
</compile_context>

<pallas_src>
import functools
import math

import jax
import jax.numpy as jnp
from jax.experimental import pallas as pl
from jax.experimental.pallas import tpu as pltpu

VMEM_LIMIT = 48 * 1024 * 1024
GROWTH = 32


def _rup(x, m):
    return ((x + m - 1) // m) * m


# ---------------------------------------------------------------------------
# Tiled matmul with fused bias + activation (1x1 convs, stride-2 convs).
# bf16 operands -> MXU, f32 accumulation, fused epilogue.
# ---------------------------------------------------------------------------
def _matmul_kernel(a_ref, b_ref, bias_ref, o_ref, acc_ref, *, act):
    @pl.when(pl.program_id(2) == 0)
    def _():
        acc_ref[...] = jnp.zeros_like(acc_ref)

    acc_ref[...] += jnp.dot(a_ref[...], b_ref[...],
                            preferred_element_type=jnp.float32)

    @pl.when(pl.program_id(2) == pl.num_programs(2) - 1)
    def _():
        r = acc_ref[...] + bias_ref[...]
        if act == "relu":
            r = jnp.maximum(r, 0.0)
        elif act == "sigmoid":
            r = pl.reciprocal(1.0 + jnp.exp(-r), approx=True)
        o_ref[...] = r.astype(o_ref.dtype)


def _matmul_bias_act(a, p, act, w_mat=None):
    """a: (M, kraw) activation @ pre-padded bf16 weight (+bias, act)."""
    M, K = a.shape
    assert K == p["kraw"]
    Kp, Np = p["Kp"], p["Np"]
    w = p["w_mat_p"] if w_mat is None else w_mat
    Mp = _rup(M, 128)
    TM = 256 if Mp % 256 == 0 else 128
    TN = 256 if Np % 256 == 0 else 128
    TK = 512 if Kp % 512 == 0 else (256 if Kp % 256 == 0 else 128)
    a_p = jnp.pad(a.astype(jnp.bfloat16), ((0, Mp - M), (0, Kp - K)))

    grid = (Mp // TM, Np // TN, Kp // TK)
    out = pl.pallas_call(
        functools.partial(_matmul_kernel, act=act),
        out_shape=jax.ShapeDtypeStruct((Mp, Np), jnp.bfloat16),
        grid_spec=pltpu.PrefetchScalarGridSpec(
            num_scalar_prefetch=0,
            grid=grid,
            in_specs=[
                pl.BlockSpec((TM, TK), lambda i, j, k: (i, k)),
                pl.BlockSpec((TK, TN), lambda i, j, k: (k, j)),
                pl.BlockSpec((1, TN), lambda i, j, k: (0, j)),
            ],
            out_specs=pl.BlockSpec((TM, TN), lambda i, j, k: (i, j)),
            scratch_shapes=[pltpu.VMEM((TM, TN), jnp.float32)],
        ),
        compiler_params=pltpu.CompilerParams(
            dimension_semantics=("parallel", "parallel", "arbitrary"),
            vmem_limit_bytes=VMEM_LIMIT),
    )(a_p, w, p["b_p"])
    return out[:M, :p["cout"]]


# ---------------------------------------------------------------------------
# Fused 3x3 stride-1 conv ("same", padding == dilation == d), grid=(B,).
# Over-compute layout: the halo-padded image lives flattened in VMEM scratch,
# so each of the 9 statically-unrolled taps is ONE contiguous
# (H*Wp, Cin) x (Cin, Coutp) MXU matmul.  Bias + activation fused; Cout padded
# to a multiple of 128 for lane-dense stores; interior extracted outside.
# ---------------------------------------------------------------------------
def _conv3x3_kernel(x_ref, w_ref, b_ref, o_ref, xpad_ref, acc_ref, *,
                    H, W, Wp, ROW0, COL0, d, act):
    M = H * Wp
    xpad_ref[...] = jnp.zeros_like(xpad_ref)
    for oh in range(H):                      # static unroll (H <= 16 here)
        xpad_ref[pl.ds((ROW0 + oh) * Wp + COL0, W), :] = \
            x_ref[0, pl.ds(oh * W, W), :]
    acc_ref[...] = jnp.zeros_like(acc_ref)
    for ky in range(3):
        for kx in range(3):
            start = (ROW0 + (ky - 1) * d) * Wp + (kx - 1) * d
            acc_ref[...] += jnp.dot(xpad_ref[pl.ds(start, M), :],
                                    w_ref[ky * 3 + kx],
                                    preferred_element_type=jnp.float32)
    r = acc_ref[...] + b_ref[...]
    if act == "relu":
        r = jnp.maximum(r, 0.0)
    elif act == "sigmoid":
        r = pl.reciprocal(1.0 + jnp.exp(-r), approx=True)
    o_ref[0] = r.astype(o_ref.dtype)


def conv3x3_same(p, x, d, act):
    B, H, W, Cin = x.shape
    Coutp = p["coutp"]
    Wp = W + 2 * d
    ROW0 = d + 1
    nrows = H + 2 * d + 2                      # one slack row top & bottom
    M = H * Wp
    x2d = x.reshape(B, H * W, Cin).astype(jnp.bfloat16)
    kern = functools.partial(_conv3x3_kernel, H=H, W=W, Wp=Wp, ROW0=ROW0,
                             COL0=d, d=d, act=act)
    out = pl.pallas_call(
        kern,
        out_shape=jax.ShapeDtypeStruct((B, M, Coutp), jnp.bfloat16),
        grid_spec=pltpu.PrefetchScalarGridSpec(
            num_scalar_prefetch=0,
            grid=(B,),
            in_specs=[
                pl.BlockSpec((1, H * W, Cin), lambda b: (b, 0, 0)),
                pl.BlockSpec((9, Cin, Coutp), lambda b: (0, 0, 0)),
                pl.BlockSpec((1, Coutp), lambda b: (0, 0)),
            ],
            out_specs=pl.BlockSpec((1, M, Coutp), lambda b: (b, 0, 0)),
            scratch_shapes=[pltpu.VMEM((nrows * Wp, Cin), jnp.bfloat16),
                            pltpu.VMEM((M, Coutp), jnp.float32)],
        ),
        compiler_params=pltpu.CompilerParams(
            dimension_semantics=("parallel",),
            vmem_limit_bytes=VMEM_LIMIT),
    )(x2d, p["w_taps_p"], p["b_p"])
    out = out.reshape(B, H, Wp, Coutp)[:, :, d:d + W, :p["cout"]]
    return out


# ---------------------------------------------------------------------------
# Fully fused dense block (pre_block / pos_block) + optional SE gate, grid=(B,).
#   gated x and the 5 intermediate 32-ch outputs stay in zero-padded flat VMEM
#   scratch; the channel concat is expressed as per-segment matmul
#   accumulation; 1x1 fuse + residual in the epilogue.
# ---------------------------------------------------------------------------
def _dense_block_kernel(x_ref, gate_ref, mask_ref, wseg_ref, wfuse_ref,
                        bconv_ref, bfuse_ref, o_ref,
                        xpad_ref, ypad_ref, acc_ref, *,
                        H, W, Wp, ROW0, COL0, d_list):
    M = H * Wp
    gate = gate_ref[0]                               # (1, 128) f32
    mask = mask_ref[...]                             # (M, 1)   f32 column mask

    xpad_ref[...] = jnp.zeros_like(xpad_ref)
    ypad_ref[...] = jnp.zeros_like(ypad_ref)
    # gated interior rows (SE gating fused here: no separate HBM pass)
    for oh in range(H):
        row = x_ref[0, pl.ds(oh * W, W), :].astype(jnp.float32)   # (W, 128)
        xpad_ref[pl.ds((ROW0 + oh) * Wp + COL0, W), :] = \
            (row * gate).astype(jnp.bfloat16)

    seg = 0
    for j, d in enumerate(d_list):
        acc_ref[...] = jnp.zeros_like(acc_ref)
        for ky in range(3):
            for kx in range(3):
                t = ky * 3 + kx
                start = (ROW0 + (ky - 1) * d) * Wp + (kx - 1) * d
                acc_ref[...] += jnp.dot(
                    xpad_ref[pl.ds(start, M), :], wseg_ref[seg, t],
                    preferred_element_type=jnp.float32)
                for p in range(j):
                    acc_ref[...] += jnp.dot(
                        ypad_ref[p, pl.ds(start, M), :],
                        wseg_ref[seg + 1 + p, t],
                        preferred_element_type=jnp.float32)
        seg += 1 + j
        # relu + mask the width halo to zero so later taps see valid padding
        y = jnp.maximum(acc_ref[...] + bconv_ref[j], 0.0) * mask
        ypad_ref[j, pl.ds(ROW0 * Wp, M), :] = y.astype(jnp.bfloat16)

    # 1x1 fuse over the implicit concat [x | y0..y4]  + residual (gated x)
    xin = xpad_ref[pl.ds(ROW0 * Wp, M), :]
    acc_ref[...] = jnp.dot(xin, wfuse_ref[0], preferred_element_type=jnp.float32)
    for p in range(len(d_list)):
        acc_ref[...] += jnp.dot(ypad_ref[p, pl.ds(ROW0 * Wp, M), :],
                                wfuse_ref[1 + p],
                                preferred_element_type=jnp.float32)
    r = acc_ref[...] + bfuse_ref[...] + xin.astype(jnp.float32)
    o_ref[0] = r.astype(o_ref.dtype)


def dense_block(params, name, x, gate=None):
    p = params[name]
    d_list = p["d_list"]
    B, H, W, C = x.shape                      # C == 128
    Dmax = max(d_list)
    Wp = W + 2 * Dmax
    ROW0 = Dmax + 1
    nrows = H + 2 * Dmax + 2
    M = H * Wp
    if gate is None:
        gate = jnp.ones((B, C), jnp.float32)
    gate = gate.reshape(B, 1, C).astype(jnp.float32)
    cols = jnp.arange(M, dtype=jnp.int32) % Wp
    mask = ((cols >= Dmax) & (cols < Dmax + W)).astype(jnp.float32).reshape(M, 1)
    x2d = x.reshape(B, H * W, C).astype(jnp.bfloat16)

    kern = functools.partial(_dense_block_kernel, H=H, W=W, Wp=Wp,
                             ROW0=ROW0, COL0=Dmax, d_list=d_list)
    out = pl.pallas_call(
        kern,
        out_shape=jax.ShapeDtypeStruct((B, M, C), jnp.bfloat16),
        grid_spec=pltpu.PrefetchScalarGridSpec(
            num_scalar_prefetch=0,
            grid=(B,),
            in_specs=[
                pl.BlockSpec((1, H * W, C), lambda b: (b, 0, 0)),
                pl.BlockSpec((1, 1, C), lambda b: (b, 0, 0)),
                pl.BlockSpec((M, 1), lambda b: (0, 0)),
                pl.BlockSpec((15, 9, C, C), lambda b: (0, 0, 0, 0)),
                pl.BlockSpec((6, C, C), lambda b: (0, 0, 0)),
                pl.BlockSpec((5, 1, C), lambda b: (0, 0, 0)),
                pl.BlockSpec((1, C), lambda b: (0, 0)),
            ],
            out_specs=pl.BlockSpec((1, M, C), lambda b: (b, 0, 0)),
            scratch_shapes=[pltpu.VMEM((nrows * Wp, C), jnp.bfloat16),
                            pltpu.VMEM((5, nrows * Wp, C), jnp.bfloat16),
                            pltpu.VMEM((M, C), jnp.float32)],
        ),
        compiler_params=pltpu.CompilerParams(
            dimension_semantics=("parallel",),
            vmem_limit_bytes=VMEM_LIMIT),
    )(x2d, gate, mask, p["wsegs"], p["wfuse"], p["bconv"], p["bfuse"])
    return out.reshape(B, H, Wp, C)[:, :, Dmax:Dmax + W, :]


# ---------------------------------------------------------------------------
# SE / global block: pool (JAX) -> fc1 + relu -> fc2 + sigmoid -> gate.
# The gating multiply is fused into the consumer dense block.
# ---------------------------------------------------------------------------
def _se_kernel(p_ref, w1_ref, b1_ref, w2_ref, b2_ref, o_ref):
    h = jnp.dot(p_ref[...], w1_ref[...], preferred_element_type=jnp.float32)
    h = jnp.maximum(h + b1_ref[...], 0.0).astype(jnp.bfloat16)
    s = jnp.dot(h, w2_ref[...], preferred_element_type=jnp.float32) + b2_ref[...]
    o_ref[...] = pl.reciprocal(1.0 + jnp.exp(-s), approx=True)


def se_gate(params, name, x):
    # TODO(synk): original global_block pools to a fixed `size`; SE gating here.
    B, _, _, C = x.shape
    p = params[name]
    pooled = jnp.mean(x.astype(jnp.float32), axis=(1, 2))            # (B, C)
    Bp = _rup(B, 8)
    pooled_p = jnp.pad(pooled, ((0, Bp - B), (0, 0))).astype(jnp.bfloat16)
    s = pl.pallas_call(
        _se_kernel,
        out_shape=jax.ShapeDtypeStruct((Bp, C), jnp.float32),
        grid_spec=pltpu.PrefetchScalarGridSpec(
            num_scalar_prefetch=0,
            grid=(1,),
            in_specs=[
                pl.BlockSpec((Bp, C), lambda i: (0, 0)),
                pl.BlockSpec((C, C), lambda i: (0, 0)),
                pl.BlockSpec((1, C), lambda i: (0, 0)),
                pl.BlockSpec((C, C), lambda i: (0, 0)),
                pl.BlockSpec((1, C), lambda i: (0, 0)),
            ],
            out_specs=pl.BlockSpec((Bp, C), lambda i: (0, 0)),
        ),
        compiler_params=pltpu.CompilerParams(
            dimension_semantics=("arbitrary",)),
    )(pooled_p, p["w1"], p["b1"], p["w2"], p["b2"])
    return s[:B]                                                     # (B, C)


# ---------------------------------------------------------------------------
# Stride-2 3x3 conv via im2col + tiled matmul (only conv_func2 / conv_func3).
# ---------------------------------------------------------------------------
def conv3x3_stride2(p, x, padding, act):
    B, H, W, Cin = x.shape
    if padding > 0:
        x = jnp.pad(x, ((0, 0), (padding,) * 2, (padding,) * 2, (0, 0)))
    x = x.astype(jnp.bfloat16)
    Hp_, Wp_ = x.shape[1], x.shape[2]
    Ho = (Hp_ - 3) // 2 + 1
    Wo = (Wp_ - 3) // 2 + 1
    patches = []
    for ky in range(3):
        for kx in range(3):
            patches.append(x[:, ky: ky + (Ho - 1) * 2 + 1: 2,
                             kx: kx + (Wo - 1) * 2 + 1: 2, :])
    a = jnp.concatenate(patches, axis=-1).reshape(B * Ho * Wo, 9 * Cin)
    out = _matmul_bias_act(a, p, act)
    return out.reshape(B, Ho, Wo, p["cout"])


# ---------------------------------------------------------------------------
# 1x1 conv on a channel concat with the per-group alpha folded into the
# weight rows (removes the activation-scaling HBM pass).
# ---------------------------------------------------------------------------
def conv1x1_cat(params, name, x, scaled_range):
    p = params[name]
    alpha = params[name + "_alpha"]
    lo, hi = scaled_range
    row_scale = jnp.ones((p["Kp"], 1), jnp.float32).at[lo:hi, :].set(alpha)
    w_eff = (p["w_mat_p"].astype(jnp.float32) * row_scale).astype(jnp.bfloat16)
    B, H, W, Cin = x.shape
    a = x.reshape(B * H * W, Cin)
    out = _matmul_bias_act(a, p, "relu", w_mat=w_eff)
    return out.reshape(B, H, W, p["cout"])


# ---------------------------------------------------------------------------
# Pixel (un)shuffle, matching torch.nn.PixelShuffle / PixelUnshuffle.
# ---------------------------------------------------------------------------
def pixel_unshuffle(x, r):
    B, H, W, C = x.shape
    x = x.reshape(B, H // r, r, W // r, r, C)
    x = jnp.transpose(x, (0, 1, 3, 5, 2, 4))
    return x.reshape(B, H // r, W // r, C * r * r)


def pixel_shuffle(x, r):
    B, H, W, C = x.shape
    c = C // (r * r)
    x = x.reshape(B, H, W, c, r, r)
    x = jnp.transpose(x, (0, 1, 4, 2, 5, 3))
    return x.reshape(B, H * r, W * r, c)


# ---------------------------------------------------------------------------
# Parameter init (deterministic).  All kernel-ready layouts (tap-major padded
# bf16 weights, per-segment dense-block weight stacks, padded matmul weights,
# (1, Cout) biases) are built ONCE here.
# ---------------------------------------------------------------------------
def _make_conv(key, k, cin, cout):
    scale = 1.0 / math.sqrt(k * k * cin)
    w = jax.random.normal(key, (k, k, cin, cout), jnp.float32) * scale
    b = jnp.zeros((cout,), jnp.float32)
    kraw = k * k * cin
    coutp = _rup(cout, 128)
    Kp = _rup(kraw, 256) if kraw > 128 else 128
    Np = coutp
    return {
        "kh": k, "kw": k, "cin": cin, "cout": cout, "coutp": coutp,
        "kraw": kraw, "Kp": Kp, "Np": Np,
        "w_taps_p": jnp.pad(w.reshape(k * k, cin, cout),
                            ((0, 0), (0, 0), (0, coutp - cout))
                            ).astype(jnp.bfloat16),
        "w_mat_p": jnp.pad(w.reshape(kraw, cout),
                           ((0, Kp - kraw), (0, Np - cout))).astype(jnp.bfloat16),
        "b_p": jnp.pad(b, (0, Np - cout)).reshape(1, Np),
    }


def _make_dense_block(key, d_list, cin=128, growth=GROWTH):
    keys = jax.random.split(key, len(d_list) + 1)
    convs = []
    c = cin
    for j in range(len(d_list)):
        scale = 1.0 / math.sqrt(9 * c)
        w = jax.random.normal(keys[j], (3, 3, c, growth), jnp.float32) * scale
        b = jnp.zeros((growth,), jnp.float32)
        convs.append((w, b))
        c += growth
    scale = 1.0 / math.sqrt(c)
    wf = jax.random.normal(keys[-1], (c, cin), jnp.float32) * scale
    bf_ = jnp.zeros((cin,), jnp.float32)

    # per-segment, tap-major weights; every segment padded to (9, 128, 128)
    seg_mats, bconv = [], []
    for j, (w, b) in enumerate(convs):
        w9 = w.reshape(9, cin + growth * j, growth)
        seg_mats.append(jnp.pad(w9[:, :cin, :],
                                ((0, 0), (0, 0), (0, cin - growth))))
        for p in range(j):
            wy = w9[:, cin + growth * p: cin + growth * (p + 1), :]
            seg_mats.append(jnp.pad(wy, ((0, 0), (0, cin - growth),
                                         (0, cin - growth))))
        bconv.append(jnp.pad(b, (0, cin - growth)))
    wsegs = jnp.stack(seg_mats, 0).astype(jnp.bfloat16)       # (15, 9, 128, 128)
    bconv = jnp.stack(bconv, 0).reshape(len(d_list), 1, cin)  # f32

    fuse_mats = [wf[:cin, :]]
    for p in range(len(d_list)):
        fuse_mats.append(jnp.pad(wf[cin + growth * p: cin + growth * (p + 1), :],
                                 ((0, cin - growth), (0, 0))))
    wfuse = jnp.stack(fuse_mats, 0).astype(jnp.bfloat16)      # (6, 128, 128)
    return {"d_list": tuple(d_list), "wsegs": wsegs, "wfuse": wfuse,
            "bconv": bconv, "bfuse": bf_.reshape(1, cin)}


def _make_se(key, c):
    k1, k2 = jax.random.split(key)
    scale = 1.0 / math.sqrt(c)
    return {
        "w1": (jax.random.normal(k1, (c, c), jnp.float32) * scale).astype(jnp.bfloat16),
        "b1": jnp.zeros((1, c), jnp.float32),
        "w2": (jax.random.normal(k2, (c, c), jnp.float32) * scale).astype(jnp.bfloat16),
        "b2": jnp.zeros((1, c), jnp.float32),
    }


def init_params(key, nFilters=64, growth=GROWTH):
    C = nFilters * 2  # 128
    params = {}
    keys = iter(jax.random.split(key, 64))

    def conv_p(name, k, cin, cout):
        params[name] = _make_conv(next(keys), k, cin, cout)

    conv_p("conv_func1", 3, 12, C)
    conv_p("conv_func2", 3, C, C)
    conv_p("conv_func3", 3, C, C)
    conv_p("conv_func4", 1, 3 + C, C)
    conv_p("conv_func5", 1, 3 + C, C)
    params["conv_func4_alpha"] = jnp.float32(1.0)
    params["conv_func5_alpha"] = jnp.float32(1.0)
    conv_p("conv1", 3, C, 12)
    conv_p("conv2", 3, C, 12)
    conv_p("conv3", 3, C, 12)

    dense_cfg = {
        "pre_block1": (1, 2, 3, 2, 1),
        "pre_block2": (1, 2, 3, 2, 1),
        "pre_block3": (1, 2, 2, 2, 1),
        "pos_block1": (1, 2, 2, 2, 1),
        "pre_block4": (1, 2, 3, 2, 1),
        "pos_block2": (1, 2, 3, 2, 1),
        "pre_block5": (1, 2, 3, 2, 1),
        "pos_block3": (1, 2, 3, 2, 1),
    }
    for name, dl in dense_cfg.items():
        params[name] = _make_dense_block(next(keys), dl, C, growth)

    for i in range(1, 6):
        params[f"global_block{i}"] = _make_se(next(keys), C)
    return params


# ---------------------------------------------------------------------------
# MBCNN forward (inputs/outputs in NCHW f32 like the PyTorch reference).
# ---------------------------------------------------------------------------
def mbcnn_forward(params, x_nchw):
    C = 128
    x = jnp.transpose(x_nchw, (0, 2, 3, 1)).astype(jnp.bfloat16)   # -> NHWC bf16

    _x = pixel_unshuffle(x, 2)                                     # (B,H/2,W/2,12)
    t1 = conv3x3_same(params["conv_func1"], _x, d=1, act="relu")
    t1 = dense_block(params, "pre_block1", t1)

    # F.pad(t1,(1,1,1,1)) + stride-2 conv with pad=0  ==  stride-2 conv, pad=1
    t2 = conv3x3_stride2(params["conv_func2"], t1, padding=1, act="relu")
    t2 = dense_block(params, "pre_block2", t2)

    t3 = conv3x3_stride2(params["conv_func3"], t2, padding=1, act="relu")
    t3 = dense_block(params, "pre_block3", t3)
    g1 = se_gate(params, "global_block1", t3)
    t3 = dense_block(params, "pos_block1", t3, gate=g1)

    # sigmoid is elementwise so it commutes with PixelShuffle -> fused in conv.
    t3_out = conv3x3_same(params["conv1"], t3, d=1, act="sigmoid")
    t3_out = pixel_shuffle(t3_out, 2)

    _t2 = jnp.concatenate([t3_out, t2], axis=-1)                   # [3 | 128]
    _t2 = conv1x1_cat(params, "conv_func4", _t2, scaled_range=(3, 3 + C))
    g2 = se_gate(params, "global_block2", _t2)
    _t2 = dense_block(params, "pre_block4", _t2, gate=g2)
    g3 = se_gate(params, "global_block3", _t2)
    _t2 = dense_block(params, "pos_block2", _t2, gate=g3)
    t2_out = conv3x3_same(params["conv2"], _t2, d=1, act="sigmoid")
    t2_out = pixel_shuffle(t2_out, 2)

    _t1 = jnp.concatenate([t1, t2_out], axis=-1)                   # [128 | 3]
    # the 128-channel feature part (t1) is the scaled group here.
    _t1 = conv1x1_cat(params, "conv_func5", _t1, scaled_range=(0, C))
    g4 = se_gate(params, "global_block4", _t1)
    _t1 = dense_block(params, "pre_block5", _t1, gate=g4)
    g5 = se_gate(params, "global_block5", _t1)
    _t1 = dense_block(params, "pos_block3", _t1, gate=g5)
    y = conv3x3_same(params["conv3"], _t1, d=1, act="sigmoid")
    y = pixel_shuffle(y, 2)

    to_nchw = lambda a: jnp.transpose(a.astype(jnp.float32), (0, 3, 1, 2))
    return [to_nchw(t3_out), to_nchw(t2_out), to_nchw(y)]


# ---------------------------------------------------------------------------
if __name__ == "__main__":
    key = jax.random.PRNGKey(0)
    pkey, xkey = jax.random.split(key)
    params = init_params(pkey, nFilters=64)

    # small input consistent with the module: NCHW, 3 channels, H=W divisible by 8
    x = jax.random.uniform(xkey, (2, 3, 32, 32), jnp.float32)

    outs = mbcnn_forward(params, x)
    for o in outs:
        jax.block_until_ready(o)

    assert outs[0].shape == (2, 3, 8, 8)
    assert outs[1].shape == (2, 3, 16, 16)
    assert outs[2].shape == (2, 3, 32, 32)
    print("KERNEL_OK")
</pallas_src>

<mosaic_0001>
module attributes {stable_mosaic.version = 11 : i64} {
  func.func @_conv3x3_kernel(%arg0: i32, %arg1: memref<1x256x12xbf16, #tpu.memory_space<vmem>>, %arg2: memref<9x12x128xbf16, #tpu.memory_space<vmem>>, %arg3: memref<1x128xf32, #tpu.memory_space<vmem>>, %arg4: memref<1x288x128xbf16, #tpu.memory_space<vmem>>, %arg5: memref<360x12xbf16, #tpu.memory_space<vmem>>, %arg6: memref<288x128xf32, #tpu.memory_space<vmem>>) attributes {dimension_semantics = [#tpu.dimension_semantics<parallel>], iteration_bounds = array<i64: 2>, scalar_prefetch = 0 : i64, scratch_operands = 2 : i64, tpu.core_type = #tpu.core_type<tc>, window_params = [{transform_indices = @transform_0, window_bounds = array<i64: 1, 256, 12>}, {pipeline_mode = #tpu.pipeline_mode<synchronous>, transform_indices = @transform_1, window_bounds = array<i64: 9, 12, 128>}, {pipeline_mode = #tpu.pipeline_mode<synchronous>, transform_indices = @transform_2, window_bounds = array<i64: 1, 128>}, {transform_indices = @transform_3, window_bounds = array<i64: 1, 288, 128>}]} {
    %cst = arith.constant 0.000000e+00 : bf16
    %0 = vector.broadcast %cst : bf16 to vector<360x12xbf16>
    %c0 = arith.constant 0 : index
    %c0_0 = arith.constant 0 : index
    %1 = vector.load %arg5[%c0, %c0_0] : memref<360x12xbf16, #tpu.memory_space<vmem>>, vector<360x12xbf16>
    tpu.vector_store %arg5[%c0, %c0_0], %0 {strides = array<i32>} : memref<360x12xbf16, #tpu.memory_space<vmem>>, vector<360x12xbf16>,
    %c0_1 = arith.constant 0 : index
    %c0_2 = arith.constant 0 : index
    %c0_3 = arith.constant 0 : index
    %2 = vector.load %arg1[%c0_1, %c0_2, %c0_3] : memref<1x256x12xbf16, #tpu.memory_space<vmem>>, vector<1x16x12xbf16>
    %3 = vector.shape_cast %2 : vector<1x16x12xbf16> to vector<16x12xbf16>
    %c37 = arith.constant 37 : index
    %c0_4 = arith.constant 0 : index
    %4 = vector.load %arg5[%c37, %c0_4] : memref<360x12xbf16, #tpu.memory_space<vmem>>, vector<16x12xbf16>
    tpu.vector_store %arg5[%c37, %c0_4], %3 {strides = array<i32>} : memref<360x12xbf16, #tpu.memory_space<vmem>>, vector<16x12xbf16>,
    %c0_5 = arith.constant 0 : index
    %c16 = arith.constant 16 : index
    %c0_6 = arith.constant 0 : index
    %5 = vector.load %arg1[%c0_5, %c16, %c0_6] : memref<1x256x12xbf16, #tpu.memory_space<vmem>>, vector<1x16x12xbf16>
    %6 = vector.shape_cast %5 : vector<1x16x12xbf16> to vector<16x12xbf16>
    %c55 = arith.constant 55 : index
    %c0_7 = arith.constant 0 : index
    %7 = vector.load %arg5[%c55, %c0_7] : memref<360x12xbf16, #tpu.memory_space<vmem>>, vector<16x12xbf16>
    tpu.vector_store %arg5[%c55, %c0_7], %6 {strides = array<i32>} : memref<360x12xbf16, #tpu.memory_space<vmem>>, vector<16x12xbf16>,
    %c0_8 = arith.constant 0 : index
    %c32 = arith.constant 32 : index
    %c0_9 = arith.constant 0 : index
    %8 = vector.load %arg1[%c0_8, %c32, %c0_9] : memref<1x256x12xbf16, #tpu.memory_space<vmem>>, vector<1x16x12xbf16>
    %9 = vector.shape_cast %8 : vector<1x16x12xbf16> to vector<16x12xbf16>
    %c73 = arith.constant 73 : index
    %c0_10 = arith.constant 0 : index
    %10 = vector.load %arg5[%c73, %c0_10] : memref<360x12xbf16, #tpu.memory_space<vmem>>, vector<16x12xbf16>
    tpu.vector_store %arg5[%c73, %c0_10], %9 {strides = array<i32>} : memref<360x12xbf16, #tpu.memory_space<vmem>>, vector<16x12xbf16>,
    %c0_11 = arith.constant 0 : index
    %c48 = arith.constant 48 : index
    %c0_12 = arith.constant 0 : index
    %11 = vector.load %arg1[%c0_11, %c48, %c0_12] : memref<1x256x12xbf16, #tpu.memory_space<vmem>>, vector<1x16x12xbf16>
    %12 = vector.shape_cast %11 : vector<1x16x12xbf16> to vector<16x12xbf16>
    %c91 = arith.constant 91 : index
    %c0_13 = arith.constant 0 : index
    %13 = vector.load %arg5[%c91, %c0_13] : memref<360x12xbf16, #tpu.memory_space<vmem>>, vector<16x12xbf16>
    tpu.vector_store %arg5[%c91, %c0_13], %12 {strides = array<i32>} : memref<360x12xbf16, #tpu.memory_space<vmem>>, vector<16x12xbf16>,
    %c0_14 = arith.constant 0 : index
    %c64 = arith.constant 64 : index
    %c0_15 = arith.constant 0 : index
    %14 = vector.load %arg1[%c0_14, %c64, %c0_15] : memref<1x256x12xbf16, #tpu.memory_space<vmem>>, vector<1x16x12xbf16>
    %15 = vector.shape_cast %14 : vector<1x16x12xbf16> to vector<16x12xbf16>
    %c109 = arith.constant 109 : index
    %c0_16 = arith.constant 0 : index
    %16 = vector.load %arg5[%c109, %c0_16] : memref<360x12xbf16, #tpu.memory_space<vmem>>, vector<16x12xbf16>
    tpu.vector_store %arg5[%c109, %c0_16], %15 {strides = array<i32>} : memref<360x12xbf16, #tpu.memory_space<vmem>>, vector<16x12xbf16>,
    %c0_17 = arith.constant 0 : index
    %c80 = arith.constant 80 : index
    %c0_18 = arith.constant 0 : index
    %17 = vector.load %arg1[%c0_17, %c80, %c0_18] : memref<1x256x12xbf16, #tpu.memory_space<vmem>>, vector<1x16x12xbf16>
    %18 = vector.shape_cast %17 : vector<1x16x12xbf16> to vector<16x12xbf16>
    %c127 = arith.constant 127 : index
    %c0_19 = arith.constant 0 : index
    %19 = vector.load %arg5[%c127, %c0_19] : memref<360x12xbf16, #tpu.memory_space<vmem>>, vector<16x12xbf16>
    tpu.vector_store %arg5[%c127, %c0_19], %18 {strides = array<i32>} : memref<360x12xbf16, #tpu.memory_space<vmem>>, vector<16x12xbf16>,
    %c0_20 = arith.constant 0 : index
    %c96 = arith.constant 96 : index
    %c0_21 = arith.constant 0 : index
    %20 = vector.load %arg1[%c0_20, %c96, %c0_21] : memref<1x256x12xbf16, #tpu.memory_space<vmem>>, vector<1x16x12xbf16>
    %21 = vector.shape_cast %20 : vector<1x16x12xbf16> to vector<16x12xbf16>
    %c145 = arith.constant 145 : index
    %c0_22 = arith.constant 0 : index
    %22 = vector.load %arg5[%c145, %c0_22] : memref<360x12xbf16, #tpu.memory_space<vmem>>, vector<16x12xbf16>
    tpu.vector_store %arg5[%c145, %c0_22], %21 {strides = array<i32>} : memref<360x12xbf16, #tpu.memory_space<vmem>>, vector<16x12xbf16>,
    %c0_23 = arith.constant 0 : index
    %c112 = arith.constant 112 : index
    %c0_24 = arith.constant 0 : index
    %23 = vector.load %arg1[%c0_23, %c112, %c0_24] : memref<1x256x12xbf16, #tpu.memory_space<vmem>>, vector<1x16x12xbf16>
    %24 = vector.shape_cast %23 : vector<1x16x12xbf16> to vector<16x12xbf16>
    %c163 = arith.constant 163 : index
    %c0_25 = arith.constant 0 : index
    %25 = vector.load %arg5[%c163, %c0_25] : memref<360x12xbf16, #tpu.memory_space<vmem>>, vector<16x12xbf16>
    tpu.vector_store %arg5[%c163, %c0_25], %24 {strides = array<i32>} : memref<360x12xbf16, #tpu.memory_space<vmem>>, vector<16x12xbf16>,
    %c0_26 = arith.constant 0 : index
    %c128 = arith.constant 128 : index
    %c0_27 = arith.constant 0 : index
    %26 = vector.load %arg1[%c0_26, %c128, %c0_27] : memref<1x256x12xbf16, #tpu.memory_space<vmem>>, vector<1x16x12xbf16>
    %27 = vector.shape_cast %26 : vector<1x16x12xbf16> to vector<16x12xbf16>
    %c181 = arith.constant 181 : index
    %c0_28 = arith.constant 0 : index
    %28 = vector.load %arg5[%c181, %c0_28] : memref<360x12xbf16, #tpu.memory_space<vmem>>, vector<16x12xbf16>
    tpu.vector_store %arg5[%c181, %c0_28], %27 {strides = array<i32>} : memref<360x12xbf16, #tpu.memory_space<vmem>>, vector<16x12xbf16>,
    %c0_29 = arith.constant 0 : index
    %c144 = arith.constant 144 : index
    %c0_30 = arith.constant 0 : index
    %29 = vector.load %arg1[%c0_29, %c144, %c0_30] : memref<1x256x12xbf16, #tpu.memory_space<vmem>>, vector<1x16x12xbf16>
    %30 = vector.shape_cast %29 : vector<1x16x12xbf16> to vector<16x12xbf16>
    %c199 = arith.constant 199 : index
    %c0_31 = arith.constant 0 : index
    %31 = vector.load %arg5[%c199, %c0_31] : memref<360x12xbf16, #tpu.memory_space<vmem>>, vector<16x12xbf16>
    tpu.vector_store %arg5[%c199, %c0_31], %30 {strides = array<i32>} : memref<360x12xbf16, #tpu.memory_space<vmem>>, vector<16x12xbf16>,
    %c0_32 = arith.constant 0 : index
    %c160 = arith.constant 160 : index
    %c0_33 = arith.constant 0 : index
    %32 = vector.load %arg1[%c0_32, %c160, %c0_33] : memref<1x256x12xbf16, #tpu.memory_space<vmem>>, vector<1x16x12xbf16>
    %33 = vector.shape_cast %32 : vector<1x16x12xbf16> to vector<16x12xbf16>
    %c217 = arith.constant 217 : index
    %c0_34 = arith.constant 0 : index
    %34 = vector.load %arg5[%c217, %c0_34] : memref<360x12xbf16, #tpu.memory_space<vmem>>, vector<16x12xbf16>
    tpu.vector_store %arg5[%c217, %c0_34], %33 {strides = array<i32>} : memref<360x12xbf16, #tpu.memory_space<vmem>>, vector<16x12xbf16>,
    %c0_35 = arith.constant 0 : index
    %c176 = arith.constant 176 : index
    %c0_36 = arith.constant 0 : index
    %35 = vector.load %arg1[%c0_35, %c176, %c0_36] : memref<1x256x12xbf16, #tpu.memory_space<vmem>>, vector<1x16x12xbf16>
    %36 = vector.shape_cast %35 : vector<1x16x12xbf16> to vector<16x12xbf16>
    %c235 = arith.constant 235 : index
    %c0_37 = arith.constant 0 : index
    %37 = vector.load %arg5[%c235, %c0_37] : memref<360x12xbf16, #tpu.memory_space<vmem>>, vector<16x12xbf16>
    tpu.vector_store %arg5[%c235, %c0_37], %36 {strides = array<i32>} : memref<360x12xbf16, #tpu.memory_space<vmem>>, vector<16x12xbf16>,
    %c0_38 = arith.constant 0 : index
    %c192 = arith.constant 192 : index
    %c0_39 = arith.constant 0 : index
    %38 = vector.load %arg1[%c0_38, %c192, %c0_39] : memref<1x256x12xbf16, #tpu.memory_space<vmem>>, vector<1x16x12xbf16>
    %39 = vector.shape_cast %38 : vector<1x16x12xbf16> to vector<16x12xbf16>
    %c253 = arith.constant 253 : index
    %c0_40 = arith.constant 0 : index
    %40 = vector.load %arg5[%c253, %c0_40] : memref<360x12xbf16, #tpu.memory_space<vmem>>, vector<16x12xbf16>
    tpu.vector_store %arg5[%c253, %c0_40], %39 {strides = array<i32>} : memref<360x12xbf16, #tpu.memory_space<vmem>>, vector<16x12xbf16>,
    %c0_41 = arith.constant 0 : index
    %c208 = arith.constant 208 : index
    %c0_42 = arith.constant 0 : index
    %41 = vector.load %arg1[%c0_41, %c208, %c0_42] : memref<1x256x12xbf16, #tpu.memory_space<vmem>>, vector<1x16x12xbf16>
    %42 = vector.shape_cast %41 : vector<1x16x12xbf16> to vector<16x12xbf16>
    %c271 = arith.constant 271 : index
    %c0_43 = arith.constant 0 : index
    %43 = vector.load %arg5[%c271, %c0_43] : memref<360x12xbf16, #tpu.memory_space<vmem>>, vector<16x12xbf16>
    tpu.vector_store %arg5[%c271, %c0_43], %42 {strides = array<i32>} : memref<360x12xbf16, #tpu.memory_space<vmem>>, vector<16x12xbf16>,
    %c0_44 = arith.constant 0 : index
    %c224 = arith.constant 224 : index
    %c0_45 = arith.constant 0 : index
    %44 = vector.load %arg1[%c0_44, %c224, %c0_45] : memref<1x256x12xbf16, #tpu.memory_space<vmem>>, vector<1x16x12xbf16>
    %45 = vector.shape_cast %44 : vector<1x16x12xbf16> to vector<16x12xbf16>
    %c289 = arith.constant 289 : index
    %c0_46 = arith.constant 0 : index
    %46 = vector.load %arg5[%c289, %c0_46] : memref<360x12xbf16, #tpu.memory_space<vmem>>, vector<16x12xbf16>
    tpu.vector_store %arg5[%c289, %c0_46], %45 {strides = array<i32>} : memref<360x12xbf16, #tpu.memory_space<vmem>>, vector<16x12xbf16>,
    %c0_47 = arith.constant 0 : index
    %c240 = arith.constant 240 : index
    %c0_48 = arith.constant 0 : index
    %47 = vector.load %arg1[%c0_47, %c240, %c0_48] : memref<1x256x12xbf16, #tpu.memory_space<vmem>>, vector<1x16x12xbf16>
    %48 = vector.shape_cast %47 : vector<1x16x12xbf16> to vector<16x12xbf16>
    %c307 = arith.constant 307 : index
    %c0_49 = arith.constant 0 : index
    %49 = vector.load %arg5[%c307, %c0_49] : memref<360x12xbf16, #tpu.memory_space<vmem>>, vector<16x12xbf16>
    tpu.vector_store %arg5[%c307, %c0_49], %48 {strides = array<i32>} : memref<360x12xbf16, #tpu.memory_space<vmem>>, vector<16x12xbf16>,
    %cst_50 = arith.constant 0.000000e+00 : f32
    %50 = vector.broadcast %cst_50 : f32 to vector<288x128xf32>
    %c0_51 = arith.constant 0 : index
    %c0_52 = arith.constant 0 : index
    %51 = vector.load %arg6[%c0_51, %c0_52] : memref<288x128xf32, #tpu.memory_space<vmem>>, vector<288x128xf32>
    tpu.vector_store %arg6[%c0_51, %c0_52], %50 {strides = array<i32>} : memref<288x128xf32, #tpu.memory_space<vmem>>, vector<288x128xf32>,
    %c0_53 = arith.constant 0 : index
    %c0_54 = arith.constant 0 : index
    %52 = vector.load %arg6[%c0_53, %c0_54] : memref<288x128xf32, #tpu.memory_space<vmem>>, vector<288x128xf32>
    %c17 = arith.constant 17 : index
    %c0_55 = arith.constant 0 : index
    %53 = vector.load %arg5[%c17, %c0_55] : memref<360x12xbf16, #tpu.memory_space<vmem>>, vector<288x12xbf16>
    %c0_56 = arith.constant 0 : index
    %c0_57 = arith.constant 0 : index
    %c0_58 = arith.constant 0 : index
    %54 = vector.load %arg2[%c0_56, %c0_57, %c0_58] : memref<9x12x128xbf16, #tpu.memory_space<vmem>>, vector<1x12x128xbf16>
    %55 = vector.shape_cast %54 : vector<1x12x128xbf16> to vector<12x128xbf16>
    %cst_59 = arith.constant dense<0.000000e+00> : vector<288x128xf32>
    %56 = tpu.matmul %53, %55, %cst_59 {dimension_numbers = #tpu.dot_dimension_numbers<[1], [0], [0], [1], [0, 0, 1, 1], [], []>} : vector<288x12xbf16>, vector<12x128xbf16>, vector<288x128xf32> -> vector<288x128xf32>
    %57 = arith.addf %52, %56 : vector<288x128xf32>
    %c0_60 = arith.constant 0 : index
    %c0_61 = arith.constant 0 : index
    %58 = vector.load %arg6[%c0_60, %c0_61] : memref<288x128xf32, #tpu.memory_space<vmem>>, vector<288x128xf32>
    tpu.vector_store %arg6[%c0_60, %c0_61], %57 {strides = array<i32>} : memref<288x128xf32, #tpu.memory_space<vmem>>, vector<288x128xf32>,
    %c0_62 = arith.constant 0 : index
    %c0_63 = arith.constant 0 : index
    %59 = vector.load %arg6[%c0_62, %c0_63] : memref<288x128xf32, #tpu.memory_space<vmem>>, vector<288x128xf32>
    %c18 = arith.constant 18 : index
    %c0_64 = arith.constant 0 : index
    %60 = vector.load %arg5[%c18, %c0_64] : memref<360x12xbf16, #tpu.memory_space<vmem>>, vector<288x12xbf16>
    %c1 = arith.constant 1 : index
    %c0_65 = arith.constant 0 : index
    %c0_66 = arith.constant 0 : index
    %61 = vector.load %arg2[%c1, %c0_65, %c0_66] : memref<9x12x128xbf16, #tpu.memory_space<vmem>>, vector<1x12x128xbf16>
    %62 = vector.shape_cast %61 : vector<1x12x128xbf16> to vector<12x128xbf16>
    %cst_67 = arith.constant dense<0.000000e+00> : vector<288x128xf32>
    %63 = tpu.matmul %60, %62, %cst_67 {dimension_numbers = #tpu.dot_dimension_numbers<[1], [0], [0], [1], [0, 0, 1, 1], [], []>} : vector<288x12xbf16>, vector<12x128xbf16>, vector<288x128xf32> -> vector<288x128xf32>
    %64 = arith.addf %59, %63 : vector<288x128xf32>
    %c0_68 = arith.constant 0 : index
    %c0_69 = arith.constant 0 : index
    %65 = vector.load %arg6[%c0_68, %c0_69] : memref<288x128xf32, #tpu.memory_space<vmem>>, vector<288x128xf32>
    tpu.vector_store %arg6[%c0_68, %c0_69], %64 {strides = array<i32>} : memref<288x128xf32, #tpu.memory_space<vmem>>, vector<288x128xf32>,
    %c0_70 = arith.constant 0 : index
    %c0_71 = arith.constant 0 : index
    %66 = vector.load %arg6[%c0_70, %c0_71] : memref<288x128xf32, #tpu.memory_space<vmem>>, vector<288x128xf32>
    %c19 = arith.constant 19 : index
    %c0_72 = arith.constant 0 : index
    %67 = vector.load %arg5[%c19, %c0_72] : memref<360x12xbf16, #tpu.memory_space<vmem>>, vector<288x12xbf16>
    %c2 = arith.constant 2 : index
    %c0_73 = arith.constant 0 : index
    %c0_74 = arith.constant 0 : index
    %68 = vector.load %arg2[%c2, %c0_73, %c0_74] : memref<9x12x128xbf16, #tpu.memory_space<vmem>>, vector<1x12x128xbf16>
    %69 = vector.shape_cast %68 : vector<1x12x128xbf16> to vector<12x128xbf16>
    %cst_75 = arith.constant dense<0.000000e+00> : vector<288x128xf32>
    %70 = tpu.matmul %67, %69, %cst_75 {dimension_numbers = #tpu.dot_dimension_numbers<[1], [0], [0], [1], [0, 0, 1, 1], [], []>} : vector<288x12xbf16>, vector<12x128xbf16>, vector<288x128xf32> -> vector<288x128xf32>
    %71 = arith.addf %66, %70 : vector<288x128xf32>
    %c0_76 = arith.constant 0 : index
    %c0_77 = arith.constant 0 : index
    %72 = vector.load %arg6[%c0_76, %c0_77] : memref<288x128xf32, #tpu.memory_space<vmem>>, vector<288x128xf32>
    tpu.vector_store %arg6[%c0_76, %c0_77], %71 {strides = array<i32>} : memref<288x128xf32, #tpu.memory_space<vmem>>, vector<288x128xf32>,
    %c0_78 = arith.constant 0 : index
    %c0_79 = arith.constant 0 : index
    %73 = vector.load %arg6[%c0_78, %c0_79] : memref<288x128xf32, #tpu.memory_space<vmem>>, vector<288x128xf32>
    %c35 = arith.constant 35 : index
    %c0_80 = arith.constant 0 : index
    %74 = vector.load %arg5[%c35, %c0_80] : memref<360x12xbf16, #tpu.memory_space<vmem>>, vector<288x12xbf16>
    %c3 = arith.constant 3 : index
    %c0_81 = arith.constant 0 : index
    %c0_82 = arith.constant 0 : index
    %75 = vector.load %arg2[%c3, %c0_81, %c0_82] : memref<9x12x128xbf16, #tpu.memory_space<vmem>>, vector<1x12x128xbf16>
    %76 = vector.shape_cast %75 : vector<1x12x128xbf16> to vector<12x128xbf16>
    %cst_83 = arith.constant dense<0.000000e+00> : vector<288x128xf32>
    %77 = tpu.matmul %74, %76, %cst_83 {dimension_numbers = #tpu.dot_dimension_numbers<[1], [0], [0], [1], [0, 0, 1, 1], [], []>} : vector<288x12xbf16>, vector<12x128xbf16>, vector<288x128xf32> -> vector<288x128xf32>
    %78 = arith.addf %73, %77 : vector<288x128xf32>
    %c0_84 = arith.constant 0 : index
    %c0_85 = arith.constant 0 : index
    %79 = vector.load %arg6[%c0_84, %c0_85] : memref<288x128xf32, #tpu.memory_space<vmem>>, vector<288x128xf32>
    tpu.vector_store %arg6[%c0_84, %c0_85], %78 {strides = array<i32>} : memref<288x128xf32, #tpu.memory_space<vmem>>, vector<288x128xf32>,
    %c0_86 = arith.constant 0 : index
    %c0_87 = arith.constant 0 : index
    %80 = vector.load %arg6[%c0_86, %c0_87] : memref<288x128xf32, #tpu.memory_space<vmem>>, vector<288x128xf32>
    %c36 = arith.constant 36 : index
    %c0_88 = arith.constant 0 : index
    %81 = vector.load %arg5[%c36, %c0_88] : memref<360x12xbf16, #tpu.memory_space<vmem>>, vector<288x12xbf16>
    %c4 = arith.constant 4 : index
    %c0_89 = arith.constant 0 : index
    %c0_90 = arith.constant 0 : index
    %82 = vector.load %arg2[%c4, %c0_89, %c0_90] : memref<9x12x128xbf16, #tpu.memory_space<vmem>>, vector<1x12x128xbf16>
    %83 = vector.shape_cast %82 : vector<1x12x128xbf16> to vector<12x128xbf16>
    %cst_91 = arith.constant dense<0.000000e+00> : vector<288x128xf32>
    %84 = tpu.matmul %81, %83, %cst_91 {dimension_numbers = #tpu.dot_dimension_numbers<[1], [0], [0], [1], [0, 0, 1, 1], [], []>} : vector<288x12xbf16>, vector<12x128xbf16>, vector<288x128xf32> -> vector<288x128xf32>
    %85 = arith.addf %80, %84 : vector<288x128xf32>
    %c0_92 = arith.constant 0 : index
    %c0_93 = arith.constant 0 : index
    %86 = vector.load %arg6[%c0_92, %c0_93] : memref<288x128xf32, #tpu.memory_space<vmem>>, vector<288x128xf32>
    tpu.vector_store %arg6[%c0_92, %c0_93], %85 {strides = array<i32>} : memref<288x128xf32, #tpu.memory_space<vmem>>, vector<288x128xf32>,
    %c0_94 = arith.constant 0 : index
    %c0_95 = arith.constant 0 : index
    %87 = vector.load %arg6[%c0_94, %c0_95] : memref<288x128xf32, #tpu.memory_space<vmem>>, vector<288x128xf32>
    %c37_96 = arith.constant 37 : index
    %c0_97 = arith.constant 0 : index
    %88 = vector.load %arg5[%c37_96, %c0_97] : memref<360x12xbf16, #tpu.memory_space<vmem>>, vector<288x12xbf16>
    %c5 = arith.constant 5 : index
    %c0_98 = arith.constant 0 : index
    %c0_99 = arith.constant 0 : index
    %89 = vector.load %arg2[%c5, %c0_98, %c0_99] : memref<9x12x128xbf16, #tpu.memory_space<vmem>>, vector<1x12x128xbf16>
    %90 = vector.shape_cast %89 : vector<1x12x128xbf16> to vector<12x128xbf16>
    %cst_100 = arith.constant dense<0.000000e+00> : vector<288x128xf32>
    %91 = tpu.matmul %88, %90, %cst_100 {dimension_numbers = #tpu.dot_dimension_numbers<[1], [0], [0], [1], [0, 0, 1, 1], [], []>} : vector<288x12xbf16>, vector<12x128xbf16>, vector<288x128xf32> -> vector<288x128xf32>
    %92 = arith.addf %87, %91 : vector<288x128xf32>
    %c0_101 = arith.constant 0 : index
    %c0_102 = arith.constant 0 : index
    %93 = vector.load %arg6[%c0_101, %c0_102] : memref<288x128xf32, #tpu.memory_space<vmem>>, vector<288x128xf32>
    tpu.vector_store %arg6[%c0_101, %c0_102], %92 {strides = array<i32>} : memref<288x128xf32, #tpu.memory_space<vmem>>, vector<288x128xf32>,
    %c0_103 = arith.constant 0 : index
    %c0_104 = arith.constant 0 : index
    %94 = vector.load %arg6[%c0_103, %c0_104] : memref<288x128xf32, #tpu.memory_space<vmem>>, vector<288x128xf32>
    %c53 = arith.constant 53 : index
    %c0_105 = arith.constant 0 : index
    %95 = vector.load %arg5[%c53, %c0_105] : memref<360x12xbf16, #tpu.memory_space<vmem>>, vector<288x12xbf16>
    %c6 = arith.constant 6 : index
    %c0_106 = arith.constant 0 : index
    %c0_107 = arith.constant 0 : index
    %96 = vector.load %arg2[%c6, %c0_106, %c0_107] : memref<9x12x128xbf16, #tpu.memory_space<vmem>>, vector<1x12x128xbf16>
    %97 = vector.shape_cast %96 : vector<1x12x128xbf16> to vector<12x128xbf16>
    %cst_108 = arith.constant dense<0.000000e+00> : vector<288x128xf32>
    %98 = tpu.matmul %95, %97, %cst_108 {dimension_numbers = #tpu.dot_dimension_numbers<[1], [0], [0], [1], [0, 0, 1, 1], [], []>} : vector<288x12xbf16>, vector<12x128xbf16>, vector<288x128xf32> -> vector<288x128xf32>
    %99 = arith.addf %94, %98 : vector<288x128xf32>
    %c0_109 = arith.constant 0 : index
    %c0_110 = arith.constant 0 : index
    %100 = vector.load %arg6[%c0_109, %c0_110] : memref<288x128xf32, #tpu.memory_space<vmem>>, vector<288x128xf32>
    tpu.vector_store %arg6[%c0_109, %c0_110], %99 {strides = array<i32>} : memref<288x128xf32, #tpu.memory_space<vmem>>, vector<288x128xf32>,
    %c0_111 = arith.constant 0 : index
    %c0_112 = arith.constant 0 : index
    %101 = vector.load %arg6[%c0_111, %c0_112] : memref<288x128xf32, #tpu.memory_space<vmem>>, vector<288x128xf32>
    %c54 = arith.constant 54 : index
    %c0_113 = arith.constant 0 : index
    %102 = vector.load %arg5[%c54, %c0_113] : memref<360x12xbf16, #tpu.memory_space<vmem>>, vector<288x12xbf16>
    %c7 = arith.constant 7 : index
    %c0_114 = arith.constant 0 : index
    %c0_115 = arith.constant 0 : index
    %103 = vector.load %arg2[%c7, %c0_114, %c0_115] : memref<9x12x128xbf16, #tpu.memory_space<vmem>>, vector<1x12x128xbf16>
    %104 = vector.shape_cast %103 : vector<1x12x128xbf16> to vector<12x128xbf16>
    %cst_116 = arith.constant dense<0.000000e+00> : vector<288x128xf32>
    %105 = tpu.matmul %102, %104, %cst_116 {dimension_numbers = #tpu.dot_dimension_numbers<[1], [0], [0], [1], [0, 0, 1, 1], [], []>} : vector<288x12xbf16>, vector<12x128xbf16>, vector<288x128xf32> -> vector<288x128xf32>
    %106 = arith.addf %101, %105 : vector<288x128xf32>
    %c0_117 = arith.constant 0 : index
    %c0_118 = arith.constant 0 : index
    %107 = vector.load %arg6[%c0_117, %c0_118] : memref<288x128xf32, #tpu.memory_space<vmem>>, vector<288x128xf32>
    tpu.vector_store %arg6[%c0_117, %c0_118], %106 {strides = array<i32>} : memref<288x128xf32, #tpu.memory_space<vmem>>, vector<288x128xf32>,
    %c0_119 = arith.constant 0 : index
    %c0_120 = arith.constant 0 : index
    %108 = vector.load %arg6[%c0_119, %c0_120] : memref<288x128xf32, #tpu.memory_space<vmem>>, vector<288x128xf32>
    %c55_121 = arith.constant 55 : index
    %c0_122 = arith.constant 0 : index
    %109 = vector.load %arg5[%c55_121, %c0_122] : memref<360x12xbf16, #tpu.memory_space<vmem>>, vector<288x12xbf16>
    %c8 = arith.constant 8 : index
    %c0_123 = arith.constant 0 : index
    %c0_124 = arith.constant 0 : index
    %110 = vector.load %arg2[%c8, %c0_123, %c0_124] : memref<9x12x128xbf16, #tpu.memory_space<vmem>>, vector<1x12x128xbf16>
    %111 = vector.shape_cast %110 : vector<1x12x128xbf16> to vector<12x128xbf16>
    %cst_125 = arith.constant dense<0.000000e+00> : vector<288x128xf32>
    %112 = tpu.matmul %109, %111, %cst_125 {dimension_numbers = #tpu.dot_dimension_numbers<[1], [0], [0], [1], [0, 0, 1, 1], [], []>} : vector<288x12xbf16>, vector<12x128xbf16>, vector<288x128xf32> -> vector<288x128xf32>
    %113 = arith.addf %108, %112 : vector<288x128xf32>
    %c0_126 = arith.constant 0 : index
    %c0_127 = arith.constant 0 : index
    %114 = vector.load %arg6[%c0_126, %c0_127] : memref<288x128xf32, #tpu.memory_space<vmem>>, vector<288x128xf32>
    tpu.vector_store %arg6[%c0_126, %c0_127], %113 {strides = array<i32>} : memref<288x128xf32, #tpu.memory_space<vmem>>, vector<288x128xf32>,
    %c0_128 = arith.constant 0 : index
    %c0_129 = arith.constant 0 : index
    %115 = vector.load %arg6[%c0_128, %c0_129] : memref<288x128xf32, #tpu.memory_space<vmem>>, vector<288x128xf32>
    %c0_130 = arith.constant 0 : index
    %c0_131 = arith.constant 0 : index
    %116 = vector.load %arg3[%c0_130, %c0_131] : memref<1x128xf32, #tpu.memory_space<vmem>>, vector<1x128xf32>
    %117 = vector.broadcast %116 : vector<1x128xf32> to vector<288x128xf32>
    %118 = arith.addf %115, %117 : vector<288x128xf32>
    %cst_132 = arith.constant 0.000000e+00 : f32
    %119 = vector.broadcast %cst_132 : f32 to vector<288x128xf32>
    %120 = arith.maximumf %118, %119 : vector<288x128xf32>
    %121 = arith.truncf %120 : vector<288x128xf32> to vector<288x128xbf16>
    %c0_133 = arith.constant 0 : index
    %c0_134 = arith.constant 0 : index
    %c0_135 = arith.constant 0 : index
    %122 = vector.load %arg4[%c0_133, %c0_134, %c0_135] : memref<1x288x128xbf16, #tpu.memory_space<vmem>>, vector<1x288x128xbf16>
    %123 = vector.shape_cast %122 : vector<1x288x128xbf16> to vector<288x128xbf16>
    %124 = vector.shape_cast %121 : vector<288x128xbf16> to vector<1x288x128xbf16>
    tpu.vector_store %arg4[%c0_133, %c0_134, %c0_135], %124 {strides = array<i32>} : memref<1x288x128xbf16, #tpu.memory_space<vmem>>, vector<1x288x128xbf16>,
    return
  }
  func.func @transform_0(%arg0: i32) -> (i32, i32, i32) {
    %c0_i32 = arith.constant 0 : i32
    %c0_i32_0 = arith.constant 0 : i32
    %c0_i32_1 = arith.constant 0 : i32
    return %arg0, %c0_i32, %c0_i32_0 : i32, i32, i32
  }
  func.func @transform_1(%arg0: i32) -> (i32, i32, i32) {
    %c0_i32 = arith.constant 0 : i32
    %c0_i32_0 = arith.constant 0 : i32
    %c0_i32_1 = arith.constant 0 : i32
    %c0_i32_2 = arith.constant 0 : i32
    return %c0_i32, %c0_i32_0, %c0_i32_1 : i32, i32, i32
  }
  func.func @transform_2(%arg0: i32) -> (i32, i32) {
    %c0_i32 = arith.constant 0 : i32
    %c0_i32_0 = arith.constant 0 : i32
    %c0_i32_1 = arith.constant 0 : i32
    return %c0_i32, %c0_i32_0 : i32, i32
  }
  func.func @transform_3(%arg0: i32) -> (i32, i32, i32) {
    %c0_i32 = arith.constant 0 : i32
    %c0_i32_0 = arith.constant 0 : i32
    %c0_i32_1 = arith.constant 0 : i32
    return %arg0, %c0_i32, %c0_i32_0 : i32, i32, i32
  }
}

</mosaic_0001>

<bundles_post_ra>
// kernel: tpu_custom_call.1
= control target key start
LH: loop header
LB: loop body
LE: loop exit
PB: predicated region body
PF: predicated region fallthrough
CT: control target
= control target key end

     0   :  { %8 = vsyncpa [#allocation5], 0  ;;  %s9154_s0 = inlined_call_operand.vmem [shape: bf16[2,256,12], index: 0, kind: input, shape index: {}]   ;;  %s9155_s1 = inlined_call_operand.vmem [shape: bf16[9,12,128], index: 1, kind: input, shape index: {}]   ;;  %s9156_s2 = inlined_call_operand.vmem [shape: f32[1,128], index: 2, kind: input, shape index: {}]   ;;  %s9157_s3 = inlined_call_operand.hbm [shape: bf16[2,288,128], index: 3, kind: output, shape index: {}]  }
   0x1   :  { %10 = vsyncpa [#allocation5 + $0x1], 0  ;;  %s8253_s12 = smov 0   ;;  %s8255_s13 = smov 0  }
   0x2   :  { %s8257_s14 = smov 0   ;;  %s8259_s15 = smov 0  }
   0x3 LB: > { %s8274_s16 = sadd.s32 4294967295, %s8227_s15   ;;  %s6579_s17 = sadd.s32 4294967294, %s8227_s15   ;;  %s8227_s15 = sphi %s8259_s15, %s9393_s15   ;;  %s8223_s14 = sphi %s8257_s14, %s9392_s14   ;;  %s8219_s13 = sphi %s8255_s13, %s9391_s13   ;;  %s8215_s12 = sphi %s8253_s12, %s9390_s12  }
   0x4   : > { %s8278_s18 = sadd.s32 1, %s8227_s15   ;;  %s91_s19 = sadd.s32 1, %s8223_s14 }
   0x5   : > { %s88_s20 = ssub.s32 %s8227_s15, %s8278_s18  ;;  %p101_p0 = scmp.ne.s32.totalorder %s8223_s14, %s8219_s13 }
   0x6   : > { %p89_p1 = scmp.eq.s32.totalorder %s88_s20, 0  ;;  %p102_p2 = scmp.eq.s32.totalorder %s8274_s16, 1 }
   0x7   : > { %p107_p3 = scmp.ne.s32.totalorder %s8219_s13, %s8215_s12  ;;  %p108_p4 = scmp.eq.s32.totalorder %s6579_s17, 1 }
   0x8   : > { %s8289_s21 = scalar_select %p89_p1, %s8223_s14, %s91_s19  }
   0x9   : > { %p8291_p5 = por %p102_p2, %p101_p0  ;;  %p8295_p6 = por %p108_p4, %p107_p3 }
   0xa   : > { %p6582_p7 = scmp.ge.s32.totalorder %s8227_s15, 1  ;;  %p140_p8 = scmp.lt.s32.totalorder %s8227_s15, 3 }
   0xc   : > { %p141_p9 = pnand %p6582_p7, %p140_p8 }
   0xd   : > { %vm9161_vm0 = vcmask (!%p141_p9), 1045504   ;;  %p164_p10 = scmp.lt.s32.totalorder (!%p141_p9), %s8274_s16, 1  ;;  %v7984_v0 = vld [vmem:[%s9155_s1 + $0x20] sm:$0x3f] (!%p141_p9)   ;;  %vm9158_vm1 = vcmask (!%p141_p9), 93184   ;;  %v8229_v3 = vmov (!%p141_p9), 0  }
   0xe   : > { %144 = sbr.rel (%p141_p9) target bundleno = 641 (0x281), region = 32  ;;  %v7985_v1 = vld [vmem:[%s9155_s1] sm:$0x3f] (!%p141_p9)   ;;  %7934 = vmatprep.subr.msk.bf16.mxu0 (!%p141_p9), %vm9161_vm0, %v7984_v0  ;;  %v8313_v2 = vsel (!%p141_p9), %vm9161_vm0, %v7984_v0, 0  ;;  %175 = vst.msk [vmem:[#allocation2 + $0x10] sm:$0xf] (!%p141_p9), %vm9158_vm1, %v8229_v3 }
   0xf   : > { %176 = vst.msk [vmem:[#allocation2 + $0x14] sm:$0xf] (!%p141_p9), %vm9158_vm1, %v8229_v3  ;;  %177 = vst.msk [vmem:[#allocation2 + $0x18] sm:$0xf] (!%p141_p9), %vm9158_vm1, %v8229_v3  ;;  %vm243_vm2 = vcmask (!%p141_p9), 93186   ;;  %7451 = vmatpush3.bf16.msra.mxu0 (!%p141_p9), %v8313_v2  ;;  %7930 = vmatprep.subr.msk.bf16.mxu1 (!%p141_p9), %vm9161_vm0, %v7985_v1  ;;  %vm250_vm5 = vcmask (!%p141_p9), 92160  }
  0x10   : > { %178 = vst.msk [vmem:[#allocation2 + $0x1c] sm:$0xf] (!%p141_p9), %vm9158_vm1, %v8229_v3  ;;  %173 = vst.msk [vmem:[#allocation2 + $0x8] sm:$0xf] (!%p141_p9), %vm9158_vm1, %v8229_v3  ;;  %vm218_vm3 = vsmask.f32 (!%p141_p9), 2304 }
  0x11   : > { %174 = vst.msk [vmem:[#allocation2 + $0xc] sm:$0xf] (!%p141_p9), %vm9158_vm1, %v8229_v3  ;;  %179 = vst.msk [vmem:[#allocation2 + $0x20] sm:$0xf] (!%p141_p9), %vm9158_vm1, %v8229_v3  ;;  %vm219_vm4 = vsmask.f32 (!%p141_p9), 6416 }
  0x12   : > { %180 = vst.msk [vmem:[#allocation2 + $0x24] sm:$0xf] (!%p141_p9), %vm9158_vm1, %v8229_v3  ;;  %181 = vst.msk [vmem:[#allocation2 + $0x28] sm:$0xf] (!%p141_p9), %vm9158_vm1, %v8229_v3  ;;  %vm244_vm6 = vsmask.f32 (!%p141_p9), 7946 }
  0x13   : > { %182 = vst.msk [vmem:[#allocation2 + $0x2c] sm:$0xf] (!%p141_p9), %vm9158_vm1, %v8229_v3  ;;  %183 = vst.msk [vmem:[#allocation2 + $0x30] sm:$0xf] (!%p141_p9), %vm9158_vm1, %v8229_v3  ;;  %vm257_vm7 = vsmask.f32 (!%p141_p9), 3328 }
  0x14   : > { %184 = vst.msk [vmem:[#allocation2 + $0x34] sm:$0xf] (!%p141_p9), %vm9158_vm1, %v8229_v3  ;;  %185 = vst.msk [vmem:[#allocation2 + $0x38] sm:$0xf] (!%p141_p9), %vm9158_vm1, %v8229_v3  ;;  %vm282_vm8 = vcmask (!%p141_p9), 93187   ;;  %v1150_v4 = vsel (!%p141_p9), %vm9161_vm0, %v7985_v1, 0 }
  0x15   : > { %s8309_s28 = scalar_select %p164_p10, %s8274_s16, 1  ;;  %186 = vst.msk [vmem:[#allocation2 + $0x3c] sm:$0xf] %vm9158_vm1, %v8229_v3  ;;  %187 = vst.msk [vmem:[#allocation2 + $0x40] sm:$0xf] %vm9158_vm1, %v8229_v3  ;;  %7299 = vmatpush3.bf16.msra.mxu1 %v1150_v4  ;;  %v9171_v31 = vmov 0 }
  0x16   : > { %188 = vst.msk [vmem:[#allocation2 + $0x44] sm:$0xf] %vm9158_vm1, %v8229_v3  ;;  %189 = vst.msk [vmem:[#allocation2 + $0x48] sm:$0xf] %vm9158_vm1, %v8229_v3  ;;  %vm283_vm9 = vsmask.f32 7950 }
  0x17   : > { %190 = vst.msk [vmem:[#allocation2 + $0x4c] sm:$0xf] %vm9158_vm1, %v8229_v3  ;;  %191 = vst.msk [vmem:[#allocation2 + $0x50] sm:$0xf] %vm9158_vm1, %v8229_v3  ;;  %s6983_s29 = sshll.u32 %s8309_s28, 7  ;;  %s161_s6 = sand.u32 1, %s8219_s13  }
  0x18   : > { %192 = vst.msk [vmem:[#allocation2 + $0x54] sm:$0xf] %vm9158_vm1, %v8229_v3  ;;  %193 = vst.msk [vmem:[#allocation2 + $0x58] sm:$0xf] %vm9158_vm1, %v8229_v3  ;;  %s8362_s5 = scalar_lea.vmem %s9154_s0, %s6983_s29  ;;  %v246_v21 = vld [vmem:[#allocation2 + $0x10] sm:$0xc] }
  0x19   : > { %194 = vst.msk [vmem:[#allocation2 + $0x5c] sm:$0xf] %vm9158_vm1, %v8229_v3  ;;  %195 = vst.msk [vmem:[#allocation2 + $0x60] sm:$0xf] %vm9158_vm1, %v8229_v3  ;;  %v216_v5 = vld [vmem:[%s8362_s5] sm:$0xf] }
  0x1a   : > { %196 = vst.msk [vmem:[#allocation2 + $0x64] sm:$0xf] %vm9158_vm1, %v8229_v3  ;;  %197 = vst.msk [vmem:[#allocation2 + $0x68] sm:$0xf] %vm9158_vm1, %v8229_v3  ;;  %v217_v6 = vld [vmem:[%s8362_s5 + $0x4] sm:$0xf] }
  0x1b   : > { %198 = vst.msk [vmem:[#allocation2 + $0x6c] sm:$0xf] %vm9158_vm1, %v8229_v3  ;;  %199 = vst.msk [vmem:[#allocation2 + $0x70] sm:$0xf] %vm9158_vm1, %v8229_v3  ;;  %v222_v7 = vshrl.u32 %v216_v5, 16  ;;  %v225_v8 = vshll.u32 %v216_v5, 16 }
  0x1c   : > { %200 = vst.msk [vmem:[#allocation2 + $0x74] sm:$0xf] %vm9158_vm1, %v8229_v3  ;;  %201 = vst.msk [vmem:[#allocation2 + $0x78] sm:$0xf] %vm9158_vm1, %v8229_v3  ;;  %v231_v9 = vshrl.u32 %v217_v6, 16  ;;  %v234_v10 = vshll.u32 %v217_v6, 16 }
  0x1d   : > { %202 = vst.msk [vmem:[#allocation2 + $0x7c] sm:$0xf] %vm9158_vm1, %v8229_v3  ;;  %203 = vst.msk [vmem:[#allocation2 + $0x80] sm:$0xf] %vm9158_vm1, %v8229_v3  ;;  %v255_v11 = vld [vmem:[%s8362_s5 + $0x8] sm:$0xf] }
  0x1e   : > { %204 = vst.msk [vmem:[#allocation2 + $0x84] sm:$0xf] %vm9158_vm1, %v8229_v3  ;;  %205 = vst.msk [vmem:[#allocation2 + $0x88] sm:$0xf] %vm9158_vm1, %v8229_v3  ;;  %v256_v12 = vld [vmem:[%s8362_s5 + $0xc] sm:$0xf] }
  0x1f   : > { %206 = vst.msk [vmem:[#allocation2 + $0x8c] sm:$0xf] %vm9158_vm1, %v8229_v3  ;;  %207 = vst.msk [vmem:[#allocation2 + $0x90] sm:$0xf] %vm9158_vm1, %v8229_v3  ;;  %v261_v13 = vshll.u32 %v255_v11, 16  ;;  %v264_v14 = vshrl.u32 %v255_v11, 16 }
  0x20   : > { %208 = vst.msk [vmem:[#allocation2 + $0x94] sm:$0xf] %vm9158_vm1, %v8229_v3  ;;  %209 = vst.msk [vmem:[#allocation2 + $0x98] sm:$0xf] %vm9158_vm1, %v8229_v3  ;;  %v224_v15 = vrot.slane %v222_v7, 5  ;;  %v227_v16 = vrot.slane %v225_v8, 6 }
  0x21   : > { %210 = vst.msk [vmem:[#allocation2 + $0x9c] sm:$0xf] %vm9158_vm1, %v8229_v3  ;;  %211 = vst.msk [vmem:[#allocation2 + $0xa0] sm:$0xf] %vm9158_vm1, %v8229_v3  ;;  %v233_v17 = vrot.slane %v231_v9, 5  ;;  %v236_v18 = vrot.slane %v234_v10, 6 }
  0x22   : > { %212 = vst.msk [vmem:[#allocation2 + $0xa4] sm:$0xf] %vm9158_vm1, %v8229_v3  ;;  %213 = vst.msk [vmem:[#allocation2 + $0xa8] sm:$0xf] %vm9158_vm1, %v8229_v3  ;;  %vm258_vm12 = vsmask.f32 7440  ;;  %v228_v25 = vor.u32 %v227_v16, %v224_v15 }
  0x23   : > { %vm8370_vm10 = vmand %vm282_vm8, %vm283_vm9  ;;  %v263_v22 = vrot.slane %v261_v13, 5  ;;  %v266_v23 = vrot.slane %v264_v14, 4  ;;  %v237_v26 = vor.u32 %v236_v18, %v233_v17  ;;  %v270_v27 = vshll.u32 %v256_v12, 16  ;;  %v285_v29 = vld [vmem:[#allocation2 + $0x18] sm:$0x8]  ;;  %v7990_v41 = vld [vmem:[#allocation2 + $0x8] sm:$0xff]  }
  0x24   : > { %vm8376_vm11 = vmand %vm243_vm2, %vm244_vm6  ;;  %v274_v28 = vshrl.u32 %v256_v12, 16  ;;  %v7988_v30 = vld [vmem:[%s9155_s1 + $0x28] sm:$0x3f]   ;;  %v252_v32 = vld [vmem:[#allocation2 + $0x18] sm:$0x7]  ;;  %v229_v36 = vrot.slane %v228_v25, 4 }
  0x25   : > { %vm8382_vm13 = vmor %vm218_vm3, %vm219_vm4  ;;  %v267_v33 = vor.u32 %v266_v23, %v263_v22  ;;  %v286_v34 = vsel %vm8370_vm10, %v263_v22, %v285_v29  ;;  %v294_v35 = vld [vmem:[%s8362_s5 + $0x10] sm:$0xf]  ;;  %vm319_vm15 = vsmask.f32 7938  ;;  %v239_v37 = vrot.slane %v237_v26, 4  ;;  %7936 = vmatprep.subr.msk.bf16.mxu0 %vm9161_vm0, %v7988_v30  ;;  %s7940_s7 = smul.u32 144, %s161_s6 }
  0x26   : > { %vm8391_vm14 = vmand %vm250_vm5, %vm218_vm3  ;;  %v247_v38 = vsel %vm8376_vm11, %v228_v25, %v246_v21  ;;  %v272_v40 = vrot.slane %v270_v27, 5  ;;  %287 = vst [vmem:[#allocation2 + $0x18] sm:$0x8] %v286_v34  ;;  %v276_v43 = vrot.slane %v274_v28, 4  ;;  %v300_v44 = vshrl.u32 %v294_v35, 16  ;;  %s7941_s9 = smul.u32 2304, %s8274_s16 }
  0x27   : > { %v9172_v31 = vsel %vm8391_vm14, 4294967295, %v9171_v31  ;;  %vm8402_vm2 = vmor %vm257_vm7, %vm258_vm12  ;;  %248 = vst [vmem:[#allocation2 + $0x10] sm:$0xc] %v247_v38  ;;  %v268_v42 = vrot.slane %v267_v33, 4  ;;  %v303_v45 = vshll.u32 %v294_v35, 16  ;;  %v238_v46 = vsel %vm8382_vm13, %v229_v36, %v237_v26  ;;  %s9042_s8 = scalar_lea.vmem [#allocation4], %s7940_s7 }
  0x28   : > { %v253_v47 = vsel %vm8391_vm14, %v239_v37, %v252_v32  ;;  %v291_v48 = vld [vmem:[#allocation2 + $0x20] sm:$0xf]  ;;  %v321_v49 = vld [vmem:[#allocation2 + $0x24] sm:$0xf]  ;;  %v8412_v50 = vsel %vm9161_vm0, %v7988_v30, 0  ;;  %v277_v52 = vor.u32 %v276_v43, %v272_v40  ;;  %vm8419_vm3 = vmand %vm9158_vm1, %vm257_vm7  ;;  %v302_v54 = vrot.slane %v300_v44, 7  ;;  %s9107_s19 = scalar_lea.hbm %s9157_s3, %s7941_s9 }
  0x29   : > { %249 = vst.msk [vmem:[#allocation2 + $0x14] sm:$0xf] %vm9158_vm1, %v238_v46  ;;  %254 = vst [vmem:[#allocation2 + $0x18] sm:$0x7] %v253_v47  ;;  %v273_v51 = vsel %vm8402_vm2, %v268_v42, %v272_v40  ;;  %v941_v55 = vshrl.u32 %v7990_v41, 16  ;;  %v943_v58 = vshll.u32 %v7990_v41, 16 }
  0x2a   : > { %v7993_v56 = vld [vmem:[%s9155_s1 + $0x8] sm:$0x3f]   ;;  %288 = vst.msk [vmem:[#allocation2 + $0x1c] sm:$0xf] %vm9158_vm1, %v273_v51  ;;  %vm8429_vm4 = vmand %vm9158_vm1, %vm319_vm15  ;;  %v295_v59 = vld [vmem:[%s8362_s5 + $0x14] sm:$0xf]  ;;  %v305_v61 = vor.u32 %v303_v45, %v302_v54 }
  0x2b   : > { %vm296_vm5 = vsmask.f32 256  ;;  %vm325_vm6 = vcmask 90112   ;;  %v278_v60 = vrot.slane %v277_v52, 4  ;;  %7931 = vmatprep.subr.msk.bf16.mxu1 %vm9161_vm0, %v7993_v56  ;;  %vm297_vm8 = vsmask.f32 4368 }
  0x2c   : > { %v306_v62 = vrot.slane %v302_v54, 4  ;;  %v945_v63 = vrot.slane %v943_v58, 1  ;;  %v308_v0 = vshrl.u32 %v295_v59, 16  ;;  %v311_v1 = vshll.u32 %v295_v59, 16  ;;  %v330_v3 = vld [vmem:[%s8362_s5 + $0x18] sm:$0xf]  ;;  %vm8442_vm15 = vmand %vm325_vm6, %vm296_vm5 }
  0x2d   : > { %v292_v4 = vsel %vm8419_vm3, %v278_v60, %v291_v48  ;;  %v322_v5 = vsel %vm8429_vm4, %v305_v61, %v321_v49  ;;  %v336_v6 = vshrl.u32 %v330_v3, 16  ;;  %v339_v7 = vshll.u32 %v330_v3, 16  ;;  %v327_v10 = vld [vmem:[#allocation2 + $0x2c] sm:$0x1]  ;;  %vm8451_vm7 = vmor %vm296_vm5, %vm297_vm8  ;;  %v360_v15 = vld [vmem:[#allocation2 + $0x2c] sm:$0xe] }
  0x2e   : > { %293 = vst [vmem:[#allocation2 + $0x20] sm:$0xf] %v292_v4  ;;  %323 = vst [vmem:[#allocation2 + $0x24] sm:$0xf] %v322_v5  ;;  %v310_v8 = vrot.slane %v308_v0, 7  ;;  %v8447_v11 = vsel %vm9161_vm0, %v7993_v56, 0  ;;  %v946_v27 = vor.u32 %v945_v63, %v941_v55 }
  0x2f   : > { %v338_v13 = vrot.slane %v336_v6, 6  ;;  %v341_v14 = vrot.slane %v339_v7, 7  ;;  %vm358_vm12 = vsmask.f32 7942  ;;  %v331_v16 = vld [vmem:[%s8362_s5 + $0x1c] sm:$0xf] }
  0x30   : > { %vm332_vm9 = vsmask.f32 1280  ;;  %v7986_v17 = vld [vmem:[#allocation2 + $0x10] sm:$0xfc]   ;;  %v313_v18 = vor.u32 %v311_v1, %v310_v8  ;;  %v315_v22 = vrot.slane %v310_v8, 4  ;;  %vm9183_vm5 = vcmask 93185  }
  0x31   : > { %v7987_v21 = vld [vmem:[#allocation2 + $0x18] sm:$0xff]   ;;  %v342_v23 = vor.u32 %v341_v14, %v338_v13  ;;  %v3390_v25 = vrot.slane %v7986_v17, 2  ;;  %v7991_v26 = vld [vmem:[#allocation2 + $0x10] sm:$0xff]   ;;  %vm8463_vm6 = vmand %vm9183_vm5, %vm358_vm12  ;;  %v9184_v33 = vmov 0  ;;  %vm333_vm8 = vsmask.f32 5392 }
  0x32   : > { %v314_v28 = vsel %vm8451_vm7, %v306_v62, %v313_v18  ;;  %v3391_v29 = vrot.slane %v7987_v21, 2  ;;  %v7992_v30 = vld [vmem:[#allocation2 + $0x18] sm:$0xff]   ;;  %v328_v32 = vsel %vm8442_vm15, %v315_v22, %v327_v10  ;;  %v9185_v33 = vsel %vm8463_vm6, 4294967295, %v9184_v33  ;;  %v393_v56 = vld [vmem:[#allocation2 + $0x34] sm:$0xc]  ;;  %vm8480_vm5 = vmor %vm332_vm9, %vm333_vm8  ;;  %s6517_s10 = sshll.u32 %s9042_s8, 4  ;;  %s9102_s10 = int_to_ptr.vmem [resolvable:$true] %s6517_s10 }
  0x33   : > { %324 = vst.msk [vmem:[#allocation2 + $0x28] sm:$0xf] %vm9158_vm1, %v314_v28  ;;  %v343_v34 = vrot.slane %v342_v23, 4  ;;  %v948_v35 = vshll.u32 %v7991_v26, 16  ;;  %v952_v36 = vshrl.u32 %v7991_v26, 16  ;;  %v361_v37 = vsel %vm8463_vm6, %v342_v23, %v360_v15  ;;  %s9113_s16 = scalar_lea.sflag [#allocation5], %s161_s6 }
  0x34   : > { %329 = vst [vmem:[#allocation2 + $0x2c] sm:$0x1] %v328_v32  ;;  %v345_v38 = vshrl.u32 %v331_v16, 16  ;;  %v3392_v40 = vsel %vm9161_vm0, %v3390_v25, %v3391_v29  ;;  %v956_v42 = vshll.u32 %v7992_v30, 16  ;;  %362 = vst [vmem:[#allocation2 + $0x2c] sm:$0xe] %v361_v37 }
  0x35   : > { %v8470_v41 = vld [vmem:[#allocation2 + $0x20] sm:$0xff]   ;;  %vm9186_vm12 = vcmask 97280   ;;  %v950_v43 = vrot.slane %v948_v35, 1  ;;  %v348_v45 = vshll.u32 %v331_v16, 16  ;;  %v369_v46 = vld [vmem:[%s8362_s5 + $0x20] sm:$0xf] }
  0x36   : > { %7452 = vmatprep.mubr.msk.bf16.mxu0 %vm9186_vm12, %v3392_v40  ;;  %v347_v44 = vrot.slane %v345_v38, 6  ;;  %v3393_v47 = vrot.slane %v8470_v41, 2  ;;  %v958_v48 = vrot.slane %v956_v42, 1  ;;  %v372_v49 = vshrl.u32 %v369_v46, 16  ;;  %v7996_v58 = vld [vmem:[#allocation2 + $0x20] sm:$0xff]   ;;  %s8165_s20 = scalar_lea.vmem %s9102_s10, 2304 }
  0x37   : > { %v375_v51 = vshll.u32 %v369_v46, 16  ;;  %vm9187_vm1 = vsmask.f32 7424  ;;  %v954_v54 = vor.u32 %v952_v36, %v950_v43  ;;  %v350_v55 = vrot.slane %v348_v45, 7  ;;  %v370_v0 = vld [vmem:[%s8362_s5 + $0x24] sm:$0xf]  ;;  %p8166_p11 = scmp.ne.s32.totalorder %s9102_s10, %s8165_s20 }
  0x38   : > { %v951_v52 = vsel %vm9187_vm1, %v946_v27, %v950_v43  ;;  %v3394_v59 = vsel %vm9161_vm0, %v3391_v29, %v3393_v47  ;;  %v374_v61 = vrot.slane %v372_v49, 5  ;;  %v960_v63 = vshrl.u32 %v7992_v30, 16  ;;  %vm9190_vm1 = vmmov %vm9186_vm12  ;;  %v366_v7 = vld [vmem:[#allocation2 + $0x34] sm:$0x3]  ;;  %v400_v15 = vld [vmem:[%s8362_s5 + $0x28] sm:$0xf] }
  0x39   : > { %7300 = vmatprep.mubr.msk.bf16.mxu1 %vm9186_vm12, %v951_v52  ;;  %v377_v62 = vrot.slane %v375_v51, 6  ;;  %7453 = vmatmul.mubr.msk.bf16.vlgmr.msra.gmra.mrb[0].mxu0 %vm9190_vm1, %v3394_v59  ;;  %vm9191_vm6 = vsmask.f32 7424  ;;  %v351_v3 = vor.u32 %v350_v55, %v347_v44  ;;  %v964_v4 = vshll.u32 %v7996_v58, 16  ;;  %vm9192_vm12 = vmmov %vm9190_vm1  ;;  %v397_v30 = vld [vmem:[#allocation2 + $0x3c] sm:$0x7]  ;;  %p8167_p12 = pnand %p8166_p11, %p8291_p5 }
  0x3a   : > { %v959_v1 = vsel %vm9191_vm6, %v954_v54, %v958_v48  ;;  %v968_v5 = vshrl.u32 %v7996_v58, 16  ;;  %7489 = vmatpush3.bf16.msra.mxu0 %v8412_v50  ;;  %vm9193_vm8 = vcmask 91136   ;;  %v962_v10 = vor.u32 %v960_v63, %v958_v48  ;;  %v401_v32 = vld [vmem:[%s8362_s5 + $0x2c] sm:$0xf]  ;;  %v424_v38 = vld [vmem:[#allocation2 + $0x3c] sm:$0x8] }
  0x3b   : > { %7301 = vmatmul.mubr.msk.bf16.vlgmr.msra.gmra.mrb[0].mxu1 %vm9192_vm12, %v959_v1  ;;  %vm8491_vm0 = vmand %vm9193_vm8, %vm332_vm9  ;;  %v378_v8 = vor.u32 %v377_v62, %v374_v61  ;;  %v381_v13 = vshrl.u32 %v370_v0, 16  ;;  %v384_v14 = vshll.u32 %v370_v0, 16  ;;  %v8496_v16 = vld [vmem:[#allocation2 + $0x28] sm:$0xff]   ;;  %v352_v50 = vsel %vm8480_vm5, %v343_v34, %v351_v3  ;;  %v428_v61 = vld [vmem:[#allocation2 + $0x44] sm:$0xf]  ;;  %p8168_p13 = pneg %p8167_p12  ;;  %s8230_s24 = smov [#allocation4]  }
  0x3c   : > { %7337 = vmatpush3.bf16.msra.mxu1 %v8447_v11  ;;  %v353_v17 = vrot.slane %v351_v3, 4  ;;  %v966_v18 = vrot.slane %v964_v4, 1  ;;  %v7997_v21 = vld [vmem:[#allocation2 + $0x28] sm:$0xff]   ;;  %vm9196_vm9 = vcmask 93184   ;;  %v3395_v27 = vrot.slane %v8496_v16, 2  ;;  %vm9198_vm8 = vmmov %vm9190_vm1  ;;  %s8169_s25 = sshll.u32 %s8230_s24, 4  ;;  %s8170_s25 = int_to_ptr.vmem [resolvable:$false] %s8169_s25 }
  0x3d   : > { %363 = vst.msk [vmem:[#allocation2 + $0x30] sm:$0xf] %vm9196_vm9, %v352_v50  ;;  %v394_v22 = vsel %vm8376_vm11, %v378_v8, %v393_v56  ;;  %v379_v23 = vrot.slane %v378_v8, 4  ;;  %v383_v25 = vrot.slane %v381_v13, 5  ;;  %v386_v26 = vrot.slane %v384_v14, 6  ;;  %s8171_s26 = scalar_lea.vmem %s8170_s25, 4608  ;;  %p8172_p0 = scmp.lt.s32.totalorder %s9102_s10, %s8170_s25 }
  0x3e   : > { %v367_v11 = vsel %vm8491_vm0, %v353_v17, %v366_v7  ;;  %395 = vst [vmem:[#allocation2 + $0x34] sm:$0xc] %v394_v22  ;;  %v967_v28 = vsel %vm9191_vm6, %v962_v10, %v966_v18  ;;  %v970_v29 = vor.u32 %v968_v5, %v966_v18  ;;  %v972_v34 = vshll.u32 %v7997_v21, 16  ;;  %v431_v44 = vld [vmem:[%s8362_s5 + $0x30] sm:$0xf]  ;;  %p8173_p1 = scmp.lt.s32.totalorder %s8171_s26, %s8165_s20 }
  0x3f   : > { %368 = vst [vmem:[#allocation2 + $0x34] sm:$0x3] %v367_v11  ;;  %7304 = vmatprep.mubr.msk.bf16.mxu1 %vm9190_vm1, %v967_v28  ;;  %v387_v35 = vor.u32 %v386_v26, %v383_v25  ;;  %v403_v36 = vshll.u32 %v400_v15, 16  ;;  %v406_v37 = vshrl.u32 %v400_v15, 16  ;;  %vm9197_vm12 = vcmask 1045504  }
  0x40   : > { %v3396_v40 = vsel %vm9197_vm12, %v3393_v47, %v3395_v27  ;;  %v412_v41 = vshll.u32 %v401_v32, 16  ;;  %v416_v42 = vshrl.u32 %v401_v32, 16  ;;  %v976_v43 = vshrl.u32 %v7997_v21, 16  ;;  %v432_v55 = vld [vmem:[%s8362_s5 + $0x34] sm:$0xf]  ;;  %vm9199_vm12 = vmmov %vm9196_vm9  ;;  %p8174_p2 = por %p8173_p1, %p8172_p0 }
  0x41   : > { %7456 = vmatprep.mubr.msk.bf16.mxu0 %vm9198_vm8, %v3396_v40  ;;  %v974_v45 = vrot.slane %v972_v34, 1  ;;  %v388_v46 = vsel %vm8382_vm13, %v379_v23, %v387_v35  ;;  %v389_v48 = vrot.slane %v387_v35, 4  ;;  %v405_v49 = vrot.slane %v403_v36, 5  ;;  %v460_v62 = vld [vmem:[%s8362_s5 + $0x38] sm:$0xf] }
  0x42   : > { %396 = vst.msk [vmem:[#allocation2 + $0x38] sm:$0xf] %vm9196_vm9, %v388_v46  ;;  %v408_v51 = vrot.slane %v406_v37, 4  ;;  %v414_v52 = vrot.slane %v412_v41, 5  ;;  %v418_v54 = vrot.slane %v416_v42, 4  ;;  %v434_v47 = vshrl.u32 %v431_v44, 16  ;;  %vm9201_vm9 = vmmov %vm9190_vm1  ;;  %p8175_p3 = pnand %p8174_p2, %p8168_p13 }
  0x43   : > { %v975_v56 = vsel %vm9191_vm6, %v970_v29, %v974_v45  ;;  %v398_v58 = vsel %vm8391_vm14, %v389_v48, %v397_v30  ;;  %v425_v59 = vsel %vm8370_vm10, %v405_v49, %v424_v38  ;;  %v437_v3 = vshll.u32 %v431_v44, 16  ;;  %v453_v4 = vld [vmem:[#allocation2 + $0x48] sm:$0xf]  ;;  %v461_v8 = vld [vmem:[%s8362_s5 + $0x3c] sm:$0xf] }
  0x44   : > { %7305 = vmatmul.mubr.msk.bf16.gmra.mrb[4].mxu1 %vm9190_vm1, %v975_v56  ;;  %399 = vst [vmem:[#allocation2 + $0x3c] sm:$0x7] %v398_v58  ;;  %426 = vst [vmem:[#allocation2 + $0x3c] sm:$0x8] %v425_v59  ;;  %v409_v63 = vor.u32 %v408_v51, %v405_v49  ;;  %v419_v0 = vor.u32 %v418_v54, %v414_v52  ;;  %v436_v1 = vrot.slane %v434_v47, 7  ;;  %v442_v5 = vshrl.u32 %v432_v55, 16 }
  0x45   : > { %v445_v7 = vshll.u32 %v432_v55, 16  ;;  %v463_v10 = vshrl.u32 %v460_v62, 16  ;;  %v466_v13 = vshll.u32 %v460_v62, 16  ;;  %v978_v18 = vor.u32 %v976_v43, %v974_v45  ;;  %v457_v32 = vld [vmem:[#allocation2 + $0x50] sm:$0x1]  ;;  %vm9202_vm1 = vmmov %vm9199_vm12 }
  0x46   : > { %v7995_v14 = vld [vmem:[#allocation2 + $0x30] sm:$0xff]   ;;  %v410_v15 = vrot.slane %v409_v63, 4  ;;  %v420_v50 = vrot.slane %v419_v0, 4  ;;  %v439_v21 = vor.u32 %v437_v3, %v436_v1  ;;  %v440_v22 = vrot.slane %v436_v1, 4  ;;  %v491_v44 = vld [vmem:[%s8362_s5 + $0x40] sm:$0xf] }
  0x47   : > { %v8000_v17 = vld [vmem:[#allocation2 + $0x30] sm:$0xff]   ;;  %v444_v23 = vrot.slane %v442_v5, 7  ;;  %v465_v25 = vrot.slane %v463_v10, 6  ;;  %v468_v26 = vrot.slane %v466_v13, 7  ;;  %v3397_v11 = vrot.slane %v7995_v14, 2 }
  0x48   : > { %v415_v28 = vsel %vm8402_vm2, %v410_v15, %v414_v52  ;;  %v429_v29 = vsel %vm8419_vm3, %v420_v50, %v428_v61  ;;  %v980_v30 = vshll.u32 %v8000_v17, 16  ;;  %v484_v34 = vld [vmem:[#allocation2 + $0x50] sm:$0xe]  ;;  %v984_v35 = vshrl.u32 %v8000_v17, 16  ;;  %v492_v45 = vld [vmem:[%s8362_s5 + $0x44] sm:$0xf] }
  0x49   : > { %427 = vst.msk [vmem:[#allocation2 + $0x40] sm:$0xf] %vm9199_vm12, %v415_v28  ;;  %430 = vst [vmem:[#allocation2 + $0x44] sm:$0xf] %v429_v29  ;;  %v447_v36 = vor.u32 %v445_v7, %v444_v23  ;;  %v454_v37 = vsel %vm8429_vm4, %v439_v21, %v453_v4  ;;  %v449_v38 = vrot.slane %v444_v23, 4  ;;  %vm9200_vm8 = vcmask 1045504  }
  0x4a   : > { %v3398_v40 = vsel %vm9200_vm8, %v3395_v27, %v3397_v11  ;;  %v982_v41 = vrot.slane %v980_v30, 1  ;;  %455 = vst [vmem:[#allocation2 + $0x48] sm:$0xf] %v454_v37  ;;  %v469_v42 = vor.u32 %v468_v26, %v465_v25  ;;  %v472_v43 = vshrl.u32 %v461_v8, 16  ;;  %vm9203_vm12 = vmmov %vm9201_vm9  ;;  %v488_v4 = vld [vmem:[#allocation2 + $0x58] sm:$0x3] }
  0x4b   : > { %7457 = vmatmul.mubr.msk.bf16.gmra.mrb[4].mxu0 %vm9201_vm9, %v3398_v40  ;;  %v7998_v46 = vld [vmem:[#allocation2 + $0x38] sm:$0xff]   ;;  %v448_v48 = vsel %vm8451_vm7, %v440_v22, %v447_v36  ;;  %v458_v49 = vsel %vm8442_vm15, %v449_v38, %v457_v32  ;;  %v475_v51 = vshll.u32 %v461_v8, 16  ;;  %vm9204_vm8 = vnez %v9185_v33  ;;  %v522_v14 = vld [vmem:[%s8362_s5 + $0x48] sm:$0xf]  ;;  %v523_v32 = vld [vmem:[%s8362_s5 + $0x4c] sm:$0xf] }
  0x4c   : > { %v983_v16 = vsel %vm9191_vm6, %v978_v18, %v982_v41  ;;  %v8001_v52 = vld [vmem:[#allocation2 + $0x38] sm:$0xff]   ;;  %v986_v27 = vor.u32 %v984_v35, %v982_v41  ;;  %456 = vst.msk [vmem:[#allocation2 + $0x4c] sm:$0xf] %vm9202_vm1, %v448_v48  ;;  %459 = vst [vmem:[#allocation2 + $0x50] sm:$0x1] %v458_v49  ;;  %v470_v54 = vrot.slane %v469_v42, 4  ;;  %v485_v58 = vsel %vm9204_vm8, %v469_v42, %v484_v34 }
  0x4d   : > { %v474_v55 = vrot.slane %v472_v43, 6  ;;  %v3399_v47 = vrot.slane %v7998_v46, 2  ;;  %7308 = vmatprep.mubr.msk.bf16.mxu1 %vm9203_vm12, %v983_v16  ;;  %v477_v56 = vrot.slane %v475_v51, 7  ;;  %v494_v59 = vshrl.u32 %v491_v44, 16  ;;  %486 = vst [vmem:[#allocation2 + $0x50] sm:$0xe] %v485_v58  ;;  %vm9206_vm6 = vmmov %vm9203_vm12 }
  0x4e   : > { %v988_v61 = vshll.u32 %v8001_v52, 16  ;;  %v992_v62 = vshrl.u32 %v8001_v52, 16  ;;  %v497_v63 = vshll.u32 %v491_v44, 16  ;;  %v503_v0 = vshrl.u32 %v492_v45, 16  ;;  %v515_v21 = vld [vmem:[#allocation2 + $0x58] sm:$0xc] }
  0x4f   : > { %vm9205_vm9 = vcmask 1045504   ;;  %v478_v3 = vor.u32 %v477_v56, %v474_v55  ;;  %v496_v5 = vrot.slane %v494_v59, 5  ;;  %v506_v7 = vshll.u32 %v492_v45, 16  ;;  %v546_v38 = vld [vmem:[#allocation2 + $0x60] sm:$0x8]  ;;  %v8041_v33 = vld [vmem:[#allocation2 + $0x38] sm:$0xff]  }
  0x50   : > { %v3400_v1 = vsel %vm9205_vm9, %v3397_v11, %v3399_v47  ;;  %v7999_v8 = vld [vmem:[#allocation2 + $0x40] sm:$0xff]   ;;  %v990_v10 = vrot.slane %v988_v61, 1  ;;  %vm9207_vm1 = vsmask.f32 7424  ;;  %vm9208_vm12 = vcmask 93184   ;;  %vm9209_vm9 = vmmov %vm9206_vm6 }
  0x51   : > { %7460 = vmatprep.mubr.msk.bf16.mxu0 %vm9206_vm6, %v3400_v1  ;;  %v479_v13 = vsel %vm8480_vm5, %v470_v54, %v478_v3  ;;  %v3401_v15 = vrot.slane %v7999_v8, 2  ;;  %v8004_v17 = vld [vmem:[#allocation2 + $0x40] sm:$0xff]   ;;  %v480_v18 = vrot.slane %v478_v3, 4  ;;  %v499_v25 = vrot.slane %v497_v63, 6  ;;  %v8010_v54 = vld [vmem:[#allocation2 + $0x10] sm:$0xfc]  }
  0x52   : > { %v991_v50 = vsel %vm9207_vm1, %v986_v27, %v990_v10  ;;  %487 = vst.msk [vmem:[#allocation2 + $0x54] sm:$0xf] %vm9208_vm12, %v479_v13  ;;  %v994_v23 = vor.u32 %v992_v62, %v990_v10  ;;  %vm9210_vm6 = vcmask 1045504   ;;  %v996_v11 = vshll.u32 %v8004_v17, 16  ;;  %vm9211_vm1 = vmmov %vm9209_vm9  ;;  %v519_v42 = vld [vmem:[#allocation2 + $0x60] sm:$0x7] }
  0x53   : > { %7309 = vmatmul.mubr.msk.bf16.gmra.mrb[8].mxu1 %vm9209_vm9, %v991_v50  ;;  %v8002_v22 = vld [vmem:[#allocation2 + $0x48] sm:$0xff]   ;;  %v3402_v26 = vsel %vm9210_vm6, %v3399_v47, %v3401_v15  ;;  %v1000_v29 = vshrl.u32 %v8004_v17, 16  ;;  %v489_v30 = vsel %vm8491_vm0, %v480_v18, %v488_v4  ;;  %v500_v35 = vor.u32 %v499_v25, %v496_v5  ;;  %vm9212_vm12 = vmmov %vm9210_vm6  ;;  %v8011_v3 = vld [vmem:[#allocation2 + $0x18] sm:$0xff]  }
  0x54   : > { %v8005_v28 = vld [vmem:[#allocation2 + $0x48] sm:$0xff]   ;;  %7461 = vmatmul.mubr.msk.bf16.gmra.mrb[8].mxu0 %vm9211_vm1, %v3402_v26  ;;  %v3403_v34 = vrot.slane %v8002_v22, 2  ;;  %490 = vst [vmem:[#allocation2 + $0x58] sm:$0x3] %v489_v30  ;;  %v505_v36 = vrot.slane %v503_v0, 5  ;;  %v508_v37 = vrot.slane %v506_v7, 6  ;;  %vm9213_vm9 = vmmov %vm9211_vm1 }
  0x55   : > { %v998_v40 = vrot.slane %v996_v11, 1  ;;  %v1004_v41 = vshll.u32 %v8005_v28, 16  ;;  %v525_v43 = vshll.u32 %v522_v14, 16  ;;  %v528_v44 = vshrl.u32 %v522_v14, 16  ;;  %v8012_v10 = vld [vmem:[%s9155_s1 + $0x30] sm:$0x3f]  }
  0x56   : > { %v3404_v45 = vsel %vm9212_vm12, %v3401_v15, %v3403_v34  ;;  %v501_v46 = vrot.slane %v500_v35, 4  ;;  %v509_v48 = vor.u32 %v508_v37, %v505_v36  ;;  %v516_v49 = vsel %vm8376_vm11, %v500_v35, %v515_v21  ;;  %v8013_v26 = vld [vmem:[#allocation2 + $0x20] sm:$0xff]   ;;  %v550_v36 = vld [vmem:[#allocation2 + $0x68] sm:$0xf]  ;;  %v697_v39 = vld [vmem:[#allocation2 + $0x90] sm:$0xf] }
  0x57   : > { %7464 = vmatprep.mubr.msk.bf16.mxu0 %vm9213_vm9, %v3404_v45  ;;  %vm9214_vm6 = vsmask.f32 7424  ;;  %v1002_v16 = vor.u32 %v1000_v29, %v998_v40  ;;  %v1006_v52 = vrot.slane %v1004_v41, 1  ;;  %517 = vst [vmem:[#allocation2 + $0x58] sm:$0xc] %v516_v49  ;;  %v527_v27 = vrot.slane %v525_v43, 5 }
  0x58   : > { %v999_v51 = vsel %vm9214_vm6, %v994_v23, %v998_v40  ;;  %v510_v47 = vsel %vm8382_vm13, %v501_v46, %v509_v48  ;;  %v511_v56 = vrot.slane %v509_v48, 4  ;;  %v530_v58 = vrot.slane %v528_v44, 4  ;;  %vm9215_vm12 = vmmov %vm9214_vm6  ;;  %v553_v37 = vld [vmem:[%s8362_s5 + $0x50] sm:$0xf] }
  0x59   : > { %v8567_v55 = vld [vmem:[#allocation2 + $0x50] sm:$0xff]   ;;  %7312 = vmatprep.mubr.msk.bf16.mxu1 %vm9211_vm1, %v999_v51  ;;  %v534_v59 = vshll.u32 %v523_v32, 16  ;;  %v1007_v61 = vsel %vm9215_vm12, %v1002_v16, %v1006_v52  ;;  %vm9216_vm9 = vcmask 93184   ;;  %v538_v62 = vshrl.u32 %v523_v32, 16  ;;  %vm9217_vm6 = vmmov %vm9211_vm1  ;;  %v8683_v57 = vld [vmem:[%s9155_s1 + $0x10] sm:$0x3f]  }
  0x5a   : > { %518 = vst.msk [vmem:[#allocation2 + $0x5c] sm:$0xf] %vm9216_vm9, %v510_v47  ;;  %v547_v63 = vsel %vm8370_vm10, %v527_v27, %v546_v38  ;;  %v8008_v0 = vld [vmem:[#allocation2 + $0x50] sm:$0xff]   ;;  %v1008_v1 = vshrl.u32 %v8005_v28, 16  ;;  %v3405_v4 = vrot.slane %v8567_v55, 2  ;;  %v520_v5 = vsel %vm8391_vm14, %v511_v56, %v519_v42  ;;  %vm9220_vm9 = vmmov %vm9217_vm6  ;;  %v8016_v38 = vld [vmem:[#allocation2 + $0x28] sm:$0xff]  }
  0x5b   : > { %7313 = vmatmul.mubr.msk.bf16.gmra.mrb[12].mxu1 %vm9217_vm6, %v1007_v61  ;;  %v531_v7 = vor.u32 %v530_v58, %v527_v27  ;;  %v536_v8 = vrot.slane %v534_v59, 5  ;;  %548 = vst [vmem:[#allocation2 + $0x60] sm:$0x8] %v547_v63  ;;  %521 = vst [vmem:[#allocation2 + $0x60] sm:$0x7] %v520_v5  ;;  %v540_v13 = vrot.slane %v538_v62, 4 }
  0x5c   : > { %v1010_v14 = vor.u32 %v1008_v1, %v1006_v52  ;;  %v1012_v15 = vshll.u32 %v8008_v0, 16  ;;  %vm9218_vm1 = vcmask 1045504   ;;  %v1016_v18 = vshrl.u32 %v8008_v0, 16  ;;  %v8017_v55 = vld [vmem:[#allocation2 + $0x30] sm:$0xff]   ;;  %v8030_v12 = vld [vmem:[#allocation2 + $0x8] sm:$0xfe]  }
  0x5d   : > { %v3406_v50 = vsel %vm9218_vm1, %v3403_v34, %v3405_v4  ;;  %v532_v17 = vrot.slane %v531_v7, 4  ;;  %v3909_v21 = vshrl.u32 %v8010_v54, 16  ;;  %vm9219_vm12 = vmmov %vm9218_vm1  ;;  %vm3907_vm6 = vsmask.f32 5376  ;;  %v8025_v20 = vld [vmem:[#allocation2 + $0x50] sm:$0xff]  }
  0x5e   : > { %7937 = vmatprep.subr.msk.bf16.mxu0 %vm9219_vm12, %v8012_v10  ;;  %7465 = vmatmul.mubr.msk.bf16.gmra.mrb[12].mxu0 %vm9220_vm9, %v3406_v50  ;;  %v1014_v22 = vrot.slane %v1012_v15, 1  ;;  %v3912_v23 = vshll.u32 %v8010_v54, 16  ;;  %v3917_v25 = vshrl.u32 %v8011_v3, 16  ;;  %v541_v28 = vor.u32 %v540_v13, %v536_v8  ;;  %vm9223_vm12 = vmmov %vm9220_vm9 }
  0x5f   : > { %v537_v11 = vsel %vm8402_vm2, %v532_v17, %v536_v8  ;;  %v3911_v29 = vrot.slane %v3909_v21, 2  ;;  %v3920_v30 = vshll.u32 %v8011_v3, 16  ;;  %vm9221_vm1 = vcmask 93184   ;;  %v582_v21 = vld [vmem:[%s8362_s5 + $0x58] sm:$0xf] }
  0x60   : > { %549 = vst.msk [vmem:[#allocation2 + $0x64] sm:$0xf] %vm9221_vm1, %v537_v11  ;;  %vm9222_vm14 = vsmask.f32 7424  ;;  %v3914_v34 = vrot.slane %v3912_v23, 3  ;;  %v3919_v35 = vrot.slane %v3917_v25, 2  ;;  %v1018_v48 = vor.u32 %v1016_v18, %v1014_v22  ;;  %vm9226_vm1 = vmmov %vm9223_vm12 }
  0x61   : > { %v1015_v32 = vsel %vm9222_vm14, %v1010_v14, %v1014_v22  ;;  %v8006_v40 = vld [vmem:[#allocation2 + $0x58] sm:$0xff]   ;;  %v3922_v41 = vrot.slane %v3920_v30, 3  ;;  %v3926_v43 = vshrl.u32 %v8013_v26, 16  ;;  %v3929_v44 = vshll.u32 %v8013_v26, 16  ;;  %v554_v14 = vld [vmem:[%s8362_s5 + $0x54] sm:$0xf] }
  0x62   : > { %7316 = vmatprep.mubr.msk.bf16.mxu1 %vm9223_vm12, %v1015_v32  ;;  %v8009_v42 = vld [vmem:[#allocation2 + $0x58] sm:$0xff]   ;;  %vm9224_vm9 = vcmask 1045504   ;;  %v3407_v46 = vrot.slane %v8006_v40, 2  ;;  %v3915_v49 = vor.u32 %v3914_v34, %v3911_v29  ;;  %v542_v51 = vrot.slane %v541_v28, 4  ;;  %v583_v11 = vld [vmem:[%s8362_s5 + $0x5c] sm:$0xf] }
  0x63   : > { %v8593_v45 = vsel %vm9224_vm9, %v8012_v10, 0  ;;  %v1020_v16 = vshll.u32 %v8009_v42, 16  ;;  %v3923_v52 = vor.u32 %v3922_v41, %v3919_v35  ;;  %v3928_v27 = vrot.slane %v3926_v43, 2  ;;  %vm9225_vm14 = vmmov %vm9224_vm9  ;;  %v575_v10 = vld [vmem:[#allocation2 + $0x6c] sm:$0xf] }
  0x64   : > { %v3931_v54 = vrot.slane %v3929_v44, 3  ;;  %v3408_v47 = vsel %vm9225_vm14, %v3405_v4, %v3407_v46  ;;  %v1024_v56 = vshrl.u32 %v8009_v42, 16  ;;  %v551_v58 = vsel %vm8419_vm3, %v542_v51, %v550_v36  ;;  %vm9228_vm9 = vmmov %vm9226_vm1  ;;  %v579_v41 = vld [vmem:[#allocation2 + $0x74] sm:$0x1] }
  0x65   : > { %v556_v59 = vshrl.u32 %v553_v37, 16  ;;  %7468 = vmatprep.mubr.msk.bf16.mxu0 %vm9226_vm1, %v3408_v47  ;;  %v1022_v61 = vrot.slane %v1020_v16, 1  ;;  %552 = vst [vmem:[#allocation2 + $0x68] sm:$0xf] %v551_v58  ;;  %v559_v63 = vshll.u32 %v553_v37, 16  ;;  %v3935_v0 = vshrl.u32 %v8016_v38, 16 }
  0x66   : > { %v3932_v62 = vor.u32 %v3931_v54, %v3928_v27  ;;  %vm9227_vm12 = vsmask.f32 7424  ;;  %v3924_v4 = vsel %vm3907_vm6, %v3915_v49, %v3923_v52  ;;  %v3938_v17 = vshll.u32 %v8016_v38, 16  ;;  %v613_v38 = vld [vmem:[%s8362_s5 + $0x60] sm:$0xf] }
  0x67   : > { %v8599_v1 = vld [vmem:[#allocation2 + $0x60] sm:$0xff]   ;;  %v558_v3 = vrot.slane %v556_v59, 7  ;;  %v1023_v5 = vsel %vm9227_vm12, %v1018_v48, %v1022_v61  ;;  %v3937_v13 = vrot.slane %v3935_v0, 2  ;;  %v3944_v18 = vshrl.u32 %v8017_v55, 16  ;;  %vm9229_vm12 = vmmov %vm9226_vm1  ;;  %v606_v47 = vld [vmem:[#allocation2 + $0x74] sm:$0xe] }
  0x68   : > { %v8604_v7 = vsel %vm3907_vm6, %v3923_v52, %v3932_v62  ;;  %v8014_v8 = vld [vmem:[#allocation2 + $0x60] sm:$0xff]   ;;  %v3409_v15 = vrot.slane %v8599_v1, 2  ;;  %7317 = vmatmul.mubr.msk.bf16.gmra.mrb[16].mxu1 %vm9228_vm9, %v1023_v5  ;;  %v1026_v22 = vor.u32 %v1024_v56, %v1022_v61  ;;  %v3947_v26 = vshll.u32 %v8017_v55, 16 }
  0x69   : > { %v561_v50 = vor.u32 %v559_v63, %v558_v3  ;;  %v1028_v23 = vshll.u32 %v8014_v8, 16  ;;  %v1032_v25 = vshrl.u32 %v8014_v8, 16  ;;  %v3940_v30 = vrot.slane %v3938_v17, 3  ;;  %v8021_v63 = vld [vmem:[#allocation2 + $0x40] sm:$0xff]  }
  0x6a   : > { %v3410_v28 = vsel %vm9225_vm14, %v3407_v46, %v3409_v15  ;;  %v3946_v32 = vrot.slane %v3944_v18, 2  ;;  %v3949_v35 = vrot.slane %v3947_v26, 3  ;;  %v564_v36 = vshrl.u32 %v554_v14, 16  ;;  %v8020_v46 = vld [vmem:[#allocation2 + $0x38] sm:$0xff]   ;;  %vm9231_vm14 = vmmov %vm9226_vm1 }
  0x6b   : > { %v576_v29 = vsel %vm8429_vm4, %v561_v50, %v575_v10  ;;  %7469 = vmatmul.mubr.msk.bf16.gmra.mrb[16].mxu0 %vm9226_vm1, %v3410_v28  ;;  %v1030_v34 = vrot.slane %v1028_v23, 1  ;;  %v567_v37 = vshll.u32 %v554_v14, 16  ;;  %v3941_v40 = vor.u32 %v3940_v30, %v3937_v13  ;;  %v637_v13 = vld [vmem:[#allocation2 + $0x7c] sm:$0xc]  ;;  %v644_v30 = vld [vmem:[%s8362_s5 + $0x68] sm:$0xf] }
  0x6c   : > { %577 = vst [vmem:[#allocation2 + $0x6c] sm:$0xf] %v576_v29  ;;  %7490 = vmatprep.mubr.msk.bf16.mxu0 %vm9229_vm12, %v3924_v4  ;;  %v585_v42 = vshrl.u32 %v582_v21, 16  ;;  %v588_v43 = vshll.u32 %v582_v21, 16  ;;  %v594_v44 = vshrl.u32 %v583_v11, 16  ;;  %v562_v51 = vrot.slane %v558_v3, 4 }
  0x6d   : > { %vm9230_vm9 = vsmask.f32 7424  ;;  %v1034_v49 = vor.u32 %v1032_v25, %v1030_v34  ;;  %v566_v16 = vrot.slane %v564_v36, 7  ;;  %v3942_v52 = vsel %vm3907_vm6, %v3932_v62, %v3941_v40  ;;  %v610_v21 = vld [vmem:[#allocation2 + $0x7c] sm:$0x3] }
  0x6e   : > { %v1031_v48 = vsel %vm9230_vm9, %v1026_v22, %v1030_v34  ;;  %v3950_v27 = vor.u32 %v3949_v35, %v3946_v32  ;;  %v587_v54 = vrot.slane %v585_v42, 6  ;;  %v590_v55 = vrot.slane %v588_v43, 7  ;;  %v614_v25 = vld [vmem:[%s8362_s5 + $0x64] sm:$0xf]  ;;  %vm9233_vm9 = vmmov %vm9229_vm12 }
  0x6f   : > { %7320 = vmatprep.mubr.msk.bf16.mxu1 %vm9231_vm14, %v1031_v48  ;;  %v569_v56 = vor.u32 %v567_v37, %v566_v16  ;;  %v571_v58 = vrot.slane %v566_v16, 4  ;;  %v596_v59 = vrot.slane %v594_v44, 6  ;;  %v597_v61 = vshll.u32 %v583_v11, 16  ;;  %v645_v37 = vld [vmem:[%s8362_s5 + $0x6c] sm:$0xf]  ;;  %v8024_v48 = vld [vmem:[#allocation2 + $0x48] sm:$0xff]  }
  0x70   : > { %v591_v0 = vor.u32 %v590_v55, %v587_v54  ;;  %v616_v5 = vshrl.u32 %v613_v38, 16  ;;  %v619_v4 = vshll.u32 %v613_v38, 16  ;;  %v3953_v8 = vshrl.u32 %v8020_v46, 16 }
  0x71   : > { %v570_v3 = vsel %vm8451_vm7, %v562_v51, %v569_v56  ;;  %v580_v62 = vsel %vm8442_vm15, %v571_v58, %v579_v41  ;;  %v599_v10 = vrot.slane %v597_v61, 7  ;;  %v3956_v14 = vshll.u32 %v8020_v46, 16  ;;  %v668_v58 = vld [vmem:[#allocation2 + $0x84] sm:$0x8] }
  0x72   : > { %vm9232_vm1 = vcmask 93184   ;;  %581 = vst [vmem:[#allocation2 + $0x74] sm:$0x1] %v580_v62  ;;  %v607_v17 = vsel %vm9204_vm8, %v591_v0, %v606_v47  ;;  %v592_v18 = vrot.slane %v591_v0, 4  ;;  %v618_v22 = vrot.slane %v616_v5, 5 }
  0x73   : > { %v8015_v50 = vld [vmem:[#allocation2 + $0x68] sm:$0xff]   ;;  %578 = vst.msk [vmem:[#allocation2 + $0x70] sm:$0xf] %vm9232_vm1, %v570_v3  ;;  %v621_v23 = vrot.slane %v619_v4, 6  ;;  %7491 = vmatmul.mubr.msk.bf16.vlgmr.msra.gmra.mrb[0].mxu0 %vm9229_vm12, %v8604_v7  ;;  %608 = vst [vmem:[#allocation2 + $0x74] sm:$0xe] %v607_v17  ;;  %v600_v26 = vor.u32 %v599_v10, %v596_v59  ;;  %v3951_v38 = vsel %vm3907_vm6, %v3941_v40, %v3950_v27 }
  0x74   : > { %v3955_v11 = vrot.slane %v3953_v8, 2  ;;  %v3958_v28 = vrot.slane %v3956_v14, 3  ;;  %v3962_v29 = vshrl.u32 %v8021_v63, 16  ;;  %7527 = vmatpush3.bf16.msra.mxu0 %v8593_v45  ;;  %v1036_v32 = vshll.u32 %v8015_v50, 16  ;;  %7494 = vmatprep.mubr.msk.bf16.mxu0 %vm9233_vm9, %v3942_v52  ;;  %vm9234_vm14 = vmmov %vm9232_vm1  ;;  %v641_v8 = vld [vmem:[#allocation2 + $0x84] sm:$0x7] }
  0x75   : > { %v1040_v34 = vshrl.u32 %v8015_v50, 16  ;;  %v622_v35 = vor.u32 %v621_v23, %v618_v22  ;;  %v3965_v36 = vshll.u32 %v8021_v63, 16  ;;  %v601_v7 = vsel %vm8480_vm5, %v592_v18, %v600_v26  ;;  %vm9237_vm12 = vmmov %vm9233_vm9  ;;  %v675_v50 = vld [vmem:[%s8362_s5 + $0x70] sm:$0xf] }
  0x76   : > { %v602_v41 = vrot.slane %v600_v26, 4  ;;  %v3959_v42 = vor.u32 %v3958_v28, %v3955_v11  ;;  %v1038_v43 = vrot.slane %v1036_v32, 1  ;;  %609 = vst.msk [vmem:[#allocation2 + $0x78] sm:$0xf] %vm9234_vm14, %v601_v7  ;;  %v3964_v44 = vrot.slane %v3962_v29, 2 }
  0x77   : > { %v638_v45 = vsel %vm8376_vm11, %v622_v35, %v637_v13  ;;  %v3967_v46 = vrot.slane %v3965_v36, 3  ;;  %v623_v16 = vrot.slane %v622_v35, 4  ;;  %v625_v40 = vshrl.u32 %v614_v25, 16  ;;  %vm9236_vm11 = vmmov %vm9233_vm9  ;;  %v672_v11 = vld [vmem:[#allocation2 + $0x8c] sm:$0xf] }
  0x78   : > { %v611_v51 = vsel %vm8491_vm0, %v602_v41, %v610_v21  ;;  %639 = vst [vmem:[#allocation2 + $0x7c] sm:$0xc] %v638_v45  ;;  %v628_v52 = vshll.u32 %v614_v25, 16  ;;  %vm9235_vm1 = vsmask.f32 7424  ;;  %v1042_v55 = vor.u32 %v1040_v34, %v1038_v43 }
  0x79   : > { %v1039_v54 = vsel %vm9235_vm1, %v1034_v49, %v1038_v43  ;;  %612 = vst [vmem:[#allocation2 + $0x7c] sm:$0x3] %v611_v51  ;;  %v3960_v47 = vsel %vm3907_vm6, %v3950_v27, %v3959_v42  ;;  %v647_v56 = vshll.u32 %v644_v30, 16  ;;  %v627_v59 = vrot.slane %v625_v40, 5  ;;  %v676_v35 = vld [vmem:[%s8362_s5 + $0x74] sm:$0xf] }
  0x7a   : > { %7321 = vmatmul.mubr.msk.bf16.gmra.mrb[20].mxu1 %vm9236_vm11, %v1039_v54  ;;  %v630_v61 = vrot.slane %v628_v52, 6  ;;  %v650_v63 = vshrl.u32 %v644_v30, 16  ;;  %v656_v0 = vshll.u32 %v645_v37, 16  ;;  %v8018_v5 = vld [vmem:[#allocation2 + $0x70] sm:$0xff]   ;;  %v3968_v4 = vor.u32 %v3967_v46, %v3964_v44  ;;  %v8028_v44 = vld [vmem:[#allocation2 + $0x58] sm:$0xff]   ;;  %vm9241_vm11 = vmmov %vm9234_vm14 }
  0x7b   : > { %v649_v3 = vrot.slane %v647_v56, 5  ;;  %v660_v62 = vshrl.u32 %v645_v37, 16  ;;  %v3971_v49 = vshrl.u32 %v8024_v48, 16  ;;  %7495 = vmatmul.mubr.msk.bf16.gmra.mrb[4].mxu0 %vm9237_vm12, %v3951_v38  ;;  %v3974_v14 = vshll.u32 %v8024_v48, 16  ;;  %vm9242_vm12 = vmmov %vm9233_vm9 }
  0x7c   : > { %v631_v10 = vor.u32 %v630_v61, %v627_v59  ;;  %v652_v27 = vrot.slane %v650_v63, 4  ;;  %v658_v13 = vrot.slane %v656_v0, 5  ;;  %v1044_v17 = vshll.u32 %v8018_v5, 16  ;;  %7498 = vmatprep.mubr.msk.bf16.mxu0 %vm9233_vm9, %v3960_v47  ;;  %v701_v61 = vld [vmem:[#allocation2 + $0x98] sm:$0x1] }
  0x7d   : > { %v1048_v18 = vshrl.u32 %v8018_v5, 16  ;;  %v669_v21 = vsel %vm8370_vm10, %v649_v3, %v668_v58  ;;  %v662_v22 = vrot.slane %v660_v62, 4  ;;  %v3973_v28 = vrot.slane %v3971_v49, 2 }
  0x7e   : > { %v632_v23 = vsel %vm8382_vm13, %v623_v16, %v631_v10  ;;  %v633_v25 = vrot.slane %v631_v10, 4  ;;  %670 = vst [vmem:[#allocation2 + $0x84] sm:$0x8] %v669_v21  ;;  %v653_v26 = vor.u32 %v652_v27, %v649_v3  ;;  %v1046_v29 = vrot.slane %v1044_v17, 1  ;;  %vm9240_vm13 = vmmov %vm9233_vm9  ;;  %v8029_v16 = vld [vmem:[#allocation2 + $0x60] sm:$0xff]   ;;  %v8034_v17 = vld [vmem:[#allocation2 + $0x68] sm:$0xff]  }
  0x7f   : > { %640 = vst.msk [vmem:[#allocation2 + $0x80] sm:$0xf] %vm9234_vm14, %v632_v23  ;;  %v663_v30 = vor.u32 %v662_v22, %v658_v13  ;;  %v3976_v32 = vrot.slane %v3974_v14, 3  ;;  %v3980_v34 = vshrl.u32 %v8025_v20, 16  ;;  %vm9238_vm1 = vnez %v9172_v31 }
  0x80   : > { %v8019_v36 = vld [vmem:[#allocation2 + $0x78] sm:$0xff]   ;;  %v642_v19 = vsel %vm9238_vm1, %v633_v25, %v641_v8  ;;  %v654_v37 = vrot.slane %v653_v26, 4  ;;  %v3983_v38 = vshll.u32 %v8025_v20, 16  ;;  %v678_v24 = vshrl.u32 %v675_v50, 16 }
  0x81   : > { %vm9239_vm10 = vsmask.f32 7424  ;;  %v3969_v41 = vsel %vm3907_vm6, %v3959_v42, %v3968_v4  ;;  %643 = vst [vmem:[#allocation2 + $0x84] sm:$0x7] %v642_v19  ;;  %v664_v43 = vrot.slane %v663_v30, 4  ;;  %v3977_v45 = vor.u32 %v3976_v32, %v3973_v28  ;;  %v8035_v30 = vld [vmem:[#allocation2 + $0x70] sm:$0xff]  }
  0x82   : > { %v1047_v7 = vsel %vm9239_vm10, %v1042_v55, %v1046_v29  ;;  %v1050_v46 = vor.u32 %v1048_v18, %v1046_v29  ;;  %v1052_v48 = vshll.u32 %v8019_v36, 16  ;;  %v659_v51 = vsel %vm8402_vm2, %v654_v37, %v658_v13  ;;  %vm9243_vm2 = vmmov %vm9233_vm9  ;;  %v8678_v29 = vld [vmem:[#allocation2 + $0x10] sm:$0xff]  }
  0x83   : > { %7324 = vmatprep.mubr.msk.bf16.mxu1 %vm9240_vm13, %v1047_v7  ;;  %v3982_v31 = vrot.slane %v3980_v34, 2  ;;  %671 = vst.msk [vmem:[#allocation2 + $0x88] sm:$0xf] %vm9241_vm11, %v659_v51  ;;  %v673_v40 = vsel %vm8419_vm3, %v664_v43, %v672_v11  ;;  %v3978_v42 = vsel %vm3907_vm6, %v3968_v4, %v3977_v45  ;;  %v3985_v52 = vrot.slane %v3983_v38, 3  ;;  %7499 = vmatmul.mubr.msk.bf16.gmra.mrb[8].mxu0 %vm9242_vm12, %v3969_v41  ;;  %vm9244_vm3 = vmmov %vm9239_vm10  ;;  %v8038_v38 = vld [vmem:[#allocation2 + $0x78] sm:$0xff]  }
  0x84   : > { %v680_v54 = vrot.slane %v678_v24, 7  ;;  %v1054_v55 = vrot.slane %v1052_v48, 1  ;;  %674 = vst [vmem:[#allocation2 + $0x8c] sm:$0xf] %v673_v40  ;;  %v681_v47 = vshll.u32 %v675_v50, 16  ;;  %v686_v56 = vshrl.u32 %v676_v35, 16  ;;  %7502 = vmatprep.mubr.msk.bf16.mxu0 %vm9243_vm2, %v3978_v42  ;;  %vm9245_vm9 = vmmov %vm9243_vm2 }
  0x85   : > { %v689_v58 = vshll.u32 %v676_v35, 16  ;;  %v1056_v20 = vshrl.u32 %v8019_v36, 16  ;;  %v3986_v59 = vor.u32 %v3985_v52, %v3982_v31  ;;  %v3989_v63 = vshrl.u32 %v8028_v44, 16  ;;  %vm9249_vm14 = vmmov %vm9243_vm2 }
  0x86   : > { %v3992_v53 = vshll.u32 %v8028_v44, 16  ;;  %v1055_v0 = vsel %vm9244_vm3, %v1050_v46, %v1054_v55  ;;  %v683_v5 = vor.u32 %v681_v47, %v680_v54  ;;  %v684_v4 = vrot.slane %v680_v54, 4  ;;  %vm9250_vm1 = vmmov %vm9244_vm3 }
  0x87   : > { %v688_v8 = vrot.slane %v686_v56, 7  ;;  %7325 = vmatmul.mubr.msk.bf16.gmra.mrb[24].mxu1 %vm9245_vm9, %v1055_v0  ;;  %v3991_v3 = vrot.slane %v3989_v63, 2  ;;  %v3998_v49 = vshrl.u32 %v8029_v16, 16  ;;  %v4001_v50 = vshll.u32 %v8029_v16, 16  ;;  %vm9251_vm13 = vmmov %vm9243_vm2 }
  0x88   : > { %v3994_v62 = vrot.slane %v3992_v53, 3  ;;  %v8022_v10 = vld [vmem:[#allocation2 + $0x80] sm:$0xff]   ;;  %v698_v13 = vsel %vm8429_vm4, %v683_v5, %v697_v39  ;;  %v1058_v18 = vor.u32 %v1056_v20, %v1054_v55  ;;  %v3987_v21 = vsel %vm3907_vm6, %v3977_v45, %v3986_v59  ;;  %vm9246_vm4 = vmmov %vm9241_vm11 }
  0x89   : > { %v691_v27 = vor.u32 %v689_v58, %v688_v8  ;;  %v693_v14 = vrot.slane %v688_v8, 4  ;;  %699 = vst [vmem:[#allocation2 + $0x90] sm:$0xf] %v698_v13  ;;  %v4000_v23 = vrot.slane %v3998_v49, 2  ;;  %v1060_v25 = vshll.u32 %v8022_v10, 16  ;;  %v8039_v16 = vld [vmem:[#allocation2 + $0x80] sm:$0xff]   ;;  %vm9252_vm11 = vmmov %vm9250_vm1 }
  0x8a   : > { %v3995_v22 = vor.u32 %v3994_v62, %v3991_v3  ;;  %v1064_v26 = vshrl.u32 %v8022_v10, 16  ;;  %v4003_v35 = vrot.slane %v4001_v50, 3  ;;  %v4007_v9 = vshrl.u32 %v8034_v17, 16  ;;  %vm9253_vm12 = vmmov %vm9243_vm2  ;;  %v8032_v13 = vld [vmem:[#allocation2 + $0x18] sm:$0xff]  }
  0x8b   : > { %v692_v11 = vsel %vm8451_vm7, %v684_v4, %v691_v27  ;;  %v702_v28 = vsel %vm8442_vm15, %v693_v14, %v701_v61  ;;  %v8023_v32 = vld [vmem:[#allocation2 + $0x88] sm:$0xff]   ;;  %v1062_v36 = vrot.slane %v1060_v25, 1  ;;  %vm9247_vm7 = vmmov %vm9243_vm2  ;;  %vm9248_vm15 = vcmask 1045504  }
  0x8c   : > { %700 = vst.msk [vmem:[#allocation2 + $0x94] sm:$0xf] %vm9246_vm4, %v692_v11  ;;  %703 = vst [vmem:[#allocation2 + $0x98] sm:$0x1] %v702_v28  ;;  %v3996_v34 = vsel %vm3907_vm6, %v3986_v59, %v3995_v22  ;;  %7503 = vmatmul.mubr.msk.bf16.gmra.mrb[12].mxu0 %vm9247_vm7, %v3987_v21  ;;  %7932 = vmatprep.subr.msk.bf16.mxu1 %vm9248_vm15, %v8683_v57  ;;  %v1068_v19 = vshll.u32 %v8023_v32, 16  ;;  %v4004_v37 = vor.u32 %v4003_v35, %v4000_v23  ;;  %vm1570_vm10 = vcmask 1046528  }
  0x8d   : > { %7506 = vmatprep.mubr.msk.bf16.mxu0 %vm9249_vm14, %v3996_v34  ;;  %v1063_v24 = vsel %vm9250_vm1, %v1058_v18, %v1062_v36  ;;  %v1066_v7 = vor.u32 %v1064_v26, %v1062_v36  ;;  %v1072_v43 = vshrl.u32 %v8023_v32, 16  ;;  %v4009_v45 = vrot.slane %v4007_v9, 2  ;;  %v8042_v8 = vld [vmem:[#allocation2 + $0x88] sm:$0xff]   ;;  %vm9254_vm3 = vmmov %vm9243_vm2  ;;  %v8706_v23 = vld [vmem:[#allocation2 + $0x20] sm:$0xff]  }
  0x8e   : > { %7328 = vmatprep.mubr.msk.bf16.mxu1 %vm9251_vm13, %v1063_v24  ;;  %v1070_v41 = vrot.slane %v1068_v19, 1  ;;  %v4010_v44 = vshll.u32 %v8034_v17, 16  ;;  %v1571_v46 = vrot.slane %v8030_v12, 1  ;;  %v1572_v48 = vrot.slane %v8678_v29, 1  ;;  %vm9255_vm9 = vmmov %vm9250_vm1  ;;  %v8037_v24 = vld [vmem:[#allocation2 + $0x28] sm:$0xff]  }
  0x8f   : > { %v4016_v51 = vshrl.u32 %v8035_v30, 16  ;;  %v4019_v31 = vshll.u32 %v8035_v30, 16  ;;  %v4005_v42 = vsel %vm3907_vm6, %v3995_v22, %v4004_v37  ;;  %v4025_v54 = vshrl.u32 %v8038_v38, 16  ;;  %vm9256_vm4 = vmmov %vm9243_vm2 }
  0x90   : > { %v1071_v40 = vsel %vm9252_vm11, %v1066_v7, %v1070_v41  ;;  %v4012_v52 = vrot.slane %v4010_v44, 3  ;;  %v1074_v56 = vor.u32 %v1072_v43, %v1070_v41  ;;  %v4028_v53 = vshll.u32 %v8038_v38, 16  ;;  %vm9257_vm7 = vmmov %vm9250_vm1  ;;  %v705_v38 = vld [vmem:[%s8362_s5 + $0x7c] sm:$0xf] }
  0x91   : > { %7329 = vmatmul.mubr.msk.bf16.gmra.mrb[28].mxu1 %vm9253_vm12, %v1071_v40  ;;  %v4018_v47 = vrot.slane %v4016_v51, 2  ;;  %v4021_v20 = vrot.slane %v4019_v31, 3  ;;  %v4027_v63 = vrot.slane %v4025_v54, 2  ;;  %v4034_v49 = vshrl.u32 %v8039_v16, 16  ;;  %vm9258_vm15 = vmmov %vm9243_vm2  ;;  %v8722_v51 = vld [vmem:[#allocation2 + $0x30] sm:$0xff]  }
  0x92   : > { %v4013_v39 = vor.u32 %v4012_v52, %v4009_v45  ;;  %v4030_v62 = vrot.slane %v4028_v53, 3  ;;  %v4037_v10 = vshll.u32 %v8039_v16, 16  ;;  %v1573_v21 = vsel %vm1570_vm10, %v1571_v46, %v1572_v48  ;;  %vm9259_vm14 = vmmov %vm9243_vm2  ;;  %v728_v40 = vld [vmem:[#allocation2 + $0x98] sm:$0xe] }
  0x93   : > { %v8026_v55 = vld [vmem:[#allocation2 + $0x90] sm:$0xff]   ;;  %v8027_v58 = vld [vmem:[#allocation2 + $0x98] ss:$0 sps:$4 sm:$0x11]   ;;  %v4022_v4 = vor.u32 %v4021_v20, %v4018_v47  ;;  %v4043_v25 = vshrl.u32 %v8042_v8, 16  ;;  %v4046_v26 = vshll.u32 %v8042_v8, 16  ;;  %vm9260_vm1 = vmmov %vm9243_vm2 }
  0x94   : > { %v1076_v59 = vshll.u32 %v8026_v55, 16  ;;  %v1080_v61 = vshrl.u32 %v8026_v55, 16  ;;  %7507 = vmatmul.mubr.msk.bf16.gmra.mrb[16].mxu0 %vm9243_vm2, %v4005_v42  ;;  %v1084_v0 = vshll.u32 %v8027_v58, 16  ;;  %v4014_v5 = vsel %vm3907_vm6, %v4004_v37, %v4013_v39  ;;  %v8043_v18 = vld [vmem:[#allocation2 + $0x90] sm:$0xff]   ;;  %vm9261_vm13 = vmmov %vm9260_vm1  ;;  %v732_v20 = vld [vmem:[#allocation2 + $0xa0] sm:$0x3] }
  0x95   : > { %7510 = vmatprep.mubr.msk.bf16.mxu0 %vm9254_vm3, %v4014_v5  ;;  %v4031_v17 = vor.u32 %v4030_v62, %v4027_v63  ;;  %v4023_v22 = vsel %vm3907_vm6, %v4013_v39, %v4022_v4  ;;  %v4036_v30 = vrot.slane %v4034_v49, 2  ;;  %v4039_v32 = vrot.slane %v4037_v10, 3  ;;  %v704_v37 = vld [vmem:[%s8362_s5 + $0x78] sm:$0xf]  ;;  %vm9263_vm12 = vmmov %vm9260_vm1  ;;  %v8044_v49 = vld [vmem:[#allocation2 + $0x40] sm:$0xff]  }
  0x96   : > { %v1078_v3 = vrot.slane %v1076_v59, 1  ;;  %v1086_v27 = vrot.slane %v1084_v0, 1  ;;  %v1574_v34 = vrot.slane %v8032_v13, 1  ;;  %v4045_v35 = vrot.slane %v4043_v25, 2  ;;  %v8051_v59 = vld [vmem:[#allocation2 + $0x20] sm:$0xff]   ;;  %vm9264_vm2 = vmmov %vm9260_vm1 }
  0x97   : > { %v4032_v28 = vsel %vm3907_vm6, %v4022_v4, %v4031_v17  ;;  %v4048_v12 = vrot.slane %v4046_v26, 3  ;;  %v4052_v36 = vshrl.u32 %v8043_v18, 16  ;;  %v1576_v9 = vrot.slane %v8706_v23, 1  ;;  %vm9265_vm3 = vmmov %vm9260_vm1  ;;  %v8050_v4 = vld [vmem:[#allocation2 + $0x18] sm:$0xfc]   ;;  %v8056_v26 = vld [vmem:[#allocation2 + $0x30] sm:$0xff]  }
  0x98   : > { %v1079_v14 = vsel %vm9255_vm9, %v1074_v56, %v1078_v3  ;;  %v1082_v50 = vor.u32 %v1080_v61, %v1078_v3  ;;  %v4055_v19 = vshll.u32 %v8043_v18, 16  ;;  %v4040_v7 = vor.u32 %v4039_v32, %v4036_v30  ;;  %v8736_v8 = vld [vmem:[%s9155_s1 + $0x38] sm:$0x3f]   ;;  %vm9266_vm9 = vmmov %vm9260_vm1  ;;  %v8045_v30 = vld [vmem:[#allocation2 + $0x48] sm:$0xff]  }
  0x99   : > { %7332 = vmatprep.mubr.msk.bf16.mxu1 %vm9256_vm4, %v1079_v14  ;;  %v707_v41 = vshrl.u32 %v704_v37, 16  ;;  %v710_v43 = vshll.u32 %v704_v37, 16  ;;  %v716_v45 = vshrl.u32 %v705_v38, 16  ;;  %v1575_v44 = vsel %vm1570_vm10, %v1572_v48, %v1574_v34 }
  0x9a   : > { %v1087_v11 = vsel %vm9257_vm7, %v1082_v50, %v1086_v27  ;;  %vm9262_vm11 = vcmask 1045504   ;;  %v4049_v31 = vor.u32 %v4048_v12, %v4045_v35  ;;  %v719_v16 = vshll.u32 %v705_v38, 16  ;;  %vm9270_vm7 = vmmov %vm9260_vm1 }
  0x9b   : > { %7333 = vmatmul.mubr.msk.bf16.gmra.mrb[32].mxu1 %vm9258_vm15, %v1087_v11  ;;  %v2319_v46 = vsel %vm9262_vm11, %v8683_v57, 0  ;;  %v4054_v42 = vrot.slane %v4052_v36, 2  ;;  %v709_v52 = vrot.slane %v707_v41, 6  ;;  %v712_v54 = vrot.slane %v710_v43, 7  ;;  %vm9268_vm4 = vmmov %vm9262_vm11 }
  0x9c   : > { %7338 = vmatprep.mubr.msk.bf16.mxu1 %vm9259_vm14, %v1573_v21  ;;  %7511 = vmatmul.mubr.msk.bf16.gmra.mrb[20].mxu0 %vm9260_vm1, %v4023_v22  ;;  %v718_v55 = vrot.slane %v716_v45, 6  ;;  %v1577_v47 = vsel %vm1570_vm10, %v1574_v34, %v1576_v9  ;;  %v4057_v56 = vrot.slane %v4055_v19, 3  ;;  %v721_v58 = vrot.slane %v719_v16, 7  ;;  %v8053_v21 = vld [vmem:[#allocation2 + $0x28] sm:$0xff]   ;;  %v8048_v34 = vld [vmem:[#allocation2 + $0x50] sm:$0xff]  }
  0x9d   : > { %7514 = vmatprep.mubr.msk.bf16.mxu0 %vm9261_vm13, %v4032_v28  ;;  %v4041_v29 = vsel %vm3907_vm6, %v4031_v17, %v4040_v7  ;;  %v713_v39 = vor.u32 %v712_v54, %v709_v52  ;;  %v4050_v57 = vsel %vm3907_vm6, %v4040_v7, %v4049_v31  ;;  %v1578_v61 = vrot.slane %v8037_v24, 1  ;;  %7938 = vmatprep.subr.msk.bf16.mxu0 %vm9268_vm4, %v8736_v8 }
  0x9e   : > { %v722_v48 = vor.u32 %v721_v58, %v718_v55  ;;  %v1580_v0 = vrot.slane %v8722_v51, 1  ;;  %v4058_v3 = vor.u32 %v4057_v56, %v4054_v42  ;;  %v4567_v13 = vshrl.u32 %v8051_v59, 16  ;;  %v8060_v55 = vld [vmem:[#allocation2 + $0x40] sm:$0xff]  }
  0x9f   : > { %v714_v63 = vrot.slane %v713_v39, 4  ;;  %v729_v53 = vsel %vm9204_vm8, %v713_v39, %v728_v40  ;;  %vm9267_vm8 = vcmask 93184   ;;  %v1579_v27 = vsel %vm1570_vm10, %v1576_v9, %v1578_v61  ;;  %v8057_v40 = vld [vmem:[#allocation2 + $0x38] sm:$0xff]  }
  0xa0   : > { %730 = vst [vmem:[#allocation2 + $0x98] sm:$0xe] %v729_v53  ;;  %v724_v5 = vrot.slane %v722_v48, 4  ;;  %v4570_v14 = vshll.u32 %v8051_v59, 16  ;;  %v1581_v50 = vsel %vm1570_vm10, %v1578_v61, %v1580_v0  ;;  %v4559_v17 = vshrl.u32 %v8050_v4, 16  ;;  %v8049_v61 = vld [vmem:[#allocation2 + $0x58] sm:$0xff]  }
  0xa1   : > { %v723_v62 = vsel %vm8480_vm5, %v714_v63, %v722_v48  ;;  %v4562_v60 = vshll.u32 %v8050_v4, 16  ;;  %v4059_v18 = vsel %vm3907_vm6, %v4049_v31, %v4058_v3  ;;  %vm9269_vm5 = vmmov %vm9260_vm1  ;;  %v1582_v6 = vrot.slane %v8041_v33, 1  ;;  %v8054_v63 = vld [vmem:[#allocation2 + $0x60] sm:$0xff]  }
  0xa2   : > { %731 = vst.msk [vmem:[#allocation2 + $0x9c] sm:$0xf] %vm9267_vm8, %v723_v62  ;;  %v733_v10 = vsel %vm8491_vm0, %v724_v5, %v732_v20  ;;  %v1584_v22 = vrot.slane %v8044_v49, 1  ;;  %v4569_v23 = vrot.slane %v4567_v13, 2  ;;  %v4572_v25 = vrot.slane %v4570_v14, 3  ;;  %vm9271_vm0 = vmmov %vm9260_vm1  ;;  %v8061_v49 = vld [vmem:[#allocation2 + $0x48] sm:$0xff]  }
  0xa3   : > { %7339 = vmatmul.mubr.msk.bf16.vlgmr.msra.gmra.mrb[0].mxu1 %vm9263_vm12, %v1575_v44  ;;  %734 = vst [vmem:[#allocation2 + $0xa0] sm:$0x3] %v733_v10  ;;  %v4561_v11 = vrot.slane %v4559_v17, 2  ;;  %v4564_v28 = vrot.slane %v4562_v60, 3  ;;  %v4576_v35 = vshrl.u32 %v8053_v21, 16  ;;  %v4579_v36 = vshll.u32 %v8053_v21, 16  ;;  %vm9272_vm15 = vmmov %vm9271_vm0 }
  0xa4   : > { %7375 = vmatpush3.bf16.msra.mxu1 %v2319_v46  ;;  %7342 = vmatprep.mubr.msk.bf16.mxu1 %vm9264_vm2, %v1577_v47  ;;  %v1583_v9 = vsel %vm1570_vm10, %v1580_v0, %v1582_v6  ;;  %v1585_v19 = vsel %vm1570_vm10, %v1582_v6, %v1584_v22  ;;  %v4573_v43 = vor.u32 %v4572_v25, %v4569_v23  ;;  %v4585_v46 = vshrl.u32 %v8056_v26, 16  ;;  %vm9273_vm14 = vmmov %vm9271_vm0  ;;  %v8064_v6 = vld [vmem:[#allocation2 + $0x50] sm:$0xff]   ;;  %v8055_v23 = vld [vmem:[#allocation2 + $0x68] sm:$0xff]  }
  0xa5   : > { %7515 = vmatmul.mubr.msk.bf16.gmra.mrb[24].mxu0 %vm9265_vm3, %v4041_v29  ;;  %v4565_v41 = vor.u32 %v4564_v28, %v4561_v11  ;;  %v4588_v51 = vshll.u32 %v8056_v26, 16  ;;  %v1586_v42 = vrot.slane %v8045_v30, 1  ;;  %v1588_v54 = vrot.slane %v8048_v34, 1  ;;  %vm9274_vm1 = vmmov %vm9271_vm0  ;;  %v8058_v25 = vld [vmem:[#allocation2 + $0x70] sm:$0xff]  }
  0xa6   : > { %7518 = vmatprep.mubr.msk.bf16.mxu0 %vm9266_vm9, %v4050_v57  ;;  %v4578_v56 = vrot.slane %v4576_v35, 2  ;;  %v4581_v58 = vrot.slane %v4579_v36, 3  ;;  %v4587_v57 = vrot.slane %v4585_v46, 2  ;;  %vm9275_vm13 = vmmov %vm9271_vm0  ;;  %v4594_v5 = vshrl.u32 %v8057_v40, 16  ;;  %v8062_v46 = vld [vmem:[#allocation2 + $0x80] sm:$0xff]  }
  0xa7   : > { %v4574_v39 = vsel %vm3907_vm6, %v4565_v41, %v4573_v43  ;;  %v4590_v48 = vrot.slane %v4588_v51, 3  ;;  %v1587_v59 = vsel %vm1570_vm10, %v1584_v22, %v1586_v42  ;;  %v1589_v53 = vsel %vm1570_vm10, %v1586_v42, %v1588_v54  ;;  %vm9276_vm11 = vmmov %vm9271_vm0 }
  0xa8   : > { %v4582_v0 = vor.u32 %v4581_v58, %v4578_v56  ;;  %v4597_v4 = vshll.u32 %v8057_v40, 16  ;;  %v4603_v62 = vshrl.u32 %v8060_v55, 16  ;;  %v4606_v33 = vshll.u32 %v8060_v55, 16  ;;  %vm9277_vm12 = vmmov %vm9271_vm0 }
  0xa9   : > { %v8046_v32 = vld [vmem:[#allocation2 + $0x98] sm:$0xff]   ;;  %vm9278_vm2 = vmmov %vm9271_vm0  ;;  %v1590_v10 = vrot.slane %v8049_v61, 1  ;;  %v4596_v14 = vrot.slane %v4594_v5, 2  ;;  %v4612_v28 = vshrl.u32 %v8061_v49, 16  ;;  %v4615_v30 = vshll.u32 %v8061_v49, 16 }
  0xaa   : > { %v8047_v12 = vld [vmem:[#allocation2 + $0xa0] ss:$0 sps:$4 sm:$0x77]   ;;  %v4061_v37 = vshrl.u32 %v8046_v32, 16  ;;  %v4064_v38 = vshll.u32 %v8046_v32, 16  ;;  %v4583_v13 = vsel %vm3907_vm6, %v4573_v43, %v4582_v0  ;;  %vm9279_vm3 = vmmov %vm9268_vm4  ;;  %v4608_v21 = vrot.slane %v4606_v33, 3 }
  0xab   : > { %7343 = vmatmul.mubr.msk.bf16.gmra.mrb[4].mxu1 %vm9269_vm5, %v1579_v27  ;;  %v4070_v24 = vshrl.u32 %v8047_v12, 16  ;;  %v4073_v7 = vshll.u32 %v8047_v12, 16  ;;  %v1592_v27 = vrot.slane %v8054_v63, 1  ;;  %v5306_v17 = vsel %vm9279_vm3, %v8736_v8, 0  ;;  %vm9280_vm9 = vmmov %vm9271_vm0  ;;  %v8777_v8 = vld [vmem:[%s9155_s1 + $0x18] sm:$0x3f]  }
  0xac   : > { %7346 = vmatprep.mubr.msk.bf16.mxu1 %vm9270_vm7, %v1581_v50  ;;  %v4063_v45 = vrot.slane %v4061_v37, 2  ;;  %v4066_v44 = vrot.slane %v4064_v38, 3  ;;  %v4599_v50 = vrot.slane %v4597_v4, 3  ;;  %v1591_v22 = vsel %vm1570_vm10, %v1588_v54, %v1590_v10  ;;  %vm9281_vm8 = vmmov %vm9271_vm0  ;;  %v8068_v43 = vld [vmem:[#allocation2 + $0x60] sm:$0xff]  }
  0xad   : > { %7519 = vmatmul.mubr.msk.bf16.gmra.mrb[28].mxu0 %vm9271_vm0, %v4059_v18  ;;  %v4072_v31 = vrot.slane %v4070_v24, 2  ;;  %v4075_v16 = vrot.slane %v4073_v7, 3  ;;  %v4605_v18 = vrot.slane %v4603_v62, 2  ;;  %v1593_v26 = vsel %vm1570_vm10, %v1590_v10, %v1592_v27  ;;  %vm9282_vm4 = vmmov %vm9271_vm0  ;;  %v8072_v62 = vld [vmem:[#allocation2 + $0x18] sm:$0xff]   ;;  %v8070_v10 = vld [vmem:[#allocation2 + $0x8] sm:$0xfe]  }
  0xae   : > { %v4067_v52 = vor.u32 %v4066_v44, %v4063_v45  ;;  %v4600_v11 = vor.u32 %v4599_v50, %v4596_v14  ;;  %v4621_v34 = vshrl.u32 %v8064_v6, 16  ;;  %v4624_v35 = vshll.u32 %v8064_v6, 16  ;;  %vm9283_vm5 = vmmov %vm9279_vm3  ;;  %v8059_v44 = vld [vmem:[#allocation2 + $0x78] sm:$0xff]  }
  0xaf   : > { %v4076_v47 = vor.u32 %v4075_v16, %v4072_v31  ;;  %v4609_v32 = vor.u32 %v4608_v21, %v4605_v18  ;;  %7933 = vmatprep.subr.msk.bf16.mxu1 %vm9283_vm5, %v8777_v8  ;;  %vm9284_vm7 = vmmov %vm9271_vm0  ;;  %v1594_v12 = vrot.slane %v8055_v23, 1  ;;  %v1596_v36 = vrot.slane %v8058_v25, 1  ;;  %v8078_v21 = vld [vmem:[#allocation2 + $0x80] sm:$0xff]  }
  0xb0   : > { %v4068_v29 = vsel %vm3907_vm6, %v4058_v3, %v4067_v52  ;;  %v4591_v3 = vor.u32 %v4590_v48, %v4587_v57  ;;  %v4614_v37 = vrot.slane %v4612_v28, 2  ;;  %v4617_v38 = vrot.slane %v4615_v30, 3  ;;  %vm9292_vm3 = vmmov %vm9271_vm0 }
  0xb1   : > { %7522 = vmatprep.mubr.msk.bf16.mxu0 %vm9274_vm1, %v4068_v29  ;;  %v4077_v20 = vsel %vm3907_vm6, %v4067_v52, %v4076_v47  ;;  %v4610_v24 = vsel %vm3907_vm6, %v4600_v11, %v4609_v32  ;;  %v4623_v7 = vrot.slane %v4621_v34, 2  ;;  %v4626_v41 = vrot.slane %v4624_v35, 3  ;;  %vm9287_vm1 = vmmov %vm9271_vm0  ;;  %v8069_v47 = vld [vmem:[#allocation2 + $0x68] sm:$0xff]  }
  0xb2   : > { %v4592_v60 = vsel %vm3907_vm6, %v4582_v0, %v4591_v3  ;;  %v1595_v45 = vsel %vm1570_vm10, %v1592_v27, %v1594_v12  ;;  %v1597_v51 = vsel %vm1570_vm10, %v1594_v12, %v1596_v36  ;;  %v4618_v31 = vor.u32 %v4617_v38, %v4614_v37  ;;  %v8063_v29 = vld [vmem:[#allocation2 + $0x88] sm:$0xff]   ;;  %v8071_v0 = vld [vmem:[#allocation2 + $0x10] sm:$0xff]   ;;  %v8075_v27 = vld [vmem:[#allocation2 + $0x78] sm:$0xff]  }
  0xb3   : > { %7347 = vmatmul.mubr.msk.bf16.gmra.mrb[8].mxu1 %vm9272_vm15, %v1583_v9  ;;  %v8065_v9 = vld [vmem:[#allocation2 + $0x58] sm:$0xff]   ;;  %vm9285_vm15 = vmmov %vm9271_vm0  ;;  %v4627_v42 = vor.u32 %v4626_v41, %v4623_v7  ;;  %v4639_v52 = vshrl.u32 %v8068_v43, 16  ;;  %v4642_v54 = vshll.u32 %v8068_v43, 16  ;;  %v1598_v55 = vrot.slane %v8059_v44, 1  ;;  %v8076_v12 = vld [vmem:[#allocation2 + $0x20] sm:$0xff]  }
  0xb4   : > { %7350 = vmatprep.mubr.msk.bf16.mxu1 %vm9273_vm14, %v1585_v19  ;;  %v4601_v19 = vsel %vm3907_vm6, %v4591_v3, %v4600_v11  ;;  %v4630_v16 = vshrl.u32 %v8065_v9, 16  ;;  %v4633_v40 = vshll.u32 %v8065_v9, 16  ;;  %vm9286_vm14 = vmmov %vm9271_vm0  ;;  %v4619_v56 = vsel %vm3907_vm6, %v4609_v32, %v4618_v31 }
  0xb5   : > { %7523 = vmatmul.mubr.msk.bf16.gmra.mrb[32].mxu0 %vm9275_vm13, %v4077_v20  ;;  %v1600_v58 = vrot.slane %v8062_v46, 1  ;;  %v4628_v48 = vsel %vm3907_vm6, %v4618_v31, %v4627_v42  ;;  %v8793_v20 = vld [vmem:[#allocation2 + $0x90] sm:$0xff]   ;;  %v4641_v61 = vrot.slane %v4639_v52, 2  ;;  %v4644_v63 = vrot.slane %v4642_v54, 3  ;;  %vm9288_vm13 = vmmov %vm9271_vm0  ;;  %v8079_v52 = vld [vmem:[#allocation2 + $0x88] sm:$0xff]  }
  0xb6   : > { %7528 = vmatprep.mubr.msk.bf16.mxu0 %vm9276_vm11, %v4574_v39  ;;  %v4632_v39 = vrot.slane %v4630_v16, 2  ;;  %v4635_v57 = vrot.slane %v4633_v40, 3  ;;  %v1599_v5 = vsel %vm1570_vm10, %v1596_v36, %v1598_v55  ;;  %v4648_v4 = vshrl.u32 %v8069_v47, 16  ;;  %vm9289_vm11 = vmmov %vm9271_vm0 }
  0xb7   : > { %v4651_v3 = vshll.u32 %v8069_v47, 16  ;;  %v1601_v33 = vsel %vm1570_vm10, %v1598_v55, %v1600_v58  ;;  %v2098_v18 = vshrl.u32 %v8071_v0, 16  ;;  %v2101_v25 = vshll.u32 %v8071_v0, 16  ;;  %vm9295_vm5 = vmmov %vm9271_vm0 }
  0xb8   : > { %v4636_v49 = vor.u32 %v4635_v57, %v4632_v39  ;;  %v2090_v11 = vshrl.u32 %v8070_v10, 16  ;;  %v2093_v28 = vshll.u32 %v8070_v10, 16  ;;  %v2107_v32 = vshrl.u32 %v8072_v62, 16  ;;  %v8082_v57 = vld [vmem:[#allocation2 + $0x90] sm:$0xff]  }
  0xb9   : > { %v4653_v23 = vrot.slane %v4651_v3, 3  ;;  %v2100_v9 = vrot.slane %v2098_v18, 1  ;;  %v4675_v7 = vshrl.u32 %v8078_v21, 16  ;;  %v4678_v44 = vshll.u32 %v8078_v21, 16 }
  0xba   : > { %v2092_v41 = vrot.slane %v2090_v11, 1  ;;  %v2095_v43 = vrot.slane %v2093_v28, 2  ;;  %v2109_v46 = vrot.slane %v2107_v32, 1  ;;  %v2116_v40 = vshrl.u32 %v8076_v12, 16 }
  0xbb   : > { %7351 = vmatmul.mubr.msk.bf16.gmra.mrb[12].mxu1 %vm9277_vm12, %v1587_v59  ;;  %v8795_v59 = vld [vmem:[#allocation2 + $0x98] ss:$0 sps:$4 sm:$0x11]   ;;  %vm9290_vm12 = vmmov %vm9271_vm0  ;;  %v4677_v55 = vrot.slane %v4675_v7, 2  ;;  %v4680_v39 = vrot.slane %v4678_v44, 3  ;;  %v4687_v0 = vshll.u32 %v8079_v52, 16 }
  0xbc   : > { %7354 = vmatprep.mubr.msk.bf16.mxu1 %vm9278_vm2, %v1589_v53  ;;  %v8074_v53 = vld [vmem:[#allocation2 + $0x70] sm:$0xff]   ;;  %vm9291_vm2 = vmmov %vm9271_vm0  ;;  %v1606_v6 = vrot.slane %v8795_v59, 1  ;;  %v2118_v3 = vrot.slane %v2116_v40, 1  ;;  %v4696_v10 = vshll.u32 %v8082_v57, 16 }
  0xbd   : > { %7529 = vmatmul.mubr.msk.bf16.vlgmr.msra.gmra.mrb[0].mxu0 %vm9280_vm9, %v4583_v13  ;;  %v4645_v13 = vor.u32 %v4644_v63, %v4641_v61  ;;  %v4657_v14 = vshrl.u32 %v8074_v53, 16  ;;  %v4660_v50 = vshll.u32 %v8074_v53, 16  ;;  %vm9293_vm9 = vmmov %vm9271_vm0  ;;  %v8080_v61 = vld [vmem:[#allocation2 + $0x30] sm:$0xff]   ;;  %v4684_v53 = vshrl.u32 %v8079_v52, 16 }
  0xbe   : > { %7565 = vmatpush3.bf16.msra.mxu0 %v5306_v17  ;;  %7532 = vmatprep.mubr.msk.bf16.mxu0 %vm9281_vm8, %v4592_v60  ;;  %v1602_v17 = vrot.slane %v8063_v29, 1  ;;  %v1604_v60 = vrot.slane %v8793_v20, 1  ;;  %vm2088_vm8 = vsmask.f32 6400  ;;  %v8077_v29 = vld [vmem:[#allocation2 + $0x28] sm:$0xff]   ;;  %v4689_v18 = vrot.slane %v4687_v0, 3 }
  0xbf   : > { %v4646_v30 = vsel %vm3907_vm6, %v4636_v49, %v4645_v13  ;;  %v4659_v34 = vrot.slane %v4657_v14, 2  ;;  %v4662_v35 = vrot.slane %v4660_v50, 3  ;;  %v2128_v14 = vshll.u32 %v8077_v29, 16 }
  0xc0   : > { %v1603_v36 = vsel %vm1570_vm10, %v1600_v58, %v1602_v17  ;;  %v1605_v37 = vsel %vm1570_vm10, %v1602_v17, %v1604_v60  ;;  %v1607_v63 = vsel %vm1570_vm10, %v1604_v60, %v1606_v6  ;;  %v2134_v50 = vshrl.u32 %v8080_v61, 16  ;;  %v8081_v17 = vld [vmem:[#allocation2 + $0x38] sm:$0xff]   ;;  %vm9299_vm10 = vmmov %vm9271_vm0 }
  0xc1   : > { %v4663_v31 = vor.u32 %v4662_v35, %v4659_v34  ;;  %v4686_v60 = vrot.slane %v4684_v53, 2  ;;  %v2137_v21 = vshll.u32 %v8080_v61, 16  ;;  %v8083_v6 = vld [vmem:[#allocation2 + $0x98] sm:$0xff]   ;;  %v4698_v28 = vrot.slane %v4696_v10, 3  ;;  %v8084_v35 = vld [vmem:[#allocation2 + $0x40] sm:$0xff]   ;;  %v8088_v61 = vld [vmem:[#allocation2 + $0x50] sm:$0xff]  }
  0xc2   : > { %v2152_v44 = vshrl.u32 %v8084_v35, 16  ;;  %v2155_v52 = vshll.u32 %v8084_v35, 16  ;;  %v2173_v10 = vshll.u32 %v8088_v61, 16 }
  0xc3   : > { %7355 = vmatmul.mubr.msk.bf16.gmra.mrb[16].mxu1 %vm9282_vm4, %v1591_v22  ;;  %v4650_v22 = vrot.slane %v4648_v4, 2  ;;  %vm9294_vm4 = vmmov %vm9271_vm0 }
  0xc4   : > { %7358 = vmatprep.mubr.msk.bf16.mxu1 %vm9284_vm7, %v1593_v26  ;;  %v4637_v26 = vsel %vm3907_vm6, %v4627_v42, %v4636_v49  ;;  %v2119_v42 = vshll.u32 %v8076_v12, 16  ;;  %vm9296_vm7 = vcmask 1045504   ;;  %v4693_v49 = vshrl.u32 %v8082_v57, 16 }
  0xc5   : > { %7533 = vmatmul.mubr.msk.bf16.gmra.mrb[4].mxu0 %vm9271_vm0, %v4601_v19  ;;  %v4666_v19 = vshrl.u32 %v8075_v27, 16  ;;  %v4654_v38 = vor.u32 %v4653_v23, %v4650_v22  ;;  %v2130_v12 = vrot.slane %v2128_v14, 2  ;;  %v2157_v53 = vrot.slane %v2155_v52, 2 }
  0xc6   : > { %7536 = vmatprep.mubr.msk.bf16.mxu0 %vm9285_vm15, %v4610_v24  ;;  %v4669_v24 = vshll.u32 %v8075_v27, 16  ;;  %vm9297_vm15 = vmmov %vm9271_vm0  ;;  %v4695_v11 = vrot.slane %v4693_v49, 2  ;;  %v2170_v49 = vshrl.u32 %v8088_v61, 16 }
  0xc7   : > { %v4668_v16 = vrot.slane %v4666_v19, 2  ;;  %v4655_v47 = vsel %vm3907_vm6, %v4645_v13, %v4654_v38  ;;  %v4664_v20 = vsel %vm3907_vm6, %v4654_v38, %v4663_v31  ;;  %v2125_v13 = vshrl.u32 %v8077_v29, 16 }
  0xc8   : > { %v4671_v54 = vrot.slane %v4669_v24, 3  ;;  %v4702_v19 = vshrl.u32 %v8083_v6, 16  ;;  %v2143_v38 = vshrl.u32 %v8081_v17, 16  ;;  %v4705_v24 = vshll.u32 %v8083_v6, 16 }
  0xc9   : > { %v2127_v34 = vrot.slane %v2125_v13, 1  ;;  %v4699_v7 = vor.u32 %v4698_v28, %v4695_v11 }
  0xca   : > { %v4672_v4 = vor.u32 %v4671_v54, %v4668_v16  ;;  %v8087_v16 = vld [vmem:[#allocation2 + $0xa8] ss:$0 sps:$4 sm:$0x77]   ;;  %v8164_v54 = vld [vmem:[%s9155_s1 + $0x20] sm:$0x3f]  }
  0xcb   : > { %7359 = vmatmul.mubr.msk.bf16.gmra.mrb[20].mxu1 %vm9286_vm14, %v1595_v45  ;;  %v2103_v45 = vrot.slane %v2101_v25, 2  ;;  %vm9298_vm14 = vmmov %vm9271_vm0  ;;  %v4720_v0 = vshrl.u32 %v8087_v16, 16 }
  0xcc   : > { %7362 = vmatprep.mubr.msk.bf16.mxu1 %vm9287_vm1, %v1597_v51  ;;  %v2110_v51 = vshll.u32 %v8072_v62, 16  ;;  %v2121_v62 = vrot.slane %v2119_v42, 2  ;;  %v4673_v22 = vsel %vm3907_vm6, %v4663_v31, %v4672_v4  ;;  %vm9300_vm1 = vmmov %vm9296_vm7  ;;  %v4704_v31 = vrot.slane %v4702_v19, 2 }
  0xcd   : > { %7537 = vmatmul.mubr.msk.bf16.gmra.mrb[8].mxu0 %vm9288_vm13, %v4619_v56  ;;  %v2096_v56 = vor.u32 %v2095_v43, %v2092_v41  ;;  %v2104_v58 = vor.u32 %v2103_v45, %v2100_v9  ;;  %v2969_v25 = vsel %vm9300_vm1, %v8777_v8, 0  ;;  %vm9301_vm13 = vmmov %vm9271_vm0  ;;  %v2139_v9 = vrot.slane %v2137_v21, 2  ;;  %v8091_v21 = vld [vmem:[#allocation2 + $0x20] sm:$0xff]  }
  0xce   : > { %7540 = vmatprep.mubr.msk.bf16.mxu0 %vm9289_vm11, %v4628_v48  ;;  %v8817_v48 = vld [vmem:[%s9155_s1 + $0x40] sm:$0x3f]   ;;  %v2112_v59 = vrot.slane %v2110_v51, 2  ;;  %v2122_v23 = vor.u32 %v2121_v62, %v2118_v3  ;;  %vm9302_vm11 = vmmov %vm9271_vm0  ;;  %v4690_v8 = vor.u32 %v4689_v18, %v4686_v60  ;;  %v2146_v45 = vshll.u32 %v8081_v17, 16 }
  0xcf   : > { %7939 = vmatprep.subr.msk.bf16.mxu0 %vm9296_vm7, %v8817_v48  ;;  %v4707_v42 = vrot.slane %v4705_v24, 3  ;;  %vm9309_vm7 = vmmov %vm9271_vm0  ;;  %v8090_v18 = vld [vmem:[#allocation2 + $0x18] sm:$0xf8]   ;;  %v5210_v35 = vrot.slane %v8091_v21, 3  ;;  %v8103_v21 = vld [vmem:[#allocation2 + $0x88] sm:$0xff]  }
  0xd0   : > { %v2113_v27 = vor.u32 %v2112_v59, %v2109_v46  ;;  %v2131_v46 = vor.u32 %v2130_v12, %v2127_v34  ;;  %v2148_v29 = vrot.slane %v2146_v45, 2  ;;  %v2154_v59 = vrot.slane %v2152_v44, 1  ;;  %v8095_v45 = vld [vmem:[#allocation2 + $0x68] sm:$0xff]   ;;  %v8098_v44 = vld [vmem:[#allocation2 + $0x70] sm:$0xff]  }
  0xd1   : > { %v5209_v34 = vrot.slane %v8090_v18, 3  ;;  %v2197_v52 = vshrl.u32 %v8095_v45, 16 }
  0xd2   : > { %v2114_v32 = vsel %vm2088_vm8, %v2104_v58, %v2113_v27  ;;  %v2132_v57 = vsel %vm2088_vm8, %v2122_v23, %v2131_v46  ;;  %v2158_v14 = vor.u32 %v2157_v53, %v2154_v59 }
  0xd3   : > { %7363 = vmatmul.mubr.msk.bf16.gmra.mrb[24].mxu1 %vm9290_vm12, %v1599_v5  ;;  %v2105_v5 = vsel %vm2088_vm8, %v2096_v56, %v2104_v58  ;;  %vm9303_vm12 = vmmov %vm9271_vm0  ;;  %v2145_v58 = vrot.slane %v2143_v38, 1  ;;  %v2199_v61 = vrot.slane %v2197_v52, 1 }
  0xd4   : > { %7366 = vmatprep.mubr.msk.bf16.mxu1 %vm9291_vm2, %v1601_v33  ;;  %v4681_v33 = vor.u32 %v4680_v39, %v4677_v55  ;;  %vm9304_vm2 = vmmov %vm9271_vm0  ;;  %v4700_v55 = vsel %vm3907_vm6, %v4690_v8, %v4699_v7  ;;  %v8085_v39 = vld [vmem:[#allocation2 + $0x48] sm:$0xff]  }
  0xd5   : > { %7541 = vmatmul.mubr.msk.bf16.gmra.mrb[12].mxu0 %vm9292_vm3, %v4637_v26  ;;  %vm9305_vm3 = vmmov %vm9300_vm1  ;;  %v2161_v3 = vshrl.u32 %v8085_v39, 16  ;;  %v2164_v62 = vshll.u32 %v8085_v39, 16  ;;  %v2209_v39 = vshll.u32 %v8098_v44, 16 }
  0xd6   : > { %7544 = vmatprep.mubr.msk.bf16.mxu0 %vm9293_vm9, %v4646_v30  ;;  %v4682_v26 = vsel %vm3907_vm6, %v4672_v4, %v4681_v33  ;;  %v8086_v30 = vld [vmem:[#allocation2 + $0xa0] sm:$0xff]   ;;  %v4691_v40 = vsel %vm3907_vm6, %v4681_v33, %v4690_v8  ;;  %vm9306_vm9 = vmmov %vm9271_vm0  ;;  %v2149_v33 = vor.u32 %v2148_v29, %v2145_v58 }
  0xd7   : > { %v4711_v41 = vshrl.u32 %v8086_v30, 16  ;;  %v4714_v43 = vshll.u32 %v8086_v30, 16  ;;  %v2163_v6 = vrot.slane %v2161_v3, 1  ;;  %vm9312_vm1 = vmmov %vm9271_vm0 }
  0xd8   : > { %v2159_v11 = vsel %vm2088_vm8, %v2149_v33, %v2158_v14 }
  0xd9   : > { %v4716_v56 = vrot.slane %v4714_v43, 3 }
  0xdb   : > { %7367 = vmatmul.mubr.msk.bf16.gmra.mrb[28].mxu1 %vm9294_vm4, %v1603_v36  ;;  %v2136_v36 = vrot.slane %v2134_v50, 1  ;;  %vm9307_vm4 = vmmov %vm9271_vm0  ;;  %v4722_v50 = vrot.slane %v4720_v0, 2 }
  0xdc   : > { %7370 = vmatprep.mubr.msk.bf16.mxu1 %vm9295_vm5, %v1605_v37  ;;  %v2123_v37 = vsel %vm2088_vm8, %v2113_v27, %v2122_v23  ;;  %vm9308_vm5 = vmmov %vm9271_vm0  ;;  %v8089_v27 = vld [vmem:[#allocation2 + $0x58] sm:$0xff]  }
  0xdd   : > { %7545 = vmatmul.mubr.msk.bf16.gmra.mrb[16].mxu0 %vm9271_vm0, %v4655_v47  ;;  %v2140_v51 = vor.u32 %v2139_v9, %v2136_v36  ;;  %v4713_v47 = vrot.slane %v4711_v41, 2  ;;  %v2179_v30 = vshrl.u32 %v8089_v27, 16  ;;  %v2182_v12 = vshll.u32 %v8089_v27, 16  ;;  %v8093_v9 = vld [vmem:[#allocation2 + $0x28] sm:$0xff]  }
  0xde   : > { %7548 = vmatprep.mubr.msk.bf16.mxu0 %vm9297_vm15, %v4664_v20  ;;  %vm9310_vm15 = vmmov %vm9271_vm0 }
  0xdf   : > { %v2141_v20 = vsel %vm2088_vm8, %v2131_v46, %v2140_v51  ;;  %v4717_v4 = vor.u32 %v4716_v56, %v4713_v47  ;;  %v2150_v23 = vsel %vm2088_vm8, %v2140_v51, %v2149_v33  ;;  %v2181_v41 = vrot.slane %v2179_v30, 1 }
  0xe0   : > { %v2184_v43 = vrot.slane %v2182_v12, 2  ;;  %v2200_v47 = vshll.u32 %v8095_v45, 16  ;;  %v2206_v56 = vshrl.u32 %v8098_v44, 16  ;;  %v2236_v12 = vshll.u32 %v8103_v21, 16 }
  0xe1   : > { %v8107_v45 = vld [vmem:[#allocation2 + $0x98] ss:$0 sps:$4 sm:$0x33]  }
  0xe2   : > { %v2202_v0 = vrot.slane %v2200_v47, 2  ;;  %v2208_v3 = vrot.slane %v2206_v56, 1  ;;  %v2254_v47 = vshll.u32 %v8107_v45, 16 }
  0xe3   : > { %7371 = vmatmul.mubr.msk.bf16.gmra.mrb[32].mxu1 %vm9298_vm14, %v1607_v63  ;;  %v4708_v63 = vor.u32 %v4707_v42, %v4704_v31  ;;  %vm9311_vm14 = vmmov %vm9271_vm0  ;;  %v5212_v31 = vrot.slane %v8093_v9, 3  ;;  %v8105_v9 = vld [vmem:[#allocation2 + $0x58] sm:$0xff]  }
  0xe4   : > { %7376 = vmatprep.mubr.msk.bf16.mxu1 %vm9299_vm10, %v2105_v5  ;;  %v4723_v5 = vshll.u32 %v8087_v16, 16  ;;  %vm5208_vm10 = vcmask 1044480  }
  0xe5   : > { %7549 = vmatmul.mubr.msk.bf16.gmra.mrb[20].mxu0 %vm9301_vm13, %v4673_v22  ;;  %v4709_v13 = vsel %vm3907_vm6, %v4699_v7, %v4708_v63  ;;  %v4718_v60 = vsel %vm3907_vm6, %v4708_v63, %v4717_v4  ;;  %v2166_v22 = vrot.slane %v2164_v62, 2  ;;  %v5211_v24 = vsel %vm5208_vm10, %v5209_v34, %v5210_v35  ;;  %v8096_v7 = vld [vmem:[#allocation2 + $0x30] sm:$0xff]   ;;  %vm9313_vm13 = vmmov %vm9271_vm0 }
  0xe6   : > { %7552 = vmatprep.mubr.msk.bf16.mxu0 %vm9302_vm11, %v4682_v26  ;;  %v4725_v17 = vrot.slane %v4723_v5, 3  ;;  %v2175_v26 = vrot.slane %v2173_v10, 2  ;;  %vm9314_vm11 = vmmov %vm9271_vm0  ;;  %v5214_v42 = vrot.slane %v8096_v7, 3  ;;  %v5213_v58 = vsel %vm5208_vm10, %v5210_v35, %v5212_v31  ;;  %v8099_v5 = vld [vmem:[#allocation2 + $0x78] sm:$0xff]  }
  0xe7   : > { %v2167_v36 = vor.u32 %v2166_v22, %v2163_v6  ;;  %v2211_v62 = vrot.slane %v2209_v39, 2  ;;  %v2215_v10 = vshrl.u32 %v8099_v5, 16  ;;  %v2218_v27 = vshll.u32 %v8099_v5, 16  ;;  %v8104_v6 = vld [vmem:[#allocation2 + $0x50] sm:$0xff]  }
  0xe8   : > { %v4726_v28 = vor.u32 %v4725_v17, %v4722_v50  ;;  %v5215_v59 = vsel %vm5208_vm10, %v5212_v31, %v5214_v42  ;;  %v8101_v50 = vld [vmem:[#allocation2 + $0x48] sm:$0xff]   ;;  %v2233_v34 = vshrl.u32 %v8103_v21, 16  ;;  %v5222_v35 = vrot.slane %v8104_v6, 3 }
  0xe9   : > { %v2168_v46 = vsel %vm2088_vm8, %v2158_v14, %v2167_v36  ;;  %v2212_v14 = vor.u32 %v2211_v62, %v2208_v3  ;;  %v8112_v62 = vld [vmem:[#allocation2 + $0x20] sm:$0xff]  }
  0xea   : > { %v4727_v19 = vsel %vm3907_vm6, %v4717_v4, %v4726_v28  ;;  %vm9315_vm6 = vmmov %vm9271_vm0  ;;  %v5220_v28 = vrot.slane %v8101_v50, 3 }
  0xeb   : > { %7377 = vmatmul.mubr.msk.bf16.vlgmr.msra.gmra.mrb[0].mxu1 %vm9303_vm12, %v2114_v32  ;;  %v8094_v32 = vld [vmem:[#allocation2 + $0x60] sm:$0xff]   ;;  %vm9316_vm12 = vmmov %vm9271_vm0 }
  0xec   : > { %7413 = vmatpush3.bf16.msra.mxu1 %v2969_v25  ;;  %7380 = vmatprep.mubr.msk.bf16.mxu1 %vm9304_vm2, %v2123_v37  ;;  %v2172_v25 = vrot.slane %v2170_v49, 1  ;;  %v2188_v8 = vshrl.u32 %v8094_v32, 16  ;;  %v2191_v38 = vshll.u32 %v8094_v32, 16  ;;  %vm9317_vm2 = vmmov %vm9305_vm3  ;;  %v8102_v49 = vld [vmem:[#allocation2 + $0x80] sm:$0xff]   ;;  %v5223_v7 = vsel %vm5208_vm10, %v5220_v28, %v5222_v35 }
  0xed   : > { %7935 = vmatprep.subr.msk.bf16.mxu1 %vm9305_vm3, %v8164_v54  ;;  %7553 = vmatmul.mubr.msk.bf16.gmra.mrb[24].mxu0 %vm9306_vm9, %v4691_v40  ;;  %v8097_v54 = vld [vmem:[#allocation2 + $0x38] sm:$0xff]   ;;  %vm9318_vm3 = vmmov %vm9271_vm0  ;;  %v2224_v17 = vshrl.u32 %v8102_v49, 16 }
  0xee   : > { %7556 = vmatprep.mubr.msk.bf16.mxu0 %vm9307_vm4, %v4700_v55  ;;  %v2176_v37 = vor.u32 %v2175_v26, %v2172_v25  ;;  %v2190_v16 = vrot.slane %v2188_v8, 1  ;;  %v2193_v40 = vrot.slane %v2191_v38, 2  ;;  %v2185_v55 = vor.u32 %v2184_v43, %v2181_v41  ;;  %vm9319_vm9 = vmmov %vm9271_vm0  ;;  %v8106_v26 = vld [vmem:[#allocation2 + $0x90] sm:$0xff]   ;;  %v8108_v41 = vld [vmem:[#allocation2 + $0x60] sm:$0xff]  }
  0xef   : > { %v5216_v63 = vrot.slane %v8097_v54, 3  ;;  %vm9320_vm4 = vmmov %vm9271_vm0  ;;  %v2220_v25 = vrot.slane %v2218_v27, 2  ;;  %v2226_v30 = vrot.slane %v2224_v17, 1  ;;  %v2238_v43 = vrot.slane %v2236_v12, 2  ;;  %v8109_v54 = vld [vmem:[#allocation2 + $0x68] sm:$0xff]  }
  0xf0   : > { %v2177_v51 = vsel %vm2088_vm8, %v2167_v36, %v2176_v37  ;;  %v2194_v29 = vor.u32 %v2193_v40, %v2190_v16  ;;  %v2186_v53 = vsel %vm2088_vm8, %v2176_v37, %v2185_v55  ;;  %v2245_v37 = vshll.u32 %v8106_v26, 16  ;;  %v8111_v16 = vld [vmem:[#allocation2 + $0x18] sm:$0xff]   ;;  %v8115_v27 = vld [vmem:[#allocation2 + $0x28] sm:$0xff]  }
  0xf1   : > { %v5226_v52 = vrot.slane %v8108_v41, 3  ;;  %v5228_v5 = vrot.slane %v8109_v54, 3  ;;  %v2757_v17 = vshrl.u32 %v8112_v62, 16 }
  0xf2   : > { %v2195_v4 = vsel %vm2088_vm8, %v2185_v55, %v2194_v29  ;;  %v2247_v31 = vrot.slane %v2245_v37, 2  ;;  %v2251_v55 = vshrl.u32 %v8107_v45, 16  ;;  %v8118_v37 = vld [vmem:[#allocation2 + $0x88] sm:$0xff]  }
  0xf3   : > { %7381 = vmatmul.mubr.msk.bf16.gmra.mrb[4].mxu1 %vm9308_vm5, %v2132_v57  ;;  %v8100_v57 = vld [vmem:[#allocation2 + $0x40] sm:$0xff]   ;;  %vm9321_vm5 = vmmov %vm9271_vm0  ;;  %v5229_v50 = vsel %vm5208_vm10, %v5226_v52, %v5228_v5 }
  0xf4   : > { %7384 = vmatprep.mubr.msk.bf16.mxu1 %vm9309_vm7, %v2141_v20  ;;  %v5957_v20 = vsel %vm9317_vm2, %v8817_v48, 0  ;;  %v5218_v33 = vrot.slane %v8100_v57, 3  ;;  %v2203_v48 = vor.u32 %v2202_v0, %v2199_v61  ;;  %vm9322_vm7 = vmmov %vm9271_vm0  ;;  %v2256_v0 = vrot.slane %v2254_v47, 2 }
  0xf5   : > { %7557 = vmatmul.mubr.msk.bf16.gmra.mrb[28].mxu0 %vm9271_vm0, %v4709_v13  ;;  %v5217_v13 = vsel %vm5208_vm10, %v5214_v42, %v5216_v63  ;;  %v8110_v42 = vld [vmem:[#allocation2 + $0x10] sm:$0xfe]   ;;  %vm9330_vm2 = vmmov %vm9271_vm0 }
  0xf6   : > { %7560 = vmatprep.mubr.msk.bf16.mxu0 %vm9310_vm15, %v4718_v60  ;;  %v2227_v60 = vshll.u32 %v8102_v49, 16  ;;  %v5219_v18 = vsel %vm5208_vm10, %v5216_v63, %v5218_v33  ;;  %v2204_v22 = vsel %vm2088_vm8, %v2194_v29, %v2203_v48  ;;  %vm9323_vm15 = vmmov %vm9271_vm0  ;;  %v5221_v8 = vsel %vm5208_vm10, %v5218_v33, %v5220_v28  ;;  %v8113_v63 = vld [vmem:[#allocation2 + $0x70] sm:$0xff]  }
  0xf7   : > { %v2748_v29 = vshrl.u32 %v8111_v16, 16  ;;  %v2740_v57 = vshrl.u32 %v8110_v42, 16  ;;  %v2759_v28 = vrot.slane %v2757_v17, 1 }
  0xf8   : > { %v2229_v32 = vrot.slane %v2227_v60, 2  ;;  %v2760_v60 = vshll.u32 %v8112_v62, 16 }
  0xf9   : > { %v2750_v3 = vrot.slane %v2748_v29, 1  ;;  %v2742_v49 = vrot.slane %v2740_v57, 1 }
  0xfa   : > { %v2230_v38 = vor.u32 %v2229_v32, %v2226_v30  ;;  %v2762_v30 = vrot.slane %v2760_v60, 2  ;;  %v8116_v32 = vld [vmem:[#allocation2 + $0x30] sm:$0xff]  }
  0xfb   : > { %7385 = vmatmul.mubr.msk.bf16.gmra.mrb[8].mxu1 %vm9311_vm14, %v2150_v23  ;;  %v2217_v23 = vrot.slane %v2215_v10, 1  ;;  %vm9324_vm14 = vmmov %vm9271_vm0 }
  0xfc   : > { %7388 = vmatprep.mubr.msk.bf16.mxu1 %vm9312_vm1, %v2159_v11  ;;  %v2213_v11 = vsel %vm2088_vm8, %v2203_v48, %v2212_v14  ;;  %vm9325_vm1 = vmmov %vm9271_vm0 }
  0xfd   : > { %7561 = vmatmul.mubr.msk.bf16.gmra.mrb[32].mxu0 %vm9313_vm13, %v4727_v19  ;;  %v2221_v36 = vor.u32 %v2220_v25, %v2217_v23  ;;  %v2242_v19 = vshrl.u32 %v8106_v26, 16  ;;  %vm9326_vm13 = vmmov %vm9271_vm0  ;;  %v2769_v23 = vshll.u32 %v8115_v27, 16  ;;  %v8117_v26 = vld [vmem:[#allocation2 + $0x80] sm:$0xff]  }
  0xfe   : > { %7566 = vmatprep.mubr.msk.bf16.mxu0 %vm9314_vm11, %v5211_v24  ;;  %v2235_v24 = vrot.slane %v2233_v34, 1  ;;  %vm9327_vm11 = vmmov %vm9271_vm0 }
  0xff   : > { %v2222_v44 = vsel %vm2088_vm8, %v2212_v14, %v2221_v36  ;;  %v2231_v40 = vsel %vm2088_vm8, %v2221_v36, %v2230_v38  ;;  %v2771_v36 = vrot.slane %v2769_v23, 2 }
 0x100   : > { %v2239_v56 = vor.u32 %v2238_v43, %v2235_v24  ;;  %v2778_v24 = vshll.u32 %v8116_v32, 16 }
 0x103   : > { %7389 = vmatmul.mubr.msk.bf16.gmra.mrb[12].mxu1 %vm9315_vm6, %v2168_v46  ;;  %v5224_v46 = vrot.slane %v8105_v9, 3  ;;  %vm9328_vm6 = vmmov %vm9271_vm0  ;;  %v8119_v9 = vld [vmem:[#allocation2 + $0x38] sm:$0xff]  }
 0x104   : > { %7392 = vmatprep.mubr.msk.bf16.mxu1 %vm9316_vm12, %v2177_v51  ;;  %v2244_v51 = vrot.slane %v2242_v19, 1  ;;  %vm9329_vm12 = vmmov %vm9271_vm0  ;;  %v5234_v19 = vrot.slane %v8117_v26, 3  ;;  %v2784_v43 = vshrl.u32 %v8119_v9, 16  ;;  %v2787_v45 = vshll.u32 %v8119_v9, 16  ;;  %v8134_v9 = vld [vmem:[#allocation2 + $0x30] sm:$0xff]  }
 0x105   : > { %7567 = vmatmul.mubr.msk.bf16.vlgmr.msra.gmra.mrb[0].mxu0 %vm9318_vm3, %v5213_v58  ;;  %v5225_v58 = vsel %vm5208_vm10, %v5222_v35, %v5224_v46  ;;  %v5227_v61 = vsel %vm5208_vm10, %v5224_v46, %v5226_v52  ;;  %vm9331_vm3 = vmmov %vm9271_vm0  ;;  %v8120_v46 = vld [vmem:[#allocation2 + $0x40] sm:$0xff]   ;;  %v5236_v52 = vrot.slane %v8118_v37, 3 }
 0x106   : > { %7603 = vmatpush3.bf16.msra.mxu0 %v5957_v20  ;;  %7570 = vmatprep.mubr.msk.bf16.mxu0 %vm9319_vm9, %v5215_v59  ;;  %v2248_v39 = vor.u32 %v2247_v31, %v2244_v51  ;;  %v2743_v20 = vshll.u32 %v8110_v42, 16  ;;  %v2751_v59 = vshll.u32 %v8111_v16, 16  ;;  %vm9332_vm9 = vmmov %vm9271_vm0  ;;  %v8121_v51 = vld [vmem:[#allocation2 + $0x90] sm:$0xff]   ;;  %v8123_v31 = vld [vmem:[#allocation2 + $0x48] sm:$0xff]   ;;  %v2780_v42 = vrot.slane %v2778_v24, 2 }
 0x107   : > { %v2789_v47 = vrot.slane %v2787_v45, 2  ;;  %v2796_v29 = vshll.u32 %v8120_v46, 16  ;;  %v2802_v57 = vshrl.u32 %v8123_v31, 16  ;;  %v8128_v37 = vld [vmem:[#allocation2 + $0x60] sm:$0xff]  }
 0x108   : > { %v2249_v33 = vsel %vm2088_vm8, %v2239_v56, %v2248_v39  ;;  %v2745_v48 = vrot.slane %v2743_v20, 2  ;;  %v2753_v10 = vrot.slane %v2751_v59, 2  ;;  %v2805_v59 = vshll.u32 %v8123_v31, 16 }
 0x109   : > { %v2798_v62 = vrot.slane %v2796_v29, 2 }
 0x10a   : > { %v2746_v21 = vor.u32 %v2745_v48, %v2742_v49  ;;  %v2754_v6 = vor.u32 %v2753_v10, %v2750_v3  ;;  %v2807_v49 = vrot.slane %v2805_v59, 2  ;;  %v8124_v48 = vld [vmem:[#allocation2 + $0x50] sm:$0xff]  }
 0x10b   : > { %7393 = vmatmul.mubr.msk.bf16.gmra.mrb[16].mxu1 %vm9320_vm4, %v2186_v53  ;;  %v2253_v53 = vrot.slane %v2251_v55, 1  ;;  %vm9333_vm4 = vmmov %vm9271_vm0  ;;  %v2786_v55 = vrot.slane %v2784_v43, 1  ;;  %v2814_v23 = vshll.u32 %v8124_v48, 16 }
 0x10c   : > { %7396 = vmatprep.mubr.msk.bf16.mxu1 %vm9321_vm5, %v2195_v4  ;;  %v2240_v4 = vsel %vm2088_vm8, %v2230_v38, %v2239_v56  ;;  %v2755_v34 = vsel %vm2088_vm8, %v2746_v21, %v2754_v6  ;;  %vm9334_vm5 = vmmov %vm9271_vm0  ;;  %v2775_v38 = vshrl.u32 %v8116_v32, 16  ;;  %v5238_v56 = vrot.slane %v8121_v51, 3  ;;  %v8131_v32 = vld [vmem:[#allocation2 + $0x28] sm:$0xff]  }
 0x10d   : > { %7571 = vmatmul.mubr.msk.bf16.gmra.mrb[4].mxu0 %vm9322_vm7, %v5217_v13  ;;  %v5230_v13 = vrot.slane %v8113_v63, 3  ;;  %v2257_v14 = vor.u32 %v2256_v0, %v2253_v53  ;;  %vm9335_vm7 = vmmov %vm9271_vm0  ;;  %v5237_v63 = vsel %vm5208_vm10, %v5234_v19, %v5236_v52  ;;  %v2790_v53 = vor.u32 %v2789_v47, %v2786_v55  ;;  %v8129_v0 = vld [vmem:[#allocation2 + $0x18] sm:$0xf8]  }
 0x10e   : > { %7574 = vmatprep.mubr.msk.bf16.mxu0 %vm9271_vm0, %v5219_v18  ;;  %v8114_v18 = vld [vmem:[#allocation2 + $0x78] sm:$0xff]   ;;  %v5731_v17 = vshll.u32 %v8129_v0, 16  ;;  %v2816_v24 = vrot.slane %v2814_v23, 2 }
 0x10f   : > { %v5231_v25 = vsel %vm5208_vm10, %v5228_v5, %v5230_v13  ;;  %v5232_v35 = vrot.slane %v8114_v18, 3  ;;  %v8130_v5 = vld [vmem:[#allocation2 + $0x20] sm:$0xff]  }
 0x110   : > { %v5736_v60 = vshrl.u32 %v8130_v5, 16  ;;  %v5739_v18 = vshll.u32 %v8130_v5, 16 }
 0x113   : > { %7397 = vmatmul.mubr.msk.bf16.gmra.mrb[20].mxu1 %vm9323_vm15, %v2204_v22  ;;  %v2766_v22 = vshrl.u32 %v8115_v27, 16  ;;  %vm9336_vm15 = vmmov %vm9271_vm0 }
 0x114   : > { %7400 = vmatprep.mubr.msk.bf16.mxu1 %vm9324_vm14, %v2213_v11  ;;  %v2258_v11 = vsel %vm2088_vm8, %v2248_v39, %v2257_v14  ;;  %vm9337_vm14 = vmmov %vm9271_vm0  ;;  %v8122_v39 = vld [vmem:[#allocation2 + $0x98] sm:$0xff]  }
 0x115   : > { %7575 = vmatmul.mubr.msk.bf16.gmra.mrb[8].mxu0 %vm9325_vm1, %v5221_v8  ;;  %v2768_v12 = vrot.slane %v2766_v22, 1  ;;  %v2763_v8 = vor.u32 %v2762_v30, %v2759_v28  ;;  %vm9338_vm1 = vmmov %vm9271_vm0  ;;  %v5240_v27 = vrot.slane %v8122_v39, 3  ;;  %v8127_v14 = vld [vmem:[#allocation2 + $0x58] sm:$0xff]   ;;  %v2811_v22 = vshrl.u32 %v8124_v48, 16 }
 0x116   : > { %7578 = vmatprep.mubr.msk.bf16.mxu0 %vm9326_vm13, %v5223_v7  ;;  %v5233_v7 = vsel %vm5208_vm10, %v5230_v13, %v5232_v35  ;;  %vm9339_vm13 = vmmov %vm9271_vm0  ;;  %v2820_v28 = vshrl.u32 %v8127_v14, 16  ;;  %v2823_v30 = vshll.u32 %v8127_v14, 16 }
 0x117   : > { %v2772_v41 = vor.u32 %v2771_v36, %v2768_v12  ;;  %v2764_v16 = vsel %vm2088_vm8, %v2754_v6, %v2763_v8  ;;  %v5241_v26 = vsel %vm5208_vm10, %v5238_v56, %v5240_v27  ;;  %v5738_v12 = vrot.slane %v5736_v60, 3 }
 0x118   : > { %v5741_v36 = vrot.slane %v5739_v18, 4  ;;  %v2822_v43 = vrot.slane %v2820_v28, 1  ;;  %v2825_v45 = vrot.slane %v2823_v30, 2 }
 0x119   : > { %v2773_v54 = vsel %vm2088_vm8, %v2763_v8, %v2772_v41 }
 0x11a   : > { %v5742_v31 = vor.u32 %v5741_v36, %v5738_v12 }
 0x11b   : > { %7401 = vmatmul.mubr.msk.bf16.gmra.mrb[24].mxu1 %vm9327_vm11, %v2222_v44  ;;  %v5235_v44 = vsel %vm5208_vm10, %v5232_v35, %v5234_v19  ;;  %vm9340_vm11 = vmmov %vm9271_vm0  ;;  %v5733_v35 = vrot.slane %v5731_v17, 4 }
 0x11c   : > { %7404 = vmatprep.mubr.msk.bf16.mxu1 %vm9328_vm6, %v2231_v40  ;;  %v2777_v40 = vrot.slane %v2775_v38, 1  ;;  %vm9341_vm6 = vmmov %vm9271_vm0  ;;  %v2813_v38 = vrot.slane %v2811_v22, 1 }
 0x11d   : > { %7579 = vmatmul.mubr.msk.bf16.gmra.mrb[12].mxu0 %vm9329_vm12, %v5225_v58  ;;  %v2793_v58 = vshrl.u32 %v8120_v46, 16  ;;  %vm9342_vm12 = vmmov %vm9271_vm0  ;;  %v5748_v46 = vshll.u32 %v8131_v32, 16 }
 0x11e   : > { %7582 = vmatprep.mubr.msk.bf16.mxu0 %vm9330_vm2, %v5227_v61  ;;  %v2781_v20 = vor.u32 %v2780_v42, %v2777_v40  ;;  %v8917_v61 = vld [vmem:[#allocation2 + $0xa0] sm:$0xff]   ;;  %vm9343_vm2 = vmmov %vm9271_vm0  ;;  %v5757_v40 = vshll.u32 %v8134_v9, 16  ;;  %v2829_v42 = vshrl.u32 %v8128_v37, 16 }
 0x11f   : > { %v2795_v3 = vrot.slane %v2793_v58, 1  ;;  %v5242_v13 = vrot.slane %v8917_v61, 3  ;;  %v2826_v58 = vor.u32 %v2825_v45, %v2822_v43  ;;  %v5750_v39 = vrot.slane %v5748_v46, 4 }
 0x120   : > { %v2791_v10 = vsel %vm2088_vm8, %v2781_v20, %v2790_v53  ;;  %v5759_v61 = vrot.slane %v5757_v40, 4 }
 0x121   : > { %v2799_v21 = vor.u32 %v2798_v62, %v2795_v3  ;;  %v8133_v62 = vld [vmem:[#allocation2 + $0x70] sm:$0xff]  }
 0x122   : > { %v2847_v60 = vshrl.u32 %v8133_v62, 16  ;;  %v2850_v18 = vshll.u32 %v8133_v62, 16 }
 0x123   : > { %7405 = vmatmul.mubr.msk.bf16.gmra.mrb[28].mxu1 %vm9331_vm3, %v2240_v4  ;;  %v5239_v4 = vsel %vm5208_vm10, %v5236_v52, %v5238_v56  ;;  %v2800_v19 = vsel %vm2088_vm8, %v2790_v53, %v2799_v21  ;;  %vm9344_vm3 = vmmov %vm9271_vm0  ;;  %v2832_v52 = vshll.u32 %v8128_v37, 16  ;;  %v2831_v53 = vrot.slane %v2829_v42, 1  ;;  %v8140_v37 = vld [vmem:[#allocation2 + $0x88] sm:$0xff]  }
 0x124   : > { %7408 = vmatprep.mubr.msk.bf16.mxu1 %vm9332_vm9, %v2249_v33  ;;  %v2782_v33 = vsel %vm2088_vm8, %v2772_v41, %v2781_v20  ;;  %v8132_v41 = vld [vmem:[#allocation2 + $0x68] sm:$0xff]   ;;  %vm9345_vm9 = vmmov %vm9271_vm0  ;;  %v2849_v36 = vrot.slane %v2847_v60, 1 }
 0x125   : > { %7583 = vmatmul.mubr.msk.bf16.gmra.mrb[16].mxu0 %vm9333_vm4, %v5229_v50  ;;  %v5728_v50 = vshrl.u32 %v8129_v0, 16  ;;  %vm9346_vm4 = vmmov %vm9271_vm0  ;;  %v2838_v55 = vshrl.u32 %v8132_v41, 16  ;;  %v2841_v47 = vshll.u32 %v8132_v41, 16  ;;  %v2834_v0 = vrot.slane %v2832_v52, 2 }
 0x126   : > { %7586 = vmatprep.mubr.msk.bf16.mxu0 %vm9334_vm5, %v5231_v25  ;;  %v8126_v25 = vld [vmem:[#allocation2 + $0xa8] ss:$0 sps:$4 sm:$0x77]   ;;  %vm5726_vm5 = vsmask.f32 4352 }
 0x127   : > { %v2843_v3 = vrot.slane %v2841_v47, 2 }
 0x12b   : > { %7409 = vmatmul.mubr.msk.bf16.gmra.mrb[32].mxu1 %vm9335_vm7, %v2258_v11  ;;  %v5243_v11 = vsel %vm5208_vm10, %v5240_v27, %v5242_v13  ;;  %vm9347_vm7 = vmmov %vm9271_vm0 }
 0x12c   : > { %7414 = vmatprep.mubr.msk.bf16.mxu1 %vm9271_vm0, %v2755_v34  ;;  %v5730_v34 = vrot.slane %v5728_v50, 3  ;;  %v2835_v50 = vor.u32 %v2834_v0, %v2831_v53  ;;  %v8144_v53 = vld [vmem:[#allocation2 + $0x98] sm:$0xff]  }
 0x12d   : > { %7587 = vmatmul.mubr.msk.bf16.gmra.mrb[20].mxu0 %vm9336_vm15, %v5233_v7  ;;  %v5244_v7 = vrot.slane %v8126_v25, 3  ;;  %vm9349_vm15 = vmmov %vm9271_vm0  ;;  %v2895_v60 = vshll.u32 %v8144_v53, 16 }
 0x12e   : > { %7590 = vmatprep.mubr.msk.bf16.mxu0 %vm9337_vm14, %v5235_v44  ;;  %v5745_v44 = vshrl.u32 %v8131_v32, 16  ;;  %v5734_v51 = vor.u32 %v5733_v35, %v5730_v34  ;;  %vm9350_vm14 = vmmov %vm9271_vm0  ;;  %v8142_v32 = vld [vmem:[#allocation2 + $0x50] sm:$0xff]   ;;  %v2836_v34 = vsel %vm2088_vm8, %v2826_v58, %v2835_v50  ;;  %v8137_v35 = vld [vmem:[#allocation2 + $0x80] sm:$0xff]  }
 0x12f   : > { %v5245_v56 = vsel %vm5208_vm10, %v5242_v13, %v5244_v7  ;;  %vm9348_vm10 = vmmov %vm9271_vm0  ;;  %v5790_v43 = vshrl.u32 %v8142_v32, 16  ;;  %v5793_v45 = vshll.u32 %v8142_v32, 16  ;;  %v2868_v46 = vshll.u32 %v8137_v35, 16  ;;  %v8145_v32 = vld [vmem:[#allocation2 + $0xa0] ss:$0 sps:$4 sm:$0x33]  }
 0x130   : > { %v5747_v29 = vrot.slane %v5745_v44, 3  ;;  %v5743_v20 = vsel %vm5726_vm5, %v5734_v51, %v5742_v31  ;;  %v2865_v44 = vshrl.u32 %v8137_v35, 16  ;;  %v2897_v35 = vrot.slane %v2895_v60, 2 }
 0x133   : > { %7415 = vmatmul.mubr.msk.bf16.vlgmr.msra.gmra.mrb[0].mxu1 %vm9338_vm1, %v2764_v16  ;;  %v5754_v16 = vshrl.u32 %v8134_v9, 16  ;;  %vm9351_vm1 = vmmov %vm9271_vm0  ;;  %v2852_v9 = vrot.slane %v2850_v18, 2  ;;  %v8147_v18 = vld [vmem:[#allocation2 + $0x68] sm:$0xff]  }
 0x134   : > { %7641 = vmatpush3.bf16.msra.mxu1 %v8313_v2  ;;  %7418 = vmatprep.mubr.msk.bf16.mxu1 %vm9339_vm13, %v2773_v54  ;;  %v2804_v2 = vrot.slane %v2802_v57, 1  ;;  %v2817_v54 = vor.u32 %v2816_v24, %v2813_v38  ;;  %v8135_v57 = vld [vmem:[#allocation2 + $0x38] sm:$0xff]   ;;  %vm9352_vm13 = vmmov %vm9271_vm0 }
 0x135   : > { %7591 = vmatmul.mubr.msk.bf16.gmra.mrb[24].mxu0 %vm9340_vm11, %v5237_v63  ;;  %v5756_v59 = vrot.slane %v5754_v16, 3  ;;  %v8138_v63 = vld [vmem:[#allocation2 + $0x40] sm:$0xff]   ;;  %v5763_v48 = vshrl.u32 %v8135_v57, 16  ;;  %vm9353_vm11 = vmmov %vm9271_vm0  ;;  %v2853_v51 = vor.u32 %v2852_v9, %v2849_v36  ;;  %v2877_v16 = vshll.u32 %v8140_v37, 16 }
 0x136   : > { %7594 = vmatprep.mubr.msk.bf16.mxu0 %vm9341_vm6, %v5239_v4  ;;  %v2808_v6 = vor.u32 %v2807_v49, %v2804_v2  ;;  %v2840_v4 = vrot.slane %v2838_v55, 1  ;;  %v2827_v2 = vsel %vm2088_vm8, %v2817_v54, %v2826_v58  ;;  %v5751_v49 = vor.u32 %v5750_v39, %v5747_v29  ;;  %vm9354_vm6 = vmmov %vm9271_vm0  ;;  %v8143_v55 = vld [vmem:[#allocation2 + $0x58] sm:$0xff]   ;;  %v8146_v29 = vld [vmem:[#allocation2 + $0x60] sm:$0xff]  }
 0x137   : > { %v5760_v27 = vor.u32 %v5759_v61, %v5756_v59  ;;  %v5772_v13 = vshrl.u32 %v8138_v63, 16  ;;  %v5775_v14 = vshll.u32 %v8138_v63, 16  ;;  %v5765_v22 = vrot.slane %v5763_v48, 3  ;;  %v8141_v63 = vld [vmem:[#allocation2 + $0x90] sm:$0xff]  }
 0x138   : > { %v2809_v8 = vsel %vm2088_vm8, %v2799_v21, %v2808_v6  ;;  %v2818_v5 = vsel %vm2088_vm8, %v2808_v6, %v2817_v54  ;;  %v2844_v17 = vor.u32 %v2843_v3, %v2840_v4  ;;  %v5752_v6 = vsel %vm5726_vm5, %v5742_v31, %v5751_v49 }
 0x139   : > { %v5774_v28 = vrot.slane %v5772_v13, 3  ;;  %v5777_v30 = vrot.slane %v5775_v14, 4  ;;  %v2874_v31 = vshrl.u32 %v8140_v37, 16  ;;  %v5795_v58 = vrot.slane %v5793_v45, 4 }
 0x13a   : > { %v2845_v12 = vsel %vm2088_vm8, %v2835_v50, %v2844_v17  ;;  %v2867_v39 = vrot.slane %v2865_v44, 1  ;;  %v2879_v61 = vrot.slane %v2877_v16, 2  ;;  %v5799_v4 = vshrl.u32 %v8143_v55, 16  ;;  %v8151_v44 = vld [vmem:[#allocation2 + $0x78] sm:$0xff]   ;;  %v8154_v16 = vld [vmem:[#allocation2 + $0x80] sm:$0xff]  }
 0x13b   : > { %7419 = vmatmul.mubr.msk.bf16.gmra.mrb[4].mxu1 %vm9342_vm12, %v2782_v33  ;;  %v8136_v33 = vld [vmem:[#allocation2 + $0x78] sm:$0xff]   ;;  %v5778_v41 = vor.u32 %v5777_v30, %v5774_v28  ;;  %vm9355_vm12 = vmmov %vm9271_vm0  ;;  %v2876_v59 = vrot.slane %v2874_v31, 1  ;;  %v5802_v3 = vshll.u32 %v8143_v55, 16  ;;  %v2892_v13 = vshrl.u32 %v8144_v53, 16 }
 0x13c   : > { %7422 = vmatprep.mubr.msk.bf16.mxu1 %vm9343_vm2, %v2791_v10  ;;  %v5766_v10 = vshll.u32 %v8135_v57, 16  ;;  %v2856_v21 = vshrl.u32 %v8136_v33, 16  ;;  %v2859_v25 = vshll.u32 %v8136_v33, 16  ;;  %v2870_v57 = vrot.slane %v2868_v46, 2  ;;  %vm9356_vm2 = vmmov %vm9271_vm0 }
 0x13d   : > { %7595 = vmatmul.mubr.msk.bf16.gmra.mrb[28].mxu0 %vm9344_vm3, %v5241_v26  ;;  %v8139_v26 = vld [vmem:[#allocation2 + $0x48] sm:$0xff]   ;;  %v5808_v33 = vshrl.u32 %v8146_v29, 16  ;;  %vm9357_vm3 = vmmov %vm9271_vm0  ;;  %v2880_v48 = vor.u32 %v2879_v61, %v2876_v59  ;;  %v5801_v50 = vrot.slane %v5799_v4, 3  ;;  %v2894_v30 = vrot.slane %v2892_v13, 1 }
 0x13e   : > { %7598 = vmatprep.mubr.msk.bf16.mxu0 %vm9345_vm9, %v5243_v11  ;;  %v5768_v23 = vrot.slane %v5766_v10, 4  ;;  %v5761_v11 = vsel %vm5726_vm5, %v5751_v49, %v5760_v27  ;;  %v2861_v38 = vrot.slane %v2859_v25, 2  ;;  %v5781_v24 = vshrl.u32 %v8139_v26, 16  ;;  %vm9358_vm9 = vmmov %vm9271_vm0 }
 0x13f   : > { %v5784_v7 = vshll.u32 %v8139_v26, 16  ;;  %v2871_v49 = vor.u32 %v2870_v57, %v2867_v39  ;;  %v2883_v10 = vshrl.u32 %v8141_v63, 16  ;;  %v5820_v36 = vshll.u32 %v8147_v18, 16 }
 0x140   : > { %v5783_v52 = vrot.slane %v5781_v24, 3  ;;  %v2904_v24 = vshll.u32 %v8145_v32, 16  ;;  %v5844_v39 = vshrl.u32 %v8154_v16, 16  ;;  %v5847_v57 = vshll.u32 %v8154_v16, 16 }
 0x141   : > { %v5786_v54 = vrot.slane %v5784_v7, 4  ;;  %v2881_v26 = vsel %vm2088_vm8, %v2871_v49, %v2880_v48  ;;  %v5822_v45 = vrot.slane %v5820_v36, 4 }
 0x142   : > { %v5846_v4 = vrot.slane %v5844_v39, 3 }
 0x143   : > { %7423 = vmatmul.mubr.msk.bf16.gmra.mrb[8].mxu1 %vm9346_vm4, %v2800_v19  ;;  %v2858_v19 = vrot.slane %v2856_v21, 1  ;;  %vm9359_vm4 = vmmov %vm9271_vm0 }
 0x144   : > { %7426 = vmatprep.mubr.msk.bf16.mxu1 %vm9347_vm7, %v2809_v8  ;;  %v5769_v8 = vor.u32 %v5768_v23, %v5765_v22  ;;  %v8150_v23 = vld [vmem:[#allocation2 + $0x70] sm:$0xff]   ;;  %vm9360_vm7 = vmmov %vm9271_vm0 }
 0x145   : > { %7599 = vmatmul.mubr.msk.bf16.gmra.mrb[32].mxu0 %vm9271_vm0, %v5245_v56  ;;  %v2862_v42 = vor.u32 %v2861_v38, %v2858_v19  ;;  %v5792_v56 = vrot.slane %v5790_v43, 3  ;;  %v5826_v19 = vshrl.u32 %v8150_v23, 16  ;;  %v5829_v37 = vshll.u32 %v8150_v23, 16 }
 0x146   : > { %7604 = vmatprep.mubr.msk.bf16.mxu0 %vm9348_vm10, %v5743_v20  ;;  %v5770_v40 = vsel %vm5726_vm5, %v5760_v27, %v5769_v8  ;;  %v5779_v47 = vsel %vm5726_vm5, %v5769_v8, %v5778_v41  ;;  %v2854_v20 = vsel %vm2088_vm8, %v2844_v17, %v2853_v51  ;;  %v2886_v27 = vshll.u32 %v8141_v63, 16  ;;  %vm9361_vm10 = vmmov %vm9271_vm0 }
 0x147   : > { %v2863_v0 = vsel %vm2088_vm8, %v2853_v51, %v2862_v42  ;;  %v5796_v62 = vor.u32 %v5795_v58, %v5792_v56  ;;  %v5804_v17 = vrot.slane %v5802_v3, 4  ;;  %v2872_v25 = vsel %vm2088_vm8, %v2862_v42, %v2871_v49 }
 0x148   : > { %v2888_v28 = vrot.slane %v2886_v27, 2  ;;  %v2901_v38 = vshrl.u32 %v8145_v32, 16  ;;  %v5828_v51 = vrot.slane %v5826_v19, 3  ;;  %v5831_v31 = vrot.slane %v5829_v37, 4 }
 0x149   : > { %v5835_v56 = vshrl.u32 %v8151_v44, 16  ;;  %v5838_v58 = vshll.u32 %v8151_v44, 16  ;;  %v5849_v3 = vrot.slane %v5847_v57, 4 }
 0x14a   : > { %v2903_v42 = vrot.slane %v2901_v38, 1 }
 0x14b   : > { %7427 = vmatmul.mubr.msk.bf16.gmra.mrb[12].mxu1 %vm9349_vm15, %v2818_v5  ;;  %v5787_v5 = vor.u32 %v5786_v54, %v5783_v52  ;;  %vm9362_vm15 = vmmov %vm9271_vm0  ;;  %v2906_v52 = vrot.slane %v2904_v24, 2  ;;  %v5837_v63 = vrot.slane %v5835_v56, 3  ;;  %v5840_v53 = vrot.slane %v5838_v58, 4 }
 0x14c   : > { %7430 = vmatprep.mubr.msk.bf16.mxu1 %vm9350_vm14, %v2827_v2  ;;  %v5811_v2 = vshll.u32 %v8146_v29, 16  ;;  %vm9363_vm14 = vmmov %vm9271_vm0  ;;  %v5832_v29 = vor.u32 %v5831_v31, %v5828_v51  ;;  %v8157_v51 = vld [vmem:[#allocation2 + $0x90] sm:$0xff]  }
 0x14d   : > { %7605 = vmatmul.mubr.msk.bf16.vlgmr.msra.gmra.mrb[0].mxu0 %vm9351_vm1, %v5752_v6  ;;  %v5788_v14 = vsel %vm5726_vm5, %v5778_v41, %v5787_v5  ;;  %v5797_v21 = vsel %vm5726_vm5, %v5787_v5, %v5796_v62  ;;  %v5810_v6 = vrot.slane %v5808_v33, 3  ;;  %v2898_v41 = vor.u32 %v2897_v35, %v2894_v30  ;;  %vm9364_vm1 = vmmov %vm9271_vm0 }
 0x14e   : > { %7608 = vmatprep.mubr.msk.bf16.mxu0 %vm9352_vm13, %v5761_v11  ;;  %v5813_v22 = vrot.slane %v5811_v2, 4  ;;  %v2885_v11 = vrot.slane %v2883_v10, 1  ;;  %vm9365_vm13 = vmmov %vm9271_vm0  ;;  %v8149_v2 = vld [vmem:[#allocation2 + $0x70] sm:$0xff]   ;;  %v8152_v10 = vld [vmem:[#allocation2 + $0x78] sm:$0xff]  }
 0x14f   : > { %v3413_v60 = vrot.slane %v8149_v2, 2 }
 0x150   : > { %v5814_v9 = vor.u32 %v5813_v22, %v5810_v6  ;;  %v2889_v8 = vor.u32 %v2888_v28, %v2885_v11  ;;  %v8153_v28 = vld [vmem:[#allocation2 + $0x80] sm:$0xff]  }
 0x151   : > { %v3417_v37 = vrot.slane %v8153_v28, 2 }
 0x152   : > { %v2899_v54 = vsel %vm2088_vm8, %v2889_v8, %v2898_v41 }
 0x153   : > { %7431 = vmatmul.mubr.msk.bf16.gmra.mrb[16].mxu1 %vm9353_vm11, %v2836_v34  ;;  %v5805_v34 = vor.u32 %v5804_v17, %v5801_v50  ;;  %vm9366_vm11 = vmmov %vm9271_vm0 }
 0x154   : > { %7434 = vmatprep.mubr.msk.bf16.mxu1 %vm9354_vm6, %v2845_v12  ;;  %v5817_v12 = vshrl.u32 %v8147_v18, 16  ;;  %vm9367_vm6 = vcmask 1045504  }
 0x155   : > { %7609 = vmatmul.mubr.msk.bf16.gmra.mrb[4].mxu0 %vm9355_vm12, %v5770_v40  ;;  %v5806_v7 = vsel %vm5726_vm5, %v5796_v62, %v5805_v34  ;;  %v5815_v46 = vsel %vm5726_vm5, %v5805_v34, %v5814_v9  ;;  %v2890_v40 = vsel %vm2088_vm8, %v2880_v48, %v2889_v8  ;;  %v8158_v62 = vld [vmem:[#allocation2 + $0x90] sm:$0xff]   ;;  %vm9368_vm12 = vmmov %vm9271_vm0  ;;  %v5841_v48 = vor.u32 %v5840_v53, %v5837_v63  ;;  %v8156_v34 = vld [vmem:[#allocation2 + $0x88] sm:$0xff]  }
 0x156   : > { %7612 = vmatprep.mubr.msk.bf16.mxu0 %vm9356_vm2, %v5779_v47  ;;  %v5819_v43 = vrot.slane %v5817_v12, 3  ;;  %v8148_v47 = vld [vmem:[#allocation2 + $0x68] sm:$0xff]   ;;  %v5862_v50 = vshrl.u32 %v8158_v62, 16  ;;  %v5865_v17 = vshll.u32 %v8158_v62, 16  ;;  %vm9369_vm2 = vmmov %vm9271_vm0  ;;  %v3419_v38 = vrot.slane %v8156_v34, 2 }
 0x157   : > { %v3411_v61 = vrot.slane %v8148_v47, 2  ;;  %v5842_v18 = vsel %vm5726_vm5, %v5832_v29, %v5841_v48 }
 0x158   : > { %v5823_v55 = vor.u32 %v5822_v45, %v5819_v43  ;;  %v5864_v23 = vrot.slane %v5862_v50, 3 }
 0x159   : > { %v3412_v49 = vsel %vm9367_vm6, %v3409_v15, %v3411_v61  ;;  %v8159_v15 = vld [vmem:[#allocation2 + $0x98] sm:$0xff]  }
 0x15a   : > { %v5824_v59 = vsel %vm5726_vm5, %v5814_v9, %v5823_v55  ;;  %v5833_v5 = vsel %vm5726_vm5, %v5823_v55, %v5832_v29  ;;  %v5871_v35 = vshrl.u32 %v8159_v15, 16  ;;  %v5874_v12 = vshll.u32 %v8159_v15, 16 }
 0x15b   : > { %7435 = vmatmul.mubr.msk.bf16.gmra.mrb[20].mxu1 %vm9357_vm3, %v2854_v20  ;;  %v2907_v20 = vor.u32 %v2906_v52, %v2903_v42  ;;  %vm9370_vm3 = vmmov %vm9271_vm0  ;;  %v3421_v55 = vrot.slane %v8157_v51, 2 }
 0x15c   : > { %7438 = vmatprep.mubr.msk.bf16.mxu1 %vm9358_vm9, %v2863_v0  ;;  %v8155_v0 = vld [vmem:[#allocation2 + $0x88] sm:$0xff]   ;;  %vm9372_vm9 = vmmov %vm9271_vm0  ;;  %v5873_v24 = vrot.slane %v5871_v35, 3 }
 0x15d   : > { %7613 = vmatmul.mubr.msk.bf16.gmra.mrb[8].mxu0 %vm9359_vm4, %v5788_v14  ;;  %v2908_v33 = vsel %vm2088_vm8, %v2898_v41, %v2907_v20  ;;  %v5853_v27 = vshrl.u32 %v8155_v0, 16  ;;  %v5856_v13 = vshll.u32 %v8155_v0, 16  ;;  %v5850_v14 = vor.u32 %v5849_v3, %v5846_v4  ;;  %vm9371_vm8 = vmmov %vm9367_vm6  ;;  %v8163_v41 = vld [vmem:[#allocation2 + $0xa8] ss:$0 sps:$4 sm:$0xff]  }
 0x15e   : > { %7616 = vmatprep.mubr.msk.bf16.mxu0 %vm9360_vm7, %v5797_v21  ;;  %v3415_v21 = vrot.slane %v8152_v10, 2  ;;  %v3414_v11 = vsel %vm9371_vm8, %v3411_v61, %v3413_v60  ;;  %vm9373_vm4 = vmmov %vm9367_vm6  ;;  %v5889_v42 = vshrl.u32 %v8163_v41, 16  ;;  %v5892_v52 = vshll.u32 %v8163_v41, 16  ;;  %v8161_v20 = vld [vmem:[#allocation2 + $0xa0] ss:$0 sps:$4 sm:$0x33]  }
 0x15f   : > { %v5855_v1 = vrot.slane %v5853_v27, 3  ;;  %v5858_v6 = vrot.slane %v5856_v13, 4  ;;  %v5851_v22 = vsel %vm5726_vm5, %v5841_v48, %v5850_v14  ;;  %vm9374_vm7 = vmmov %vm9271_vm0  ;;  %v3425_v63 = vrot.slane %v8161_v20, 2 }
 0x160   : > { %v3416_v30 = vsel %vm9373_vm4, %v3413_v60, %v3415_v21  ;;  %vm9381_vm6 = vmmov %vm9271_vm0  ;;  %v5891_v58 = vrot.slane %v5889_v42, 3  ;;  %v5894_v29 = vrot.slane %v5892_v52, 4 }
 0x161   : > { %v5859_v32 = vor.u32 %v5858_v6, %v5855_v1  ;;  %vm9385_vm8 = vmmov %vm9271_vm0  ;;  %v9025_v1 = vld [vmem:[%s9156_s2] ss:$0 sm:$0xff] }
 0x162   : > { %v5895_v61 = vor.u32 %v5894_v29, %v5891_v58 }
 0x163   : > { %7439 = vmatmul.mubr.msk.bf16.gmra.mrb[24].mxu1 %vm9271_vm0, %v2872_v25  ;;  %v5867_v25 = vrot.slane %v5865_v17, 4  ;;  %v5860_v8 = vsel %vm5726_vm5, %v5850_v14, %v5859_v32 }
 0x164   : > { %7442 = vmatprep.mubr.msk.bf16.mxu1 %vm9361_vm10, %v2881_v26  ;;  %v8162_v26 = vld [vmem:[#allocation2 + $0xa0] sm:$0xff]   ;;  %vm9375_vm10 = vmmov %vm9271_vm0 }
 0x165   : > { %7617 = vmatmul.mubr.msk.bf16.gmra.mrb[12].mxu0 %vm9362_vm15, %v5806_v7  ;;  %v5868_v36 = vor.u32 %v5867_v25, %v5864_v23  ;;  %v5880_v9 = vshrl.u32 %v8162_v26, 16  ;;  %v5883_v19 = vshll.u32 %v8162_v26, 16  ;;  %v5876_v7 = vrot.slane %v5874_v12, 4  ;;  %vm9376_vm15 = vmmov %vm9373_vm4 }
 0x166   : > { %7620 = vmatprep.mubr.msk.bf16.mxu0 %vm9363_vm14, %v5815_v46  ;;  %v3418_v46 = vsel %vm9376_vm15, %v3415_v21, %v3417_v37  ;;  %vm9377_vm14 = vmmov %vm9271_vm0 }
 0x167   : > { %v5869_v43 = vsel %vm5726_vm5, %v5859_v32, %v5868_v36  ;;  %v5882_v45 = vrot.slane %v5880_v9, 3  ;;  %v5885_v44 = vrot.slane %v5883_v19, 4  ;;  %v5877_v16 = vor.u32 %v5876_v7, %v5873_v24 }
 0x169   : > { %v5878_v47 = vsel %vm5726_vm5, %v5868_v36, %v5877_v16 }
 0x16b   : > { %7443 = vmatmul.mubr.msk.bf16.gmra.mrb[28].mxu1 %vm9364_vm1, %v2890_v40  ;;  %vm9378_vm1 = vmmov %vm9373_vm4  ;;  %v8160_v40 = vld [vmem:[#allocation2 + $0x98] sm:$0xff]  }
 0x16c   : > { %7446 = vmatprep.mubr.msk.bf16.mxu1 %vm9365_vm13, %v2899_v54  ;;  %v3420_v31 = vsel %vm9378_vm1, %v3417_v37, %v3419_v38  ;;  %vm9379_vm13 = vmmov %vm9271_vm0  ;;  %v5886_v54 = vor.u32 %v5885_v44, %v5882_v45  ;;  %v3423_v56 = vrot.slane %v8160_v40, 2 }
 0x16d   : > { %7621 = vmatmul.mubr.msk.bf16.gmra.mrb[16].mxu0 %vm9366_vm11, %v5824_v59  ;;  %vm9380_vm11 = vmmov %vm9271_vm0 }
 0x16e   : > { %7624 = vmatprep.mubr.msk.bf16.mxu0 %vm9368_vm12, %v5833_v5  ;;  %v5887_v39 = vsel %vm5726_vm5, %v5877_v16, %v5886_v54  ;;  %vm9382_vm12 = vmmov %vm9378_vm1  ;;  %v5896_v53 = vsel %vm5726_vm5, %v5886_v54, %v5895_v61 }
 0x16f   : > { %v3422_v57 = vsel %vm9382_vm12, %v3419_v38, %v3421_v55  ;;  %vm9387_vm4 = vmmov %vm9271_vm0 }
 0x173   : > { %7447 = vmatmul.mubr.msk.bf16.gmra.mrb[32].mxu1 %vm9369_vm2, %v2908_v33  ;;  %vm9383_vm2 = vmmov %vm9271_vm0 }
 0x174   : > { %7472 = vmatprep.mubr.msk.bf16.mxu1 %vm9370_vm3, %v3412_v49  ;;  %vm9384_vm3 = vmmov %vm9378_vm1 }
 0x175   : > { %7625 = vmatmul.mubr.msk.bf16.gmra.mrb[20].mxu0 %vm9372_vm9, %v5842_v18  ;;  %v3424_v59 = vsel %vm9384_vm3, %v3421_v55, %v3423_v56  ;;  %vm9386_vm9 = vmmov %vm9271_vm0 }
 0x176   : > { %7628 = vmatprep.mubr.msk.bf16.mxu0 %vm9374_vm7, %v5851_v22  ;;  %vm9388_vm7 = vmmov %vm9378_vm1 }
 0x177   : > { %v3426_v0 = vsel %vm9388_vm7, %v3423_v56, %v3425_v63 }
 0x17b   : > { %7473 = vmatmul.mubr.msk.bf16.vlgmr.msra.gmra.mrb[20].mxu1 %vm9271_vm0, %v3414_v11 }
 0x17c   : > { %7476 = vmatprep.mubr.msk.bf16.mxu1 %vm9375_vm10, %v3416_v30  ;;  %vm9389_vm10 = vmmov %vm9271_vm0 }
 0x17d   : > { %7629 = vmatmul.mubr.msk.bf16.gmra.mrb[24].mxu0 %vm9377_vm14, %v5860_v8 }
 0x17e   : > { %7632 = vmatprep.mubr.msk.bf16.mxu0 %vm9379_vm13, %v5869_v43 }
 0x183   : > { %7477 = vmatmul.mubr.msk.bf16.gmra.mrb[24].mxu1 %vm9380_vm11, %v3418_v46 }
 0x184   : > { %7480 = vmatprep.mubr.msk.bf16.mxu1 %vm9381_vm6, %v3420_v31 }
 0x185   : > { %7633 = vmatmul.mubr.msk.bf16.gmra.mrb[28].mxu0 %vm9383_vm2, %v5878_v47 }
 0x186   : > { %7636 = vmatprep.mubr.msk.bf16.mxu0 %vm9385_vm8, %v5887_v39 }
 0x18b   : > { %7481 = vmatmul.mubr.msk.bf16.gmra.mrb[28].mxu1 %vm9386_vm9, %v3422_v57 }
 0x18c   : > { %7484 = vmatprep.mubr.msk.bf16.mxu1 %vm9387_vm4, %v3424_v59 }
 0x18d   : > { %7637 = vmatmul.mubr.msk.bf16.gmra.mrb[32].mxu0 %vm9271_vm0, %v5896_v53 }
 0x193   : > { %7485 = vmatmul.mubr.msk.bf16.gmra.mrb[32].mxu1 %vm9389_vm10, %v3426_v0 }
 0x206   : > { %v7416_v5 = vpop.f32.mrb[0].mxu1 }
 0x207   : > { %v3005_v4 = vpop.f32.mrb[1].mxu1 }
 0x208   : > { %v7417_v3 = vpop.f32.mrb[2].mxu1 }
 0x209   : > { %v3008_v62 = vpop.f32.mrb[3].mxu1 }
 0x20e   : > { %v7420_v33 = vpop.f32.mrb[4].mxu1 }
 0x20f   : > { %v3021_v2 = vpop.f32.mrb[5].mxu1 }
 0x210   : > { %v7421_v49 = vpop.f32.mrb[6].mxu1 }
 0x211   : > { %v3024_v48 = vpop.f32.mrb[7].mxu1 }
 0x216   : > { %v7424_v10 = vpop.f32.mrb[8].mxu1 }
 0x217   : > { %v3037_v27 = vpop.f32.mrb[9].mxu1 }
 0x218   : > { %v7425_v13 = vpop.f32.mrb[10].mxu1 }
 0x219   : > { %v3040_v14 = vpop.f32.mrb[11].mxu1 }
 0x21e   : > { %v9014_v50 = vpop.f32.mrb[12].mxu1 }
 0x21f   : > { %v9016_v17 = vpop.f32.mrb[13].mxu1 }
 0x220   : > { %v9018_v60 = vpop.f32.mrb[14].mxu1  ;;  %v7606_v21 = vpop.f32.mrb[0].mxu0 }
 0x221   : > { %v9020_v18 = vpop.f32.mrb[15].mxu1  ;;  %v7642_v6 = vadd.f32 %v7606_v21, %v7416_v5  ;;  %v5993_v15 = vpop.f32.mrb[1].mxu0 }
 0x222   : > { %v7643_v22 = vadd.f32 %v5993_v15, %v3005_v4  ;;  %v7607_v23 = vpop.f32.mrb[2].mxu0 }
 0x223   : > { %v6253_v26 = vadd.f32 %v7642_v6, %v9025_v1  ;;  %v7644_v11 = vadd.f32 %v7607_v23, %v7417_v3  ;;  %v5996_v28 = vpop.f32.mrb[3].mxu0 }
 0x224   : > { %v6251_v32 = vadd.f32 %v7643_v22, %v9025_v1  ;;  %v7645_v34 = vadd.f32 %v5996_v28, %v3008_v62 }
 0x225   : > { %v6254_v12 = vadd.f32 %v7644_v11, %v9025_v1  ;;  %v6289_v19 = vmax.f32 %v6253_v26, 0.0 }
 0x226   : > { %v9028_v25 = vpop.f32.mrb[16].mxu1  ;;  %v6252_v9 = vadd.f32 %v7645_v34, %v9025_v1  ;;  %v6287_v8 = vmax.f32 %v6251_v32, 0.0 }
 0x227   : > { %v9031_v30 = vpop.f32.mrb[17].mxu1  ;;  %v6290_v37 = vmax.f32 %v6254_v12, 0.0 }
 0x228   : > { %v9036_v35 = vpop.f32.mrb[18].mxu1  ;;  %v6288_v38 = vmax.f32 %v6252_v9, 0.0  ;;  %v7610_v24 = vpop.f32.mrb[4].mxu0 }
 0x229   : > { %v9039_v36 = vpop.f32.mrb[19].mxu1  ;;  %v7028_v7 = vpack.c.bf16 %v6290_v37, %v6289_v19  ;;  %v7646_v41 = vadd.f32 %v7610_v24, %v7420_v33  ;;  %v6009_v43 = vpop.f32.mrb[5].mxu0 }
 0x22a   : > { %v7023_v45 = vpack.c.bf16 %v6288_v38, %v6287_v8  ;;  %v7647_v44 = vadd.f32 %v6009_v43, %v3021_v2  ;;  %v7611_v46 = vpop.f32.mrb[6].mxu0 }
 0x22b   : > { %7110 = vst [vmem:[%s9042_s8 + $0x8] sm:$0xff] %v7028_v7   ;;  %v6257_v51 = vadd.f32 %v7646_v41, %v9025_v1  ;;  %v7648_v31 = vadd.f32 %v7611_v46, %v7421_v49  ;;  %v6012_v16 = vpop.f32.mrb[7].mxu0 }
 0x22c   : > { %7024 = vst [vmem:[%s9042_s8] sm:$0xff] %v7023_v45   ;;  %v6255_v40 = vadd.f32 %v7647_v44, %v9025_v1  ;;  %v7649_v42 = vadd.f32 %v6012_v16, %v3024_v48 }
 0x22d   : > { %v6258_v52 = vadd.f32 %v7648_v31, %v9025_v1  ;;  %v6293_v55 = vmax.f32 %v6257_v51, 0.0 }
 0x22e   : > { %v6256_v54 = vadd.f32 %v7649_v42, %v9025_v1  ;;  %v6291_v56 = vmax.f32 %v6255_v40, 0.0 }
 0x22f   : > { %v6294_v47 = vmax.f32 %v6258_v52, 0.0 }
 0x230   : > { %v6292_v58 = vmax.f32 %v6256_v54, 0.0  ;;  %v7614_v29 = vpop.f32.mrb[8].mxu0 }
 0x231   : > { %v7038_v39 = vpack.c.bf16 %v6294_v47, %v6293_v55  ;;  %v7650_v57 = vadd.f32 %v7614_v29, %v7424_v10  ;;  %v6025_v20 = vpop.f32.mrb[9].mxu0 }
 0x232   : > { %v7033_v59 = vpack.c.bf16 %v6292_v58, %v6291_v56  ;;  %v7651_v61 = vadd.f32 %v6025_v20, %v3037_v27  ;;  %v7615_v63 = vpop.f32.mrb[10].mxu0 }
 0x233   : > { %7112 = vst [vmem:[%s9042_s8 + $0x18] sm:$0xff] %v7038_v39   ;;  %v6261_v53 = vadd.f32 %v7650_v57, %v9025_v1  ;;  %v7652_v0 = vadd.f32 %v7615_v63, %v7425_v13  ;;  %v6028_v5 = vpop.f32.mrb[11].mxu0 }
 0x234   : > { %7111 = vst [vmem:[%s9042_s8 + $0x10] sm:$0xff] %v7033_v59   ;;  %v6259_v4 = vadd.f32 %v7651_v61, %v9025_v1  ;;  %v7653_v3 = vadd.f32 %v6028_v5, %v3040_v14 }
 0x235   : > { %v6262_v62 = vadd.f32 %v7652_v0, %v9025_v1  ;;  %v6297_v2 = vmax.f32 %v6261_v53, 0.0 }
 0x236   : > { %v6260_v33 = vadd.f32 %v7653_v3, %v9025_v1  ;;  %v6295_v48 = vmax.f32 %v6259_v4, 0.0 }
 0x237   : > { %v6298_v49 = vmax.f32 %v6262_v62, 0.0 }
 0x238   : > { %v6296_v10 = vmax.f32 %v6260_v33, 0.0  ;;  %v7618_v27 = vpop.f32.mrb[12].mxu0 }
 0x239   : > { %v7048_v21 = vpack.c.bf16 %v6298_v49, %v6297_v2  ;;  %v7654_v6 = vadd.f32 %v7618_v27, %v9014_v50  ;;  %v6041_v13 = vpop.f32.mrb[13].mxu0 }
 0x23a   : > { %v7043_v15 = vpack.c.bf16 %v6296_v10, %v6295_v48  ;;  %v7655_v22 = vadd.f32 %v6041_v13, %v9016_v17  ;;  %v7619_v23 = vpop.f32.mrb[14].mxu0 }
 0x23b   : > { %7114 = vst [vmem:[%s9042_s8 + $0x28] sm:$0xff] %v7048_v21   ;;  %v6265_v14 = vadd.f32 %v7654_v6, %v9025_v1  ;;  %v7656_v26 = vadd.f32 %v7619_v23, %v9018_v60  ;;  %v6044_v11 = vpop.f32.mrb[15].mxu0 }
 0x23c   : > { %7113 = vst [vmem:[%s9042_s8 + $0x20] sm:$0xff] %v7043_v15   ;;  %v6263_v28 = vadd.f32 %v7655_v22, %v9025_v1  ;;  %v7657_v32 = vadd.f32 %v6044_v11, %v9020_v18 }
 0x23d   : > { %v6266_v34 = vadd.f32 %v7656_v26, %v9025_v1  ;;  %v6301_v12 = vmax.f32 %v6265_v14, 0.0 }
 0x23e   : > { %v6264_v50 = vadd.f32 %v7657_v32, %v9025_v1  ;;  %v6299_v9 = vmax.f32 %v6263_v28, 0.0 }
 0x23f   : > { %v6302_v17 = vmax.f32 %v6266_v34, 0.0 }
 0x240   : > { %v6300_v19 = vmax.f32 %v6264_v50, 0.0  ;;  %v7622_v37 = vpop.f32.mrb[16].mxu0 }
 0x241   : > { %v7058_v8 = vpack.c.bf16 %v6302_v17, %v6301_v12  ;;  %v7658_v60 = vadd.f32 %v7622_v37, %v9028_v25  ;;  %v6057_v38 = vpop.f32.mrb[17].mxu0 }
 0x242   : > { %v7053_v24 = vpack.c.bf16 %v6300_v19, %v6299_v9  ;;  %v7659_v7 = vadd.f32 %v6057_v38, %v9031_v30  ;;  %v7623_v41 = vpop.f32.mrb[18].mxu0 }
 0x243   : > { %7116 = vst [vmem:[%s9042_s8 + $0x38] sm:$0xff] %v7058_v8   ;;  %v6269_v18 = vadd.f32 %v7658_v60, %v9025_v1  ;;  %v7660_v43 = vadd.f32 %v7623_v41, %v9036_v35  ;;  %v6060_v45 = vpop.f32.mrb[19].mxu0 }
 0x244   : > { %7115 = vst [vmem:[%s9042_s8 + $0x30] sm:$0xff] %v7053_v24   ;;  %v6267_v44 = vadd.f32 %v7659_v7, %v9025_v1  ;;  %v7661_v46 = vadd.f32 %v6060_v45, %v9039_v36 }
 0x245   : > { %v6270_v25 = vadd.f32 %v7660_v43, %v9025_v1  ;;  %v6305_v31 = vmax.f32 %v6269_v18, 0.0 }
 0x246   : > { %v6268_v51 = vadd.f32 %v7661_v46, %v9025_v1  ;;  %v6303_v16 = vmax.f32 %v6267_v44, 0.0 }
 0x247   : > { %v6306_v30 = vmax.f32 %v6270_v25, 0.0 }
 0x248   : > { %v6304_v40 = vmax.f32 %v6268_v51, 0.0  ;;  %v7626_v42 = vpop.f32.mrb[20].mxu0 }
 0x249   : > { %v7068_v52 = vpack.c.bf16 %v6306_v30, %v6305_v31  ;;  %v6073_v54 = vpop.f32.mrb[21].mxu0 }
 0x24a   : > { %v7063_v35 = vpack.c.bf16 %v6304_v40, %v6303_v16  ;;  %v7627_v55 = vpop.f32.mrb[22].mxu0 }
 0x24b   : > { %7118 = vst [vmem:[%s9042_s8 + $0x48] sm:$0xff] %v7068_v52   ;;  %v6076_v56 = vpop.f32.mrb[23].mxu0 }
 0x24c   : > { %7117 = vst [vmem:[%s9042_s8 + $0x40] sm:$0xff] %v7063_v35  }
 0x24e   : > { %v7474_v47 = vpop.f32.mrb[20].mxu1 }
 0x24f   : > { %v3603_v58 = vpop.f32.mrb[21].mxu1  ;;  %v7662_v29 = vadd.f32 %v7626_v42, %v7474_v47 }
 0x250   : > { %v7475_v36 = vpop.f32.mrb[22].mxu1  ;;  %v7663_v39 = vadd.f32 %v6073_v54, %v3603_v58  ;;  %v7630_v0 = vpop.f32.mrb[24].mxu0 }
 0x251   : > { %v3606_v57 = vpop.f32.mrb[23].mxu1  ;;  %v6273_v20 = vadd.f32 %v7662_v29, %v9025_v1  ;;  %v7664_v59 = vadd.f32 %v7627_v55, %v7475_v36  ;;  %v6089_v4 = vpop.f32.mrb[25].mxu0 }
 0x252   : > { %v6271_v61 = vadd.f32 %v7663_v39, %v9025_v1  ;;  %v7665_v63 = vadd.f32 %v6076_v56, %v3606_v57  ;;  %v7631_v33 = vpop.f32.mrb[26].mxu0 }
 0x253   : > { %v6274_v53 = vadd.f32 %v7664_v59, %v9025_v1  ;;  %v6309_v3 = vmax.f32 %v6273_v20, 0.0  ;;  %v6092_v10 = vpop.f32.mrb[27].mxu0 }
 0x254   : > { %v6272_v5 = vadd.f32 %v7665_v63, %v9025_v1  ;;  %v6307_v2 = vmax.f32 %v6271_v61, 0.0 }
 0x255   : > { %v6310_v62 = vmax.f32 %v6274_v53, 0.0 }
 0x256   : > { %v7478_v49 = vpop.f32.mrb[24].mxu1  ;;  %v6308_v48 = vmax.f32 %v6272_v5, 0.0 }
 0x257   : > { %v7078_v27 = vpack.c.bf16 %v6310_v62, %v6309_v3  ;;  %v3619_v21 = vpop.f32.mrb[25].mxu1  ;;  %v7666_v6 = vadd.f32 %v7630_v0, %v7478_v49 }
 0x258   : > { %v7073_v13 = vpack.c.bf16 %v6308_v48, %v6307_v2  ;;  %v7479_v15 = vpop.f32.mrb[26].mxu1  ;;  %v7667_v22 = vadd.f32 %v6089_v4, %v3619_v21  ;;  %v7634_v34 = vpop.f32.mrb[28].mxu0 }
 0x259   : > { %7120 = vst [vmem:[%s9042_s8 + $0x58] sm:$0xff] %v7078_v27   ;;  %v3622_v23 = vpop.f32.mrb[27].mxu1  ;;  %v6277_v14 = vadd.f32 %v7666_v6, %v9025_v1  ;;  %v7668_v26 = vadd.f32 %v7631_v33, %v7479_v15  ;;  %v6105_v12 = vpop.f32.mrb[29].mxu0 }
 0x25a   : > { %7119 = vst [vmem:[%s9042_s8 + $0x50] sm:$0xff] %v7073_v13   ;;  %v6275_v11 = vadd.f32 %v7667_v22, %v9025_v1  ;;  %v7669_v28 = vadd.f32 %v6092_v10, %v3622_v23  ;;  %v7635_v19 = vpop.f32.mrb[30].mxu0 }
 0x25b   : > { %v6278_v32 = vadd.f32 %v7668_v26, %v9025_v1  ;;  %v6313_v17 = vmax.f32 %v6277_v14, 0.0  ;;  %v6108_v38 = vpop.f32.mrb[31].mxu0 }
 0x25c   : > { %v6276_v50 = vadd.f32 %v7669_v28, %v9025_v1  ;;  %v6311_v37 = vmax.f32 %v6275_v11, 0.0 }
 0x25d   : > { %v6314_v9 = vmax.f32 %v6278_v32, 0.0 }
 0x25e   : > { %v7482_v8 = vpop.f32.mrb[28].mxu1  ;;  %v6312_v60 = vmax.f32 %v6276_v50, 0.0 }
 0x25f   : > { %v7088_v24 = vpack.c.bf16 %v6314_v9, %v6313_v17  ;;  %v3635_v7 = vpop.f32.mrb[29].mxu1  ;;  %v7670_v41 = vadd.f32 %v7634_v34, %v7482_v8 }
 0x260   : > { %v7083_v18 = vpack.c.bf16 %v6312_v60, %v6311_v37  ;;  %v7483_v43 = vpop.f32.mrb[30].mxu1  ;;  %v7671_v45 = vadd.f32 %v6105_v12, %v3635_v7  ;;  %v7638_v16 = vpop.f32.mrb[32].mxu0 }
 0x261   : > { %7122 = vst [vmem:[%s9042_s8 + $0x68] sm:$0xff] %v7088_v24   ;;  %v3638_v44 = vpop.f32.mrb[31].mxu1  ;;  %v6281_v46 = vadd.f32 %v7670_v41, %v9025_v1  ;;  %v7672_v25 = vadd.f32 %v7635_v19, %v7483_v43  ;;  %v6121_v42 = vpop.f32.mrb[33].mxu0 }
 0x262   : > { %7121 = vst [vmem:[%s9042_s8 + $0x60] sm:$0xff] %v7083_v18   ;;  %v6279_v51 = vadd.f32 %v7671_v45, %v9025_v1  ;;  %v7673_v31 = vadd.f32 %v6108_v38, %v3638_v44  ;;  %v7639_v35 = vpop.f32.mrb[34].mxu0 }
 0x263   : > { %v6282_v30 = vadd.f32 %v7672_v25, %v9025_v1  ;;  %v6317_v52 = vmax.f32 %v6281_v46, 0.0  ;;  %v6124_v58 = vpop.f32.mrb[35].mxu0 }
 0x264   : > { %v6280_v40 = vadd.f32 %v7673_v31, %v9025_v1  ;;  %v6315_v55 = vmax.f32 %v6279_v51, 0.0 }
 0x265   : > { %v6318_v54 = vmax.f32 %v6282_v30, 0.0 }
 0x266   : > { %v7486_v47 = vpop.f32.mrb[32].mxu1  ;;  %v6316_v56 = vmax.f32 %v6280_v40, 0.0 }
 0x267   : > { %v7098_v29 = vpack.c.bf16 %v6318_v54, %v6317_v52  ;;  %v3651_v36 = vpop.f32.mrb[33].mxu1  ;;  %v7674_v39 = vadd.f32 %v7638_v16, %v7486_v47 }
 0x268   : > { %v7093_v57 = vpack.c.bf16 %v6316_v56, %v6315_v55  ;;  %v7487_v20 = vpop.f32.mrb[34].mxu1  ;;  %v7675_v59 = vadd.f32 %v6121_v42, %v3651_v36 }
 0x269   : > { %7124 = vst [vmem:[%s9042_s8 + $0x78] sm:$0xff] %v7098_v29   ;;  %v3654_v61 = vpop.f32.mrb[35].mxu1  ;;  %v6285_v63 = vadd.f32 %v7674_v39, %v9025_v1  ;;  %v7676_v53 = vadd.f32 %v7639_v35, %v7487_v20 }
 0x26a   : > { %7123 = vst [vmem:[%s9042_s8 + $0x70] sm:$0xff] %v7093_v57   ;;  %v6283_v0 = vadd.f32 %v7675_v59, %v9025_v1  ;;  %v7677_v5 = vadd.f32 %v6124_v58, %v3654_v61 }
 0x26b   : > { %v6286_v4 = vadd.f32 %v7676_v53, %v9025_v1  ;;  %v6321_v62 = vmax.f32 %v6285_v63, 0.0 }
 0x26c   : > { %v6284_v3 = vadd.f32 %v7677_v5, %v9025_v1  ;;  %v6319_v2 = vmax.f32 %v6283_v0, 0.0 }
 0x26d   : > { %v6322_v33 = vmax.f32 %v6286_v4, 0.0 }
 0x26e   : > { %v6320_v49 = vmax.f32 %v6284_v3, 0.0 }
 0x26f   : > { %v7108_v48 = vpack.c.bf16 %v6322_v33, %v6321_v62 }
 0x270   : > { %v7103_v10 = vpack.c.bf16 %v6320_v49, %v6319_v2 }
 0x271   : > { %7126 = vst [vmem:[%s9042_s8 + $0x88] sm:$0xff] %v7108_v48  }
 0x272   : > { %7125 = vst [vmem:[%s9042_s8 + $0x80] sm:$0xff] %v7103_v10  }
 0x273   : > { %8178 = shalt.err (!%p8175_p3)
}
 0x274   : > { %s8179_s27 = scalar_lea.hbm %s9107_s19, 2304  ;;  %s8183_s30 = scalar_lea.hbm %s9157_s3, 4608 }
 0x275   : > { %p8180_p4 = scmp.ne.s32.totalorder %s9107_s19, %s8179_s27  ;;  %p8184_p9 = scmp.lt.u32.totalorder %s9107_s19, %s9157_s3 }
 0x276   : > { %p8185_p10 = scmp.lt.u32.totalorder %s8183_s30, %s8179_s27  ;;  %p8187_p12 = scmp.lt.u32.totalorder %s8179_s27, %s9107_s19 }
 0x277   : > { %p8181_p7 = pnand %p8180_p4, %p8291_p5 }
 0x278   : > { %p8186_p11 = por %p8185_p10, %p8184_p9 }
 0x279   : > { %p8182_p8 = pneg %p8181_p7 }
 0x27a   : > { %p8188_p13 = por %p8187_p12, %p8186_p11 }
 0x27c   : > { %p8189_p0 = pnand %p8188_p13, %p8182_p8 }
 0x27e   : > { %8192 = shalt.err (!%p8189_p0)
}
 0x27f   : > { %s8231_s6 = smov 64   ;;  %s8232_s7 = smov 4  }
 0x280   : > { %7942 = dma.vmem_to_hbm [thread:$0]  (%p8291_p5), %s9102_s10, 2304, %s9107_s19, %s9113_s16, %s8231_s6, %s8231_s6, %s8232_s7  }
 0x281 PF: > { %p7948_p1 = scmp.ge.s32.totalorder %s8227_s15, 2  ;;  %s6532_s8 = sand.u32 1, %s8215_s12  }
 0x282   : > { %s6533_s9 = scalar_lea.sflag [#allocation5], %s6532_s8 }
 0x283   : > { %p7945_p2 = pnand %p7948_p1, %p8295_p6 }
 0x285   : > { %8210 = dma.done.wait (!%p7945_p2), %s6533_s9, 2304  }
 0x286   : > { %8212 = vsyncadd (!%p7945_p2), %s6533_s9, 4294964992  ;;  %p13_p3 = scmp.ge.s32.totalorder %s8278_s18, 4   ;;  %s9390_s12 = smov %s8219_s13 }
 0x287   : > { %s9391_s13 = smov %s8223_s14  ;;  %s9392_s14 = smov %s8289_s21 }
 0x288   : > { %s9393_s15 = smov %s8278_s18  ;;  %15 = sbr.rel (!%p13_p3) target bundleno = 3 (0x3), region = 75 }
 0x28f   :  { %6538 = vsyncpa [#allocation5], 1 }
 0x290   :  { %6540 = vsyncpa [#allocation5 + $0x1], 1 }

</bundles_post_ra>
